<compile_context>
chip_gen: v7x
topology: tpu7x:2x2x1
jax: 0.10.0
libtpu: 0.0.40
codegen_flags: <defaults>
</compile_context>

<pallas_src>
import functools

import jax
import jax.numpy as jnp
from jax import lax
from jax.experimental import pallas as pl
from jax.experimental.pallas import tpu as pltpu


# ----------------------------------------------------------------------------
# Fused embedding-gather + multi-layer bidirectional-GRU + time-mean kernel
# ----------------------------------------------------------------------------
def _fused_bigru_kernel(num_layers, T, H, D, Bt, Bp, tok_ref, emb_ref, *refs):
    # refs layout: w_packed[0..num_layers-1], out_ref, x_buf, seq_buf, gi_buf
    w_refs = refs[:num_layers]
    out_ref = refs[num_layers]
    x_buf, seq_buf, gi_buf = refs[num_layers + 1:]

    twoH, threeH, fiveH, sixH = 2 * H, 3 * H, 5 * H, 6 * H

    # ---- (1) embedding gather into time-major, sublane-padded x scratch -----
    # Padded rows (b >= Bt) are zeroed; matmuls are row-wise so they never
    # contaminate real rows.
    x_buf[...] = jnp.zeros_like(x_buf)
    base = pl.program_id(0) * Bt * T
    for b in range(Bt):
        for t in range(T):
            tok = tok_ref[base + b * T + t]
            x_buf[pl.ds(t * Bp + b, 1), :] = emb_ref[pl.ds(tok, 1), :]

    inv_T = jnp.float32(1.0 / T)
    acc_last = jnp.zeros((Bp, twoH), jnp.float32)   # last-layer mean accumulator

    for l in range(num_layers):
        d_in = D if l == 0 else twoH
        w = w_refs[l]
        wih = w[0:d_in, :]                            # (Din, 6H)  [rf zf nf | rb zb nb]
        whh = w[d_in:d_in + twoH, :]                  # (2H, 6H)   block-diagonal
        bi = w[d_in + twoH:d_in + twoH + 1, :]        # (1, 6H)    bih + bhh(r,z) fused
        bhhn = w[d_in + twoH + 1:d_in + twoH + 2, :]  # (1, 6H)    only n columns non-zero

        # ---- hoisted input projection for both directions (one MXU matmul) ----
        src = x_buf if l == 0 else seq_buf
        gi_buf[...] = jnp.dot(src[...], wih,
                              preferred_element_type=jnp.float32) + bi

        is_last = (l == num_layers - 1)

        def body(i, carry):
            h, acc = carry                              # h = [hf | hb]  (Bp, 2H)
            tb = T - 1 - i
            # single block-diag matmul -> hidden gates of BOTH directions
            gh = jnp.dot(h, whh, preferred_element_type=jnp.float32)   # (Bp, 6H)
            rf_start = pl.multiple_of(i * Bp, Bp)
            rb_start = pl.multiple_of(tb * Bp, Bp)
            gi_f = gi_buf[pl.ds(rf_start, Bp), 0:threeH]      # fwd gates @ step i
            gi_b = gi_buf[pl.ds(rb_start, Bp), threeH:sixH]   # bwd gates @ step T-1-i
            # r,z contiguous per direction: one sigmoid issue per direction
            rz_f = jax.nn.sigmoid(gi_f[:, 0:twoH] + gh[:, 0:twoH])
            rz_b = jax.nn.sigmoid(gi_b[:, 0:twoH] + gh[:, threeH:fiveH])
            n_f = jnp.tanh(gi_f[:, twoH:threeH]
                           + rz_f[:, 0:H] * (gh[:, twoH:threeH] + bhhn[:, twoH:threeH]))
            n_b = jnp.tanh(gi_b[:, twoH:threeH]
                           + rz_b[:, 0:H] * (gh[:, fiveH:sixH] + bhhn[:, fiveH:sixH]))
            z_f = rz_f[:, H:twoH]
            z_b = rz_b[:, H:twoH]
            hf = (1.0 - z_f) * n_f + z_f * h[:, 0:H]
            hb = (1.0 - z_b) * n_b + z_b * h[:, H:twoH]
            h_new = jnp.concatenate([hf, hb], axis=1)
            if is_last:
                # register-accumulated time sum; no per-step stores on the last layer
                acc = acc + h_new
            else:
                seq_buf[pl.ds(rf_start, Bp), 0:H] = hf
                seq_buf[pl.ds(rb_start, Bp), H:twoH] = hb
            return h_new, acc

        h0 = jnp.zeros((Bp, twoH), jnp.float32)
        # Fully unrolled: T/H are small, so everything fits in vregs and the LLO
        # scheduler sees the whole chain.
        # TODO(synk): switch to partial unroll (2-4) if H >= 128 or T is large,
        # to avoid vreg spills.
        _, acc_last = lax.fori_loop(0, T, body, (h0, acc_last), unroll=True)

    # Only the time-mean of the last layer leaves the kernel.
    out_ref[...] = (acc_last * inv_T)[0:Bt, :]


# ----------------------------------------------------------------------------
# One-time weight preparation: transpose / block-diag / bias fusion / packing
# ----------------------------------------------------------------------------
def prepare_params(gru_layers, input_dim):
    """Packs each layer's GRU params into ONE (Din + 2H + 2, 6H) f32 array.

    Column layout (direction-major, torch gate order): [rf zf nf | rb zb nb].
    Rows: [wih_cat (Din) | whh_blockdiag (2H) | fused bias (1) | bhh_n row (1)].
    """
    prepped = []
    for l, p in enumerate(gru_layers):
        H = p["whh_f"].shape[1]            # torch shape (3H, H)
        d_in = input_dim if l == 0 else 2 * H
        twoH, threeH, fiveH, sixH = 2 * H, 3 * H, 5 * H, 6 * H

        wih_cat = jnp.concatenate([p["wih_f"].T, p["wih_b"].T], axis=1)   # (Din, 6H)

        whh_bd = jnp.zeros((twoH, sixH), jnp.float32)
        whh_bd = whh_bd.at[:H, :threeH].set(p["whh_f"].T)                 # fwd block
        whh_bd = whh_bd.at[H:, threeH:].set(p["whh_b"].T)                 # bwd block

        bi_f = jnp.concatenate([p["bih_f"][:twoH] + p["bhh_f"][:twoH],
                                p["bih_f"][twoH:]])
        bi_b = jnp.concatenate([p["bih_b"][:twoH] + p["bhh_b"][:twoH],
                                p["bih_b"][twoH:]])
        bi_cat = jnp.concatenate([bi_f, bi_b]).reshape(1, sixH)

        bhhn = jnp.zeros((1, sixH), jnp.float32)
        bhhn = bhhn.at[0, twoH:threeH].set(p["bhh_f"][twoH:])
        bhhn = bhhn.at[0, fiveH:sixH].set(p["bhh_b"][twoH:])

        packed = jnp.concatenate([wih_cat, whh_bd, bi_cat, bhhn],
                                 axis=0).astype(jnp.float32)              # (Din+2H+2, 6H)
        prepped.append(packed)
    return prepped


# ----------------------------------------------------------------------------
# Full Seq_enconder forward (everything in one pallas_call)
# ----------------------------------------------------------------------------
def seq_encoder_forward(tokens, emb_table, prepped_layers, input_dim):
    # tokens: (B, L) int32 token ids (padded to equal length for this batch)
    B, L = tokens.shape
    vocab, hidden = emb_table.shape
    # TODO(synk): only hidden_size == input_dim is handled by the in-kernel
    # gather (the typical chemprop config); other reshape ratios would need a
    # sub-row regrouping step.
    assert hidden == input_dim, "in-kernel gather assumes seq_hidden_size == seq_input_dim"
    T, D = L, input_dim
    H = prepped_layers[0].shape[1] // 6
    num_layers = len(prepped_layers)

    Bt = B                       # whole (small) batch in one block
    Bp = max(8, ((Bt + 7) // 8) * 8)   # sublane-padded batch rows in scratch
    # TODO(synk): for larger batches on v7x split the batch across >=2 grid
    # steps so both TensorCores are used; at B=2 a single step is optimal.
    grid = (B // Bt,)

    in_specs = [pl.BlockSpec(emb_table.shape, lambda b, tok: (0, 0))]
    for w in prepped_layers:
        in_specs.append(pl.BlockSpec(w.shape, lambda b, tok: (0, 0)))

    kernel = functools.partial(_fused_bigru_kernel, num_layers, T, H, D, Bt, Bp)
    mean = pl.pallas_call(
        kernel,
        out_shape=jax.ShapeDtypeStruct((B, 2 * H), jnp.float32),
        grid_spec=pltpu.PrefetchScalarGridSpec(
            num_scalar_prefetch=1,                 # token ids -> SMEM
            grid=grid,
            in_specs=in_specs,
            out_specs=pl.BlockSpec((Bt, 2 * H), lambda b, tok: (b, 0)),
            scratch_shapes=[
                pltpu.VMEM((T * Bp, D), jnp.float32),        # gathered embeddings
                pltpu.VMEM((T * Bp, 2 * H), jnp.float32),    # inter-layer sequence
                pltpu.VMEM((T * Bp, 6 * H), jnp.float32),    # hoisted input gates
            ],
        ),
        compiler_params=pltpu.CompilerParams(
            dimension_semantics=("parallel",),
            vmem_limit_bytes=32 * 1024 * 1024,     # explicit, safe on v5e/v6e/v7x
        ),
    )(tokens.reshape(-1).astype(jnp.int32), emb_table.astype(jnp.float32),
      *prepped_layers)
    # TODO(synk): variable-length per-SMILES sequences are padded to a common
    # length here; the reference processes each ragged sequence individually.
    return mean, 0, 0, 0


# ----------------------------------------------------------------------------
# Parameter construction (deterministic, shapes match the torch module __init__)
# ----------------------------------------------------------------------------
def init_params(key, vocab_size, input_dim, hidden_size, num_layers):
    H = hidden_size // 2
    keys = jax.random.split(key, 1 + 8 * num_layers)
    emb_table = jax.random.normal(keys[0], (vocab_size, hidden_size), jnp.float32)

    gru_layers = []
    k_idx = 1
    bound = 1.0 / jnp.sqrt(jnp.float32(H))
    for layer in range(num_layers):
        d_in = input_dim if layer == 0 else hidden_size   # bidirectional: 2*H
        p = {}
        for name, shape in (("wih_f", (3 * H, d_in)), ("whh_f", (3 * H, H)),
                            ("bih_f", (3 * H,)), ("bhh_f", (3 * H,)),
                            ("wih_b", (3 * H, d_in)), ("whh_b", (3 * H, H)),
                            ("bih_b", (3 * H,)), ("bhh_b", (3 * H,))):
            p[name] = jax.random.uniform(keys[k_idx], shape, jnp.float32,
                                         minval=-bound, maxval=bound)
            k_idx += 1
        gru_layers.append(p)
    return emb_table, gru_layers


# ----------------------------------------------------------------------------
# Pure-JAX reference for verification
# ----------------------------------------------------------------------------
def _ref_bigru_layer(x, p):
    H = p["whh_f"].shape[1]

    def run_dir(xs, wih, whh, bih, bhh):
        def step(h, x_t):
            gi = wih @ x_t + bih
            gh = whh @ h + bhh
            r = jax.nn.sigmoid(gi[:H] + gh[:H])
            z = jax.nn.sigmoid(gi[H:2 * H] + gh[H:2 * H])
            n = jnp.tanh(gi[2 * H:] + r * gh[2 * H:])
            hn = (1.0 - z) * n + z * h
            return hn, hn
        _, hs = lax.scan(step, jnp.zeros((H,), jnp.float32), xs)
        return hs

    def one(xb):
        hf = run_dir(xb, p["wih_f"], p["whh_f"], p["bih_f"], p["bhh_f"])
        hb = run_dir(xb[::-1], p["wih_b"], p["whh_b"], p["bih_b"], p["bhh_b"])[::-1]
        return jnp.concatenate([hf, hb], axis=-1)

    return jax.vmap(one)(x)


def ref_forward(tokens, emb_table, gru_layers, input_dim):
    emb = emb_table[tokens]
    seq = emb.reshape(emb.shape[0], -1, input_dim).astype(jnp.float32)
    for p in gru_layers:
        seq = _ref_bigru_layer(seq, p)
    return jnp.mean(seq, axis=1)


# ----------------------------------------------------------------------------
if __name__ == "__main__":
    # Synthetic "args": seq_input_dim == seq_hidden_size so the reshape is
    # shape-preserving (typical chemprop config); 2 stacked bi-GRU layers.
    vocab_size = 24
    input_dim = 32          # args.seq_input_dim
    hidden_size = 32        # args.seq_hidden_size  (per-direction H = 16)
    num_layers = 2          # args.seq_layer
    batch = 2
    seq_len = 8

    key = jax.random.PRNGKey(0)
    k_param, k_tok = jax.random.split(key)
    emb_table, gru_layers = init_params(k_param, vocab_size, input_dim,
                                        hidden_size, num_layers)
    tokens = jax.random.randint(k_tok, (batch, seq_len), 0, vocab_size, jnp.int32)

    prepped = prepare_params(gru_layers, input_dim)   # one-time weight transform

    out, _, _, _ = seq_encoder_forward(tokens, emb_table, prepped, input_dim)
    out = jax.block_until_ready(out)

    ref = jax.block_until_ready(ref_forward(tokens, emb_table, gru_layers, input_dim))
    assert out.shape == (batch, hidden_size), out.shape
    assert jnp.allclose(out, ref, atol=1e-4, rtol=1e-4), float(jnp.max(jnp.abs(out - ref)))

    print("KERNEL_OK")
</pallas_src>

<mosaic_0001>
module attributes {stable_mosaic.version = 11 : i64} {
  func.func @_fused_bigru_kernel(%arg0: i32, %arg1: memref<16xi32, #tpu.memory_space<smem>>, %arg2: memref<24x32xf32, #tpu.memory_space<vmem>>, %arg3: memref<66x96xf32, #tpu.memory_space<vmem>>, %arg4: memref<66x96xf32, #tpu.memory_space<vmem>>, %arg5: memref<2x32xf32, #tpu.memory_space<vmem>>, %arg6: memref<64x32xf32, #tpu.memory_space<vmem>>, %arg7: memref<64x32xf32, #tpu.memory_space<vmem>>, %arg8: memref<64x96xf32, #tpu.memory_space<vmem>>) attributes {dimension_semantics = [#tpu.dimension_semantics<parallel>], iteration_bounds = array<i64: 1>, scalar_prefetch = 1 : i64, scratch_operands = 3 : i64, tpu.core_type = #tpu.core_type<tc>, window_params = [{pipeline_mode = #tpu.pipeline_mode<synchronous>, transform_indices = @transform_0, window_bounds = array<i64: 24, 32>}, {pipeline_mode = #tpu.pipeline_mode<synchronous>, transform_indices = @transform_1, window_bounds = array<i64: 66, 96>}, {pipeline_mode = #tpu.pipeline_mode<synchronous>, transform_indices = @transform_2, window_bounds = array<i64: 66, 96>}, {transform_indices = @transform_3, window_bounds = array<i64: 2, 32>}]} {
    %cst = arith.constant 0.000000e+00 : f32
    %0 = vector.broadcast %cst : f32 to vector<64x32xf32>
    %c0 = arith.constant 0 : index
    %c0_0 = arith.constant 0 : index
    %1 = vector.load %arg6[%c0, %c0_0] : memref<64x32xf32, #tpu.memory_space<vmem>>, vector<64x32xf32>
    tpu.vector_store %arg6[%c0, %c0_0], %0 {strides = array<i32>} : memref<64x32xf32, #tpu.memory_space<vmem>>, vector<64x32xf32>,
    %c2_i32 = arith.constant 2 : i32
    %2 = arith.muli %arg0, %c2_i32 : i32
    %c8_i32 = arith.constant 8 : i32
    %3 = arith.muli %2, %c8_i32 : i32
    %c0_i32 = arith.constant 0 : i32
    %4 = arith.addi %3, %c0_i32 : i32
    %c0_i32_1 = arith.constant 0 : i32
    %5 = arith.addi %4, %c0_i32_1 : i32
    %6 = arith.index_cast %5 : i32 to index
    %7 = memref.load %arg1[%6] : memref<16xi32, #tpu.memory_space<smem>>
    %8 = arith.index_cast %7 : i32 to index
    %c0_2 = arith.constant 0 : index
    %9 = vector.load %arg2[%8, %c0_2] : memref<24x32xf32, #tpu.memory_space<vmem>>, vector<1x32xf32>
    %c0_3 = arith.constant 0 : index
    %c0_4 = arith.constant 0 : index
    %10 = vector.load %arg6[%c0_3, %c0_4] : memref<64x32xf32, #tpu.memory_space<vmem>>, vector<1x32xf32>
    tpu.vector_store %arg6[%c0_3, %c0_4], %9 {strides = array<i32>} : memref<64x32xf32, #tpu.memory_space<vmem>>, vector<1x32xf32>,
    %c0_i32_5 = arith.constant 0 : i32
    %11 = arith.addi %3, %c0_i32_5 : i32
    %c1_i32 = arith.constant 1 : i32
    %12 = arith.addi %11, %c1_i32 : i32
    %13 = arith.index_cast %12 : i32 to index
    %14 = memref.load %arg1[%13] : memref<16xi32, #tpu.memory_space<smem>>
    %15 = arith.index_cast %14 : i32 to index
    %c0_6 = arith.constant 0 : index
    %16 = vector.load %arg2[%15, %c0_6] : memref<24x32xf32, #tpu.memory_space<vmem>>, vector<1x32xf32>
    %c8 = arith.constant 8 : index
    %c0_7 = arith.constant 0 : index
    %17 = vector.load %arg6[%c8, %c0_7] : memref<64x32xf32, #tpu.memory_space<vmem>>, vector<1x32xf32>
    tpu.vector_store %arg6[%c8, %c0_7], %16 {strides = array<i32>} : memref<64x32xf32, #tpu.memory_space<vmem>>, vector<1x32xf32>,
    %c0_i32_8 = arith.constant 0 : i32
    %18 = arith.addi %3, %c0_i32_8 : i32
    %c2_i32_9 = arith.constant 2 : i32
    %19 = arith.addi %18, %c2_i32_9 : i32
    %20 = arith.index_cast %19 : i32 to index
    %21 = memref.load %arg1[%20] : memref<16xi32, #tpu.memory_space<smem>>
    %22 = arith.index_cast %21 : i32 to index
    %c0_10 = arith.constant 0 : index
    %23 = vector.load %arg2[%22, %c0_10] : memref<24x32xf32, #tpu.memory_space<vmem>>, vector<1x32xf32>
    %c16 = arith.constant 16 : index
    %c0_11 = arith.constant 0 : index
    %24 = vector.load %arg6[%c16, %c0_11] : memref<64x32xf32, #tpu.memory_space<vmem>>, vector<1x32xf32>
    tpu.vector_store %arg6[%c16, %c0_11], %23 {strides = array<i32>} : memref<64x32xf32, #tpu.memory_space<vmem>>, vector<1x32xf32>,
    %c0_i32_12 = arith.constant 0 : i32
    %25 = arith.addi %3, %c0_i32_12 : i32
    %c3_i32 = arith.constant 3 : i32
    %26 = arith.addi %25, %c3_i32 : i32
    %27 = arith.index_cast %26 : i32 to index
    %28 = memref.load %arg1[%27] : memref<16xi32, #tpu.memory_space<smem>>
    %29 = arith.index_cast %28 : i32 to index
    %c0_13 = arith.constant 0 : index
    %30 = vector.load %arg2[%29, %c0_13] : memref<24x32xf32, #tpu.memory_space<vmem>>, vector<1x32xf32>
    %c24 = arith.constant 24 : index
    %c0_14 = arith.constant 0 : index
    %31 = vector.load %arg6[%c24, %c0_14] : memref<64x32xf32, #tpu.memory_space<vmem>>, vector<1x32xf32>
    tpu.vector_store %arg6[%c24, %c0_14], %30 {strides = array<i32>} : memref<64x32xf32, #tpu.memory_space<vmem>>, vector<1x32xf32>,
    %c0_i32_15 = arith.constant 0 : i32
    %32 = arith.addi %3, %c0_i32_15 : i32
    %c4_i32 = arith.constant 4 : i32
    %33 = arith.addi %32, %c4_i32 : i32
    %34 = arith.index_cast %33 : i32 to index
    %35 = memref.load %arg1[%34] : memref<16xi32, #tpu.memory_space<smem>>
    %36 = arith.index_cast %35 : i32 to index
    %c0_16 = arith.constant 0 : index
    %37 = vector.load %arg2[%36, %c0_16] : memref<24x32xf32, #tpu.memory_space<vmem>>, vector<1x32xf32>
    %c32 = arith.constant 32 : index
    %c0_17 = arith.constant 0 : index
    %38 = vector.load %arg6[%c32, %c0_17] : memref<64x32xf32, #tpu.memory_space<vmem>>, vector<1x32xf32>
    tpu.vector_store %arg6[%c32, %c0_17], %37 {strides = array<i32>} : memref<64x32xf32, #tpu.memory_space<vmem>>, vector<1x32xf32>,
    %c0_i32_18 = arith.constant 0 : i32
    %39 = arith.addi %3, %c0_i32_18 : i32
    %c5_i32 = arith.constant 5 : i32
    %40 = arith.addi %39, %c5_i32 : i32
    %41 = arith.index_cast %40 : i32 to index
    %42 = memref.load %arg1[%41] : memref<16xi32, #tpu.memory_space<smem>>
    %43 = arith.index_cast %42 : i32 to index
    %c0_19 = arith.constant 0 : index
    %44 = vector.load %arg2[%43, %c0_19] : memref<24x32xf32, #tpu.memory_space<vmem>>, vector<1x32xf32>
    %c40 = arith.constant 40 : index
    %c0_20 = arith.constant 0 : index
    %45 = vector.load %arg6[%c40, %c0_20] : memref<64x32xf32, #tpu.memory_space<vmem>>, vector<1x32xf32>
    tpu.vector_store %arg6[%c40, %c0_20], %44 {strides = array<i32>} : memref<64x32xf32, #tpu.memory_space<vmem>>, vector<1x32xf32>,
    %c0_i32_21 = arith.constant 0 : i32
    %46 = arith.addi %3, %c0_i32_21 : i32
    %c6_i32 = arith.constant 6 : i32
    %47 = arith.addi %46, %c6_i32 : i32
    %48 = arith.index_cast %47 : i32 to index
    %49 = memref.load %arg1[%48] : memref<16xi32, #tpu.memory_space<smem>>
    %50 = arith.index_cast %49 : i32 to index
    %c0_22 = arith.constant 0 : index
    %51 = vector.load %arg2[%50, %c0_22] : memref<24x32xf32, #tpu.memory_space<vmem>>, vector<1x32xf32>
    %c48 = arith.constant 48 : index
    %c0_23 = arith.constant 0 : index
    %52 = vector.load %arg6[%c48, %c0_23] : memref<64x32xf32, #tpu.memory_space<vmem>>, vector<1x32xf32>
    tpu.vector_store %arg6[%c48, %c0_23], %51 {strides = array<i32>} : memref<64x32xf32, #tpu.memory_space<vmem>>, vector<1x32xf32>,
    %c0_i32_24 = arith.constant 0 : i32
    %53 = arith.addi %3, %c0_i32_24 : i32
    %c7_i32 = arith.constant 7 : i32
    %54 = arith.addi %53, %c7_i32 : i32
    %55 = arith.index_cast %54 : i32 to index
    %56 = memref.load %arg1[%55] : memref<16xi32, #tpu.memory_space<smem>>
    %57 = arith.index_cast %56 : i32 to index
    %c0_25 = arith.constant 0 : index
    %58 = vector.load %arg2[%57, %c0_25] : memref<24x32xf32, #tpu.memory_space<vmem>>, vector<1x32xf32>
    %c56 = arith.constant 56 : index
    %c0_26 = arith.constant 0 : index
    %59 = vector.load %arg6[%c56, %c0_26] : memref<64x32xf32, #tpu.memory_space<vmem>>, vector<1x32xf32>
    tpu.vector_store %arg6[%c56, %c0_26], %58 {strides = array<i32>} : memref<64x32xf32, #tpu.memory_space<vmem>>, vector<1x32xf32>,
    %c8_i32_27 = arith.constant 8 : i32
    %60 = arith.addi %3, %c8_i32_27 : i32
    %c0_i32_28 = arith.constant 0 : i32
    %61 = arith.addi %60, %c0_i32_28 : i32
    %62 = arith.index_cast %61 : i32 to index
    %63 = memref.load %arg1[%62] : memref<16xi32, #tpu.memory_space<smem>>
    %64 = arith.index_cast %63 : i32 to index
    %c0_29 = arith.constant 0 : index
    %65 = vector.load %arg2[%64, %c0_29] : memref<24x32xf32, #tpu.memory_space<vmem>>, vector<1x32xf32>
    %c1 = arith.constant 1 : index
    %c0_30 = arith.constant 0 : index
    %66 = vector.load %arg6[%c1, %c0_30] : memref<64x32xf32, #tpu.memory_space<vmem>>, vector<1x32xf32>
    tpu.vector_store %arg6[%c1, %c0_30], %65 {strides = array<i32>} : memref<64x32xf32, #tpu.memory_space<vmem>>, vector<1x32xf32>,
    %c8_i32_31 = arith.constant 8 : i32
    %67 = arith.addi %3, %c8_i32_31 : i32
    %c1_i32_32 = arith.constant 1 : i32
    %68 = arith.addi %67, %c1_i32_32 : i32
    %69 = arith.index_cast %68 : i32 to index
    %70 = memref.load %arg1[%69] : memref<16xi32, #tpu.memory_space<smem>>
    %71 = arith.index_cast %70 : i32 to index
    %c0_33 = arith.constant 0 : index
    %72 = vector.load %arg2[%71, %c0_33] : memref<24x32xf32, #tpu.memory_space<vmem>>, vector<1x32xf32>
    %c9 = arith.constant 9 : index
    %c0_34 = arith.constant 0 : index
    %73 = vector.load %arg6[%c9, %c0_34] : memref<64x32xf32, #tpu.memory_space<vmem>>, vector<1x32xf32>
    tpu.vector_store %arg6[%c9, %c0_34], %72 {strides = array<i32>} : memref<64x32xf32, #tpu.memory_space<vmem>>, vector<1x32xf32>,
    %c8_i32_35 = arith.constant 8 : i32
    %74 = arith.addi %3, %c8_i32_35 : i32
    %c2_i32_36 = arith.constant 2 : i32
    %75 = arith.addi %74, %c2_i32_36 : i32
    %76 = arith.index_cast %75 : i32 to index
    %77 = memref.load %arg1[%76] : memref<16xi32, #tpu.memory_space<smem>>
    %78 = arith.index_cast %77 : i32 to index
    %c0_37 = arith.constant 0 : index
    %79 = vector.load %arg2[%78, %c0_37] : memref<24x32xf32, #tpu.memory_space<vmem>>, vector<1x32xf32>
    %c17 = arith.constant 17 : index
    %c0_38 = arith.constant 0 : index
    %80 = vector.load %arg6[%c17, %c0_38] : memref<64x32xf32, #tpu.memory_space<vmem>>, vector<1x32xf32>
    tpu.vector_store %arg6[%c17, %c0_38], %79 {strides = array<i32>} : memref<64x32xf32, #tpu.memory_space<vmem>>, vector<1x32xf32>,
    %c8_i32_39 = arith.constant 8 : i32
    %81 = arith.addi %3, %c8_i32_39 : i32
    %c3_i32_40 = arith.constant 3 : i32
    %82 = arith.addi %81, %c3_i32_40 : i32
    %83 = arith.index_cast %82 : i32 to index
    %84 = memref.load %arg1[%83] : memref<16xi32, #tpu.memory_space<smem>>
    %85 = arith.index_cast %84 : i32 to index
    %c0_41 = arith.constant 0 : index
    %86 = vector.load %arg2[%85, %c0_41] : memref<24x32xf32, #tpu.memory_space<vmem>>, vector<1x32xf32>
    %c25 = arith.constant 25 : index
    %c0_42 = arith.constant 0 : index
    %87 = vector.load %arg6[%c25, %c0_42] : memref<64x32xf32, #tpu.memory_space<vmem>>, vector<1x32xf32>
    tpu.vector_store %arg6[%c25, %c0_42], %86 {strides = array<i32>} : memref<64x32xf32, #tpu.memory_space<vmem>>, vector<1x32xf32>,
    %c8_i32_43 = arith.constant 8 : i32
    %88 = arith.addi %3, %c8_i32_43 : i32
    %c4_i32_44 = arith.constant 4 : i32
    %89 = arith.addi %88, %c4_i32_44 : i32
    %90 = arith.index_cast %89 : i32 to index
    %91 = memref.load %arg1[%90] : memref<16xi32, #tpu.memory_space<smem>>
    %92 = arith.index_cast %91 : i32 to index
    %c0_45 = arith.constant 0 : index
    %93 = vector.load %arg2[%92, %c0_45] : memref<24x32xf32, #tpu.memory_space<vmem>>, vector<1x32xf32>
    %c33 = arith.constant 33 : index
    %c0_46 = arith.constant 0 : index
    %94 = vector.load %arg6[%c33, %c0_46] : memref<64x32xf32, #tpu.memory_space<vmem>>, vector<1x32xf32>
    tpu.vector_store %arg6[%c33, %c0_46], %93 {strides = array<i32>} : memref<64x32xf32, #tpu.memory_space<vmem>>, vector<1x32xf32>,
    %c8_i32_47 = arith.constant 8 : i32
    %95 = arith.addi %3, %c8_i32_47 : i32
    %c5_i32_48 = arith.constant 5 : i32
    %96 = arith.addi %95, %c5_i32_48 : i32
    %97 = arith.index_cast %96 : i32 to index
    %98 = memref.load %arg1[%97] : memref<16xi32, #tpu.memory_space<smem>>
    %99 = arith.index_cast %98 : i32 to index
    %c0_49 = arith.constant 0 : index
    %100 = vector.load %arg2[%99, %c0_49] : memref<24x32xf32, #tpu.memory_space<vmem>>, vector<1x32xf32>
    %c41 = arith.constant 41 : index
    %c0_50 = arith.constant 0 : index
    %101 = vector.load %arg6[%c41, %c0_50] : memref<64x32xf32, #tpu.memory_space<vmem>>, vector<1x32xf32>
    tpu.vector_store %arg6[%c41, %c0_50], %100 {strides = array<i32>} : memref<64x32xf32, #tpu.memory_space<vmem>>, vector<1x32xf32>,
    %c8_i32_51 = arith.constant 8 : i32
    %102 = arith.addi %3, %c8_i32_51 : i32
    %c6_i32_52 = arith.constant 6 : i32
    %103 = arith.addi %102, %c6_i32_52 : i32
    %104 = arith.index_cast %103 : i32 to index
    %105 = memref.load %arg1[%104] : memref<16xi32, #tpu.memory_space<smem>>
    %106 = arith.index_cast %105 : i32 to index
    %c0_53 = arith.constant 0 : index
    %107 = vector.load %arg2[%106, %c0_53] : memref<24x32xf32, #tpu.memory_space<vmem>>, vector<1x32xf32>
    %c49 = arith.constant 49 : index
    %c0_54 = arith.constant 0 : index
    %108 = vector.load %arg6[%c49, %c0_54] : memref<64x32xf32, #tpu.memory_space<vmem>>, vector<1x32xf32>
    tpu.vector_store %arg6[%c49, %c0_54], %107 {strides = array<i32>} : memref<64x32xf32, #tpu.memory_space<vmem>>, vector<1x32xf32>,
    %c8_i32_55 = arith.constant 8 : i32
    %109 = arith.addi %3, %c8_i32_55 : i32
    %c7_i32_56 = arith.constant 7 : i32
    %110 = arith.addi %109, %c7_i32_56 : i32
    %111 = arith.index_cast %110 : i32 to index
    %112 = memref.load %arg1[%111] : memref<16xi32, #tpu.memory_space<smem>>
    %113 = arith.index_cast %112 : i32 to index
    %c0_57 = arith.constant 0 : index
    %114 = vector.load %arg2[%113, %c0_57] : memref<24x32xf32, #tpu.memory_space<vmem>>, vector<1x32xf32>
    %c57 = arith.constant 57 : index
    %c0_58 = arith.constant 0 : index
    %115 = vector.load %arg6[%c57, %c0_58] : memref<64x32xf32, #tpu.memory_space<vmem>>, vector<1x32xf32>
    tpu.vector_store %arg6[%c57, %c0_58], %114 {strides = array<i32>} : memref<64x32xf32, #tpu.memory_space<vmem>>, vector<1x32xf32>,
    %cst_59 = arith.constant 0.000000e+00 : f32
    %116 = vector.broadcast %cst_59 : f32 to vector<8x32xf32>
    %c0_60 = arith.constant 0 : index
    %c0_61 = arith.constant 0 : index
    %117 = vector.load %arg3[%c0_60, %c0_61] : memref<66x96xf32, #tpu.memory_space<vmem>>, vector<32x96xf32>
    %c32_62 = arith.constant 32 : index
    %c0_63 = arith.constant 0 : index
    %118 = vector.load %arg3[%c32_62, %c0_63] : memref<66x96xf32, #tpu.memory_space<vmem>>, vector<32x96xf32>
    %c64 = arith.constant 64 : index
    %c0_64 = arith.constant 0 : index
    %119 = vector.load %arg3[%c64, %c0_64] : memref<66x96xf32, #tpu.memory_space<vmem>>, vector<1x96xf32>
    %c65 = arith.constant 65 : index
    %c0_65 = arith.constant 0 : index
    %120 = vector.load %arg3[%c65, %c0_65] : memref<66x96xf32, #tpu.memory_space<vmem>>, vector<1x96xf32>
    %c0_66 = arith.constant 0 : index
    %c0_67 = arith.constant 0 : index
    %121 = vector.load %arg6[%c0_66, %c0_67] : memref<64x32xf32, #tpu.memory_space<vmem>>, vector<64x32xf32>
    %cst_68 = arith.constant dense<0.000000e+00> : vector<64x96xf32>
    %122 = tpu.matmul %121, %117, %cst_68 {dimension_numbers = #tpu.dot_dimension_numbers<[1], [0], [0], [1], [0, 0, 1, 1], [], []>} : vector<64x32xf32>, vector<32x96xf32>, vector<64x96xf32> -> vector<64x96xf32>
    %123 = vector.broadcast %119 : vector<1x96xf32> to vector<64x96xf32>
    %124 = arith.addf %122, %123 : vector<64x96xf32>
    %c0_69 = arith.constant 0 : index
    %c0_70 = arith.constant 0 : index
    %125 = vector.load %arg8[%c0_69, %c0_70] : memref<64x96xf32, #tpu.memory_space<vmem>>, vector<64x96xf32>
    tpu.vector_store %arg8[%c0_69, %c0_70], %124 {strides = array<i32>} : memref<64x96xf32, #tpu.memory_space<vmem>>, vector<64x96xf32>,
    %cst_71 = arith.constant 0.000000e+00 : f32
    %126 = vector.broadcast %cst_71 : f32 to vector<8x32xf32>
    %c0_i32_72 = arith.constant 0 : i32
    %c7_i32_73 = arith.constant 7 : i32
    %127 = arith.subi %c7_i32_73, %c0_i32_72 : i32
    %cst_74 = arith.constant dense<0.000000e+00> : vector<8x96xf32>
    %128 = tpu.matmul %126, %118, %cst_74 {dimension_numbers = #tpu.dot_dimension_numbers<[1], [0], [0], [1], [0, 0, 1, 1], [], []>} : vector<8x32xf32>, vector<32x96xf32>, vector<8x96xf32> -> vector<8x96xf32>
    %c8_i32_75 = arith.constant 8 : i32
    %129 = arith.muli %c0_i32_72, %c8_i32_75 : i32
    %130 = tpu.assume_multiple %129, 8 : i32
    %c8_i32_76 = arith.constant 8 : i32
    %131 = arith.muli %127, %c8_i32_76 : i32
    %132 = tpu.assume_multiple %131, 8 : i32
    %133 = arith.index_cast %130 : i32 to index
    %c0_77 = arith.constant 0 : index
    %134 = vector.load %arg8[%133, %c0_77] : memref<64x96xf32, #tpu.memory_space<vmem>>, vector<8x48xf32>
    %135 = arith.index_cast %132 : i32 to index
    %c48_78 = arith.constant 48 : index
    %136 = vector.load %arg8[%135, %c48_78] : memref<64x96xf32, #tpu.memory_space<vmem>>, vector<8x48xf32>
    %137 = vector.extract_strided_slice %134 {offsets = [0, 0], sizes = [8, 32], strides = [1, 1]} : vector<8x48xf32> to vector<8x32xf32>
    %138 = vector.extract_strided_slice %128 {offsets = [0, 0], sizes = [8, 32], strides = [1, 1]} : vector<8x96xf32> to vector<8x32xf32>
    %139 = arith.addf %137, %138 : vector<8x32xf32>
    %140 = arith.negf %139 : vector<8x32xf32>
    %141 = math.exp %140 : vector<8x32xf32>
    %cst_79 = arith.constant 1.000000e+00 : f32
    %142 = vector.broadcast %cst_79 : f32 to vector<8x32xf32>
    %143 = arith.addf %142, %141 : vector<8x32xf32>
    %144 = arith.divf %142, %143 : vector<8x32xf32>
    %145 = vector.extract_strided_slice %136 {offsets = [0, 0], sizes = [8, 32], strides = [1, 1]} : vector<8x48xf32> to vector<8x32xf32>
    %146 = vector.extract_strided_slice %128 {offsets = [0, 48], sizes = [8, 32], strides = [1, 1]} : vector<8x96xf32> to vector<8x32xf32>
    %147 = arith.addf %145, %146 : vector<8x32xf32>
    %148 = arith.negf %147 : vector<8x32xf32>
    %149 = math.exp %148 : vector<8x32xf32>
    %cst_80 = arith.constant 1.000000e+00 : f32
    %150 = vector.broadcast %cst_80 : f32 to vector<8x32xf32>
    %151 = arith.addf %150, %149 : vector<8x32xf32>
    %152 = arith.divf %150, %151 : vector<8x32xf32>
    %153 = vector.extract_strided_slice %134 {offsets = [0, 32], sizes = [8, 16], strides = [1, 1]} : vector<8x48xf32> to vector<8x16xf32>
    %154 = vector.extract_strided_slice %144 {offsets = [0, 0], sizes = [8, 16], strides = [1, 1]} : vector<8x32xf32> to vector<8x16xf32>
    %155 = vector.extract_strided_slice %128 {offsets = [0, 32], sizes = [8, 16], strides = [1, 1]} : vector<8x96xf32> to vector<8x16xf32>
    %156 = vector.extract_strided_slice %120 {offsets = [0, 32], sizes = [1, 16], strides = [1, 1]} : vector<1x96xf32> to vector<1x16xf32>
    %157 = vector.broadcast %156 : vector<1x16xf32> to vector<8x16xf32>
    %158 = arith.addf %155, %157 : vector<8x16xf32>
    %159 = arith.mulf %154, %158 : vector<8x16xf32>
    %160 = arith.addf %153, %159 : vector<8x16xf32>
    %161 = math.tanh %160 : vector<8x16xf32>
    %162 = vector.extract_strided_slice %136 {offsets = [0, 32], sizes = [8, 16], strides = [1, 1]} : vector<8x48xf32> to vector<8x16xf32>
    %163 = vector.extract_strided_slice %152 {offsets = [0, 0], sizes = [8, 16], strides = [1, 1]} : vector<8x32xf32> to vector<8x16xf32>
    %164 = vector.extract_strided_slice %128 {offsets = [0, 80], sizes = [8, 16], strides = [1, 1]} : vector<8x96xf32> to vector<8x16xf32>
    %165 = vector.extract_strided_slice %120 {offsets = [0, 80], sizes = [1, 16], strides = [1, 1]} : vector<1x96xf32> to vector<1x16xf32>
    %166 = vector.broadcast %165 : vector<1x16xf32> to vector<8x16xf32>
    %167 = arith.addf %164, %166 : vector<8x16xf32>
    %168 = arith.mulf %163, %167 : vector<8x16xf32>
    %169 = arith.addf %162, %168 : vector<8x16xf32>
    %170 = math.tanh %169 : vector<8x16xf32>
    %171 = vector.extract_strided_slice %144 {offsets = [0, 16], sizes = [8, 16], strides = [1, 1]} : vector<8x32xf32> to vector<8x16xf32>
    %172 = vector.extract_strided_slice %152 {offsets = [0, 16], sizes = [8, 16], strides = [1, 1]} : vector<8x32xf32> to vector<8x16xf32>
    %cst_81 = arith.constant 1.000000e+00 : f32
    %173 = vector.broadcast %cst_81 : f32 to vector<8x16xf32>
    %174 = arith.subf %173, %171 : vector<8x16xf32>
    %175 = arith.mulf %174, %161 : vector<8x16xf32>
    %176 = vector.extract_strided_slice %126 {offsets = [0, 0], sizes = [8, 16], strides = [1, 1]} : vector<8x32xf32> to vector<8x16xf32>
    %177 = arith.mulf %171, %176 : vector<8x16xf32>
    %178 = arith.addf %175, %177 : vector<8x16xf32>
    %cst_82 = arith.constant 1.000000e+00 : f32
    %179 = vector.broadcast %cst_82 : f32 to vector<8x16xf32>
    %180 = arith.subf %179, %172 : vector<8x16xf32>
    %181 = arith.mulf %180, %170 : vector<8x16xf32>
    %182 = vector.extract_strided_slice %126 {offsets = [0, 16], sizes = [8, 16], strides = [1, 1]} : vector<8x32xf32> to vector<8x16xf32>
    %183 = arith.mulf %172, %182 : vector<8x16xf32>
    %184 = arith.addf %181, %183 : vector<8x16xf32>
    %185 = tpu.concatenate %178, %184 in 1 : vector<8x16xf32>, vector<8x16xf32> -> vector<8x32xf32>
    %186 = arith.index_cast %130 : i32 to index
    %c0_83 = arith.constant 0 : index
    %187 = vector.load %arg7[%186, %c0_83] : memref<64x32xf32, #tpu.memory_space<vmem>>, vector<8x16xf32>
    tpu.vector_store %arg7[%186, %c0_83], %178 {strides = array<i32>} : memref<64x32xf32, #tpu.memory_space<vmem>>, vector<8x16xf32>,
    %188 = arith.index_cast %132 : i32 to index
    %c16_84 = arith.constant 16 : index
    %189 = vector.load %arg7[%188, %c16_84] : memref<64x32xf32, #tpu.memory_space<vmem>>, vector<8x16xf32>
    tpu.vector_store %arg7[%188, %c16_84], %184 {strides = array<i32>} : memref<64x32xf32, #tpu.memory_space<vmem>>, vector<8x16xf32>,
    %c1_i32_85 = arith.constant 1 : i32
    %c7_i32_86 = arith.constant 7 : i32
    %190 = arith.subi %c7_i32_86, %c1_i32_85 : i32
    %cst_87 = arith.constant dense<0.000000e+00> : vector<8x96xf32>
    %191 = tpu.matmul %185, %118, %cst_87 {dimension_numbers = #tpu.dot_dimension_numbers<[1], [0], [0], [1], [0, 0, 1, 1], [], []>} : vector<8x32xf32>, vector<32x96xf32>, vector<8x96xf32> -> vector<8x96xf32>
    %c8_i32_88 = arith.constant 8 : i32
    %192 = arith.muli %c1_i32_85, %c8_i32_88 : i32
    %193 = tpu.assume_multiple %192, 8 : i32
    %c8_i32_89 = arith.constant 8 : i32
    %194 = arith.muli %190, %c8_i32_89 : i32
    %195 = tpu.assume_multiple %194, 8 : i32
    %196 = arith.index_cast %193 : i32 to index
    %c0_90 = arith.constant 0 : index
    %197 = vector.load %arg8[%196, %c0_90] : memref<64x96xf32, #tpu.memory_space<vmem>>, vector<8x48xf32>
    %198 = arith.index_cast %195 : i32 to index
    %c48_91 = arith.constant 48 : index
    %199 = vector.load %arg8[%198, %c48_91] : memref<64x96xf32, #tpu.memory_space<vmem>>, vector<8x48xf32>
    %200 = vector.extract_strided_slice %197 {offsets = [0, 0], sizes = [8, 32], strides = [1, 1]} : vector<8x48xf32> to vector<8x32xf32>
    %201 = vector.extract_strided_slice %191 {offsets = [0, 0], sizes = [8, 32], strides = [1, 1]} : vector<8x96xf32> to vector<8x32xf32>
    %202 = arith.addf %200, %201 : vector<8x32xf32>
    %203 = arith.negf %202 : vector<8x32xf32>
    %204 = math.exp %203 : vector<8x32xf32>
    %cst_92 = arith.constant 1.000000e+00 : f32
    %205 = vector.broadcast %cst_92 : f32 to vector<8x32xf32>
    %206 = arith.addf %205, %204 : vector<8x32xf32>
    %207 = arith.divf %205, %206 : vector<8x32xf32>
    %208 = vector.extract_strided_slice %199 {offsets = [0, 0], sizes = [8, 32], strides = [1, 1]} : vector<8x48xf32> to vector<8x32xf32>
    %209 = vector.extract_strided_slice %191 {offsets = [0, 48], sizes = [8, 32], strides = [1, 1]} : vector<8x96xf32> to vector<8x32xf32>
    %210 = arith.addf %208, %209 : vector<8x32xf32>
    %211 = arith.negf %210 : vector<8x32xf32>
    %212 = math.exp %211 : vector<8x32xf32>
    %cst_93 = arith.constant 1.000000e+00 : f32
    %213 = vector.broadcast %cst_93 : f32 to vector<8x32xf32>
    %214 = arith.addf %213, %212 : vector<8x32xf32>
    %215 = arith.divf %213, %214 : vector<8x32xf32>
    %216 = vector.extract_strided_slice %197 {offsets = [0, 32], sizes = [8, 16], strides = [1, 1]} : vector<8x48xf32> to vector<8x16xf32>
    %217 = vector.extract_strided_slice %207 {offsets = [0, 0], sizes = [8, 16], strides = [1, 1]} : vector<8x32xf32> to vector<8x16xf32>
    %218 = vector.extract_strided_slice %191 {offsets = [0, 32], sizes = [8, 16], strides = [1, 1]} : vector<8x96xf32> to vector<8x16xf32>
    %219 = vector.extract_strided_slice %120 {offsets = [0, 32], sizes = [1, 16], strides = [1, 1]} : vector<1x96xf32> to vector<1x16xf32>
    %220 = vector.broadcast %219 : vector<1x16xf32> to vector<8x16xf32>
    %221 = arith.addf %218, %220 : vector<8x16xf32>
    %222 = arith.mulf %217, %221 : vector<8x16xf32>
    %223 = arith.addf %216, %222 : vector<8x16xf32>
    %224 = math.tanh %223 : vector<8x16xf32>
    %225 = vector.extract_strided_slice %199 {offsets = [0, 32], sizes = [8, 16], strides = [1, 1]} : vector<8x48xf32> to vector<8x16xf32>
    %226 = vector.extract_strided_slice %215 {offsets = [0, 0], sizes = [8, 16], strides = [1, 1]} : vector<8x32xf32> to vector<8x16xf32>
    %227 = vector.extract_strided_slice %191 {offsets = [0, 80], sizes = [8, 16], strides = [1, 1]} : vector<8x96xf32> to vector<8x16xf32>
    %228 = vector.extract_strided_slice %120 {offsets = [0, 80], sizes = [1, 16], strides = [1, 1]} : vector<1x96xf32> to vector<1x16xf32>
    %229 = vector.broadcast %228 : vector<1x16xf32> to vector<8x16xf32>
    %230 = arith.addf %227, %229 : vector<8x16xf32>
    %231 = arith.mulf %226, %230 : vector<8x16xf32>
    %232 = arith.addf %225, %231 : vector<8x16xf32>
    %233 = math.tanh %232 : vector<8x16xf32>
    %234 = vector.extract_strided_slice %207 {offsets = [0, 16], sizes = [8, 16], strides = [1, 1]} : vector<8x32xf32> to vector<8x16xf32>
    %235 = vector.extract_strided_slice %215 {offsets = [0, 16], sizes = [8, 16], strides = [1, 1]} : vector<8x32xf32> to vector<8x16xf32>
    %cst_94 = arith.constant 1.000000e+00 : f32
    %236 = vector.broadcast %cst_94 : f32 to vector<8x16xf32>
    %237 = arith.subf %236, %234 : vector<8x16xf32>
    %238 = arith.mulf %237, %224 : vector<8x16xf32>
    %239 = vector.extract_strided_slice %185 {offsets = [0, 0], sizes = [8, 16], strides = [1, 1]} : vector<8x32xf32> to vector<8x16xf32>
    %240 = arith.mulf %234, %239 : vector<8x16xf32>
    %241 = arith.addf %238, %240 : vector<8x16xf32>
    %cst_95 = arith.constant 1.000000e+00 : f32
    %242 = vector.broadcast %cst_95 : f32 to vector<8x16xf32>
    %243 = arith.subf %242, %235 : vector<8x16xf32>
    %244 = arith.mulf %243, %233 : vector<8x16xf32>
    %245 = vector.extract_strided_slice %185 {offsets = [0, 16], sizes = [8, 16], strides = [1, 1]} : vector<8x32xf32> to vector<8x16xf32>
    %246 = arith.mulf %235, %245 : vector<8x16xf32>
    %247 = arith.addf %244, %246 : vector<8x16xf32>
    %248 = tpu.concatenate %241, %247 in 1 : vector<8x16xf32>, vector<8x16xf32> -> vector<8x32xf32>
    %249 = arith.index_cast %193 : i32 to index
    %c0_96 = arith.constant 0 : index
    %250 = vector.load %arg7[%249, %c0_96] : memref<64x32xf32, #tpu.memory_space<vmem>>, vector<8x16xf32>
    tpu.vector_store %arg7[%249, %c0_96], %241 {strides = array<i32>} : memref<64x32xf32, #tpu.memory_space<vmem>>, vector<8x16xf32>,
    %251 = arith.index_cast %195 : i32 to index
    %c16_97 = arith.constant 16 : index
    %252 = vector.load %arg7[%251, %c16_97] : memref<64x32xf32, #tpu.memory_space<vmem>>, vector<8x16xf32>
    tpu.vector_store %arg7[%251, %c16_97], %247 {strides = array<i32>} : memref<64x32xf32, #tpu.memory_space<vmem>>, vector<8x16xf32>,
    %c2_i32_98 = arith.constant 2 : i32
    %c7_i32_99 = arith.constant 7 : i32
    %253 = arith.subi %c7_i32_99, %c2_i32_98 : i32
    %cst_100 = arith.constant dense<0.000000e+00> : vector<8x96xf32>
    %254 = tpu.matmul %248, %118, %cst_100 {dimension_numbers = #tpu.dot_dimension_numbers<[1], [0], [0], [1], [0, 0, 1, 1], [], []>} : vector<8x32xf32>, vector<32x96xf32>, vector<8x96xf32> -> vector<8x96xf32>
    %c8_i32_101 = arith.constant 8 : i32
    %255 = arith.muli %c2_i32_98, %c8_i32_101 : i32
    %256 = tpu.assume_multiple %255, 8 : i32
    %c8_i32_102 = arith.constant 8 : i32
    %257 = arith.muli %253, %c8_i32_102 : i32
    %258 = tpu.assume_multiple %257, 8 : i32
    %259 = arith.index_cast %256 : i32 to index
    %c0_103 = arith.constant 0 : index
    %260 = vector.load %arg8[%259, %c0_103] : memref<64x96xf32, #tpu.memory_space<vmem>>, vector<8x48xf32>
    %261 = arith.index_cast %258 : i32 to index
    %c48_104 = arith.constant 48 : index
    %262 = vector.load %arg8[%261, %c48_104] : memref<64x96xf32, #tpu.memory_space<vmem>>, vector<8x48xf32>
    %263 = vector.extract_strided_slice %260 {offsets = [0, 0], sizes = [8, 32], strides = [1, 1]} : vector<8x48xf32> to vector<8x32xf32>
    %264 = vector.extract_strided_slice %254 {offsets = [0, 0], sizes = [8, 32], strides = [1, 1]} : vector<8x96xf32> to vector<8x32xf32>
    %265 = arith.addf %263, %264 : vector<8x32xf32>
    %266 = arith.negf %265 : vector<8x32xf32>
    %267 = math.exp %266 : vector<8x32xf32>
    %cst_105 = arith.constant 1.000000e+00 : f32
    %268 = vector.broadcast %cst_105 : f32 to vector<8x32xf32>
    %269 = arith.addf %268, %267 : vector<8x32xf32>
    %270 = arith.divf %268, %269 : vector<8x32xf32>
    %271 = vector.extract_strided_slice %262 {offsets = [0, 0], sizes = [8, 32], strides = [1, 1]} : vector<8x48xf32> to vector<8x32xf32>
    %272 = vector.extract_strided_slice %254 {offsets = [0, 48], sizes = [8, 32], strides = [1, 1]} : vector<8x96xf32> to vector<8x32xf32>
    %273 = arith.addf %271, %272 : vector<8x32xf32>
    %274 = arith.negf %273 : vector<8x32xf32>
    %275 = math.exp %274 : vector<8x32xf32>
    %cst_106 = arith.constant 1.000000e+00 : f32
    %276 = vector.broadcast %cst_106 : f32 to vector<8x32xf32>
    %277 = arith.addf %276, %275 : vector<8x32xf32>
    %278 = arith.divf %276, %277 : vector<8x32xf32>
    %279 = vector.extract_strided_slice %260 {offsets = [0, 32], sizes = [8, 16], strides = [1, 1]} : vector<8x48xf32> to vector<8x16xf32>
    %280 = vector.extract_strided_slice %270 {offsets = [0, 0], sizes = [8, 16], strides = [1, 1]} : vector<8x32xf32> to vector<8x16xf32>
    %281 = vector.extract_strided_slice %254 {offsets = [0, 32], sizes = [8, 16], strides = [1, 1]} : vector<8x96xf32> to vector<8x16xf32>
    %282 = vector.extract_strided_slice %120 {offsets = [0, 32], sizes = [1, 16], strides = [1, 1]} : vector<1x96xf32> to vector<1x16xf32>
    %283 = vector.broadcast %282 : vector<1x16xf32> to vector<8x16xf32>
    %284 = arith.addf %281, %283 : vector<8x16xf32>
    %285 = arith.mulf %280, %284 : vector<8x16xf32>
    %286 = arith.addf %279, %285 : vector<8x16xf32>
    %287 = math.tanh %286 : vector<8x16xf32>
    %288 = vector.extract_strided_slice %262 {offsets = [0, 32], sizes = [8, 16], strides = [1, 1]} : vector<8x48xf32> to vector<8x16xf32>
    %289 = vector.extract_strided_slice %278 {offsets = [0, 0], sizes = [8, 16], strides = [1, 1]} : vector<8x32xf32> to vector<8x16xf32>
    %290 = vector.extract_strided_slice %254 {offsets = [0, 80], sizes = [8, 16], strides = [1, 1]} : vector<8x96xf32> to vector<8x16xf32>
    %291 = vector.extract_strided_slice %120 {offsets = [0, 80], sizes = [1, 16], strides = [1, 1]} : vector<1x96xf32> to vector<1x16xf32>
    %292 = vector.broadcast %291 : vector<1x16xf32> to vector<8x16xf32>
    %293 = arith.addf %290, %292 : vector<8x16xf32>
    %294 = arith.mulf %289, %293 : vector<8x16xf32>
    %295 = arith.addf %288, %294 : vector<8x16xf32>
    %296 = math.tanh %295 : vector<8x16xf32>
    %297 = vector.extract_strided_slice %270 {offsets = [0, 16], sizes = [8, 16], strides = [1, 1]} : vector<8x32xf32> to vector<8x16xf32>
    %298 = vector.extract_strided_slice %278 {offsets = [0, 16], sizes = [8, 16], strides = [1, 1]} : vector<8x32xf32> to vector<8x16xf32>
    %cst_107 = arith.constant 1.000000e+00 : f32
    %299 = vector.broadcast %cst_107 : f32 to vector<8x16xf32>
    %300 = arith.subf %299, %297 : vector<8x16xf32>
    %301 = arith.mulf %300, %287 : vector<8x16xf32>
    %302 = vector.extract_strided_slice %248 {offsets = [0, 0], sizes = [8, 16], strides = [1, 1]} : vector<8x32xf32> to vector<8x16xf32>
    %303 = arith.mulf %297, %302 : vector<8x16xf32>
    %304 = arith.addf %301, %303 : vector<8x16xf32>
    %cst_108 = arith.constant 1.000000e+00 : f32
    %305 = vector.broadcast %cst_108 : f32 to vector<8x16xf32>
    %306 = arith.subf %305, %298 : vector<8x16xf32>
    %307 = arith.mulf %306, %296 : vector<8x16xf32>
    %308 = vector.extract_strided_slice %248 {offsets = [0, 16], sizes = [8, 16], strides = [1, 1]} : vector<8x32xf32> to vector<8x16xf32>
    %309 = arith.mulf %298, %308 : vector<8x16xf32>
    %310 = arith.addf %307, %309 : vector<8x16xf32>
    %311 = tpu.concatenate %304, %310 in 1 : vector<8x16xf32>, vector<8x16xf32> -> vector<8x32xf32>
    %312 = arith.index_cast %256 : i32 to index
    %c0_109 = arith.constant 0 : index
    %313 = vector.load %arg7[%312, %c0_109] : memref<64x32xf32, #tpu.memory_space<vmem>>, vector<8x16xf32>
    tpu.vector_store %arg7[%312, %c0_109], %304 {strides = array<i32>} : memref<64x32xf32, #tpu.memory_space<vmem>>, vector<8x16xf32>,
    %314 = arith.index_cast %258 : i32 to index
    %c16_110 = arith.constant 16 : index
    %315 = vector.load %arg7[%314, %c16_110] : memref<64x32xf32, #tpu.memory_space<vmem>>, vector<8x16xf32>
    tpu.vector_store %arg7[%314, %c16_110], %310 {strides = array<i32>} : memref<64x32xf32, #tpu.memory_space<vmem>>, vector<8x16xf32>,
    %c3_i32_111 = arith.constant 3 : i32
    %c7_i32_112 = arith.constant 7 : i32
    %316 = arith.subi %c7_i32_112, %c3_i32_111 : i32
    %cst_113 = arith.constant dense<0.000000e+00> : vector<8x96xf32>
    %317 = tpu.matmul %311, %118, %cst_113 {dimension_numbers = #tpu.dot_dimension_numbers<[1], [0], [0], [1], [0, 0, 1, 1], [], []>} : vector<8x32xf32>, vector<32x96xf32>, vector<8x96xf32> -> vector<8x96xf32>
    %c8_i32_114 = arith.constant 8 : i32
    %318 = arith.muli %c3_i32_111, %c8_i32_114 : i32
    %319 = tpu.assume_multiple %318, 8 : i32
    %c8_i32_115 = arith.constant 8 : i32
    %320 = arith.muli %316, %c8_i32_115 : i32
    %321 = tpu.assume_multiple %320, 8 : i32
    %322 = arith.index_cast %319 : i32 to index
    %c0_116 = arith.constant 0 : index
    %323 = vector.load %arg8[%322, %c0_116] : memref<64x96xf32, #tpu.memory_space<vmem>>, vector<8x48xf32>
    %324 = arith.index_cast %321 : i32 to index
    %c48_117 = arith.constant 48 : index
    %325 = vector.load %arg8[%324, %c48_117] : memref<64x96xf32, #tpu.memory_space<vmem>>, vector<8x48xf32>
    %326 = vector.extract_strided_slice %323 {offsets = [0, 0], sizes = [8, 32], strides = [1, 1]} : vector<8x48xf32> to vector<8x32xf32>
    %327 = vector.extract_strided_slice %317 {offsets = [0, 0], sizes = [8, 32], strides = [1, 1]} : vector<8x96xf32> to vector<8x32xf32>
    %328 = arith.addf %326, %327 : vector<8x32xf32>
    %329 = arith.negf %328 : vector<8x32xf32>
    %330 = math.exp %329 : vector<8x32xf32>
    %cst_118 = arith.constant 1.000000e+00 : f32
    %331 = vector.broadcast %cst_118 : f32 to vector<8x32xf32>
    %332 = arith.addf %331, %330 : vector<8x32xf32>
    %333 = arith.divf %331, %332 : vector<8x32xf32>
    %334 = vector.extract_strided_slice %325 {offsets = [0, 0], sizes = [8, 32], strides = [1, 1]} : vector<8x48xf32> to vector<8x32xf32>
    %335 = vector.extract_strided_slice %317 {offsets = [0, 48], sizes = [8, 32], strides = [1, 1]} : vector<8x96xf32> to vector<8x32xf32>
    %336 = arith.addf %334, %335 : vector<8x32xf32>
    %337 = arith.negf %336 : vector<8x32xf32>
    %338 = math.exp %337 : vector<8x32xf32>
    %cst_119 = arith.constant 1.000000e+00 : f32
    %339 = vector.broadcast %cst_119 : f32 to vector<8x32xf32>
    %340 = arith.addf %339, %338 : vector<8x32xf32>
    %341 = arith.divf %339, %340 : vector<8x32xf32>
    %342 = vector.extract_strided_slice %323 {offsets = [0, 32], sizes = [8, 16], strides = [1, 1]} : vector<8x48xf32> to vector<8x16xf32>
    %343 = vector.extract_strided_slice %333 {offsets = [0, 0], sizes = [8, 16], strides = [1, 1]} : vector<8x32xf32> to vector<8x16xf32>
    %344 = vector.extract_strided_slice %317 {offsets = [0, 32], sizes = [8, 16], strides = [1, 1]} : vector<8x96xf32> to vector<8x16xf32>
    %345 = vector.extract_strided_slice %120 {offsets = [0, 32], sizes = [1, 16], strides = [1, 1]} : vector<1x96xf32> to vector<1x16xf32>
    %346 = vector.broadcast %345 : vector<1x16xf32> to vector<8x16xf32>
    %347 = arith.addf %344, %346 : vector<8x16xf32>
    %348 = arith.mulf %343, %347 : vector<8x16xf32>
    %349 = arith.addf %342, %348 : vector<8x16xf32>
    %350 = math.tanh %349 : vector<8x16xf32>
    %351 = vector.extract_strided_slice %325 {offsets = [0, 32], sizes = [8, 16], strides = [1, 1]} : vector<8x48xf32> to vector<8x16xf32>
    %352 = vector.extract_strided_slice %341 {offsets = [0, 0], sizes = [8, 16], strides = [1, 1]} : vector<8x32xf32> to vector<8x16xf32>
    %353 = vector.extract_strided_slice %317 {offsets = [0, 80], sizes = [8, 16], strides = [1, 1]} : vector<8x96xf32> to vector<8x16xf32>
    %354 = vector.extract_strided_slice %120 {offsets = [0, 80], sizes = [1, 16], strides = [1, 1]} : vector<1x96xf32> to vector<1x16xf32>
    %355 = vector.broadcast %354 : vector<1x16xf32> to vector<8x16xf32>
    %356 = arith.addf %353, %355 : vector<8x16xf32>
    %357 = arith.mulf %352, %356 : vector<8x16xf32>
    %358 = arith.addf %351, %357 : vector<8x16xf32>
    %359 = math.tanh %358 : vector<8x16xf32>
    %360 = vector.extract_strided_slice %333 {offsets = [0, 16], sizes = [8, 16], strides = [1, 1]} : vector<8x32xf32> to vector<8x16xf32>
    %361 = vector.extract_strided_slice %341 {offsets = [0, 16], sizes = [8, 16], strides = [1, 1]} : vector<8x32xf32> to vector<8x16xf32>
    %cst_120 = arith.constant 1.000000e+00 : f32
    %362 = vector.broadcast %cst_120 : f32 to vector<8x16xf32>
    %363 = arith.subf %362, %360 : vector<8x16xf32>
    %364 = arith.mulf %363, %350 : vector<8x16xf32>
    %365 = vector.extract_strided_slice %311 {offsets = [0, 0], sizes = [8, 16], strides = [1, 1]} : vector<8x32xf32> to vector<8x16xf32>
    %366 = arith.mulf %360, %365 : vector<8x16xf32>
    %367 = arith.addf %364, %366 : vector<8x16xf32>
    %cst_121 = arith.constant 1.000000e+00 : f32
    %368 = vector.broadcast %cst_121 : f32 to vector<8x16xf32>
    %369 = arith.subf %368, %361 : vector<8x16xf32>
    %370 = arith.mulf %369, %359 : vector<8x16xf32>
    %371 = vector.extract_strided_slice %311 {offsets = [0, 16], sizes = [8, 16], strides = [1, 1]} : vector<8x32xf32> to vector<8x16xf32>
    %372 = arith.mulf %361, %371 : vector<8x16xf32>
    %373 = arith.addf %370, %372 : vector<8x16xf32>
    %374 = tpu.concatenate %367, %373 in 1 : vector<8x16xf32>, vector<8x16xf32> -> vector<8x32xf32>
    %375 = arith.index_cast %319 : i32 to index
    %c0_122 = arith.constant 0 : index
    %376 = vector.load %arg7[%375, %c0_122] : memref<64x32xf32, #tpu.memory_space<vmem>>, vector<8x16xf32>
    tpu.vector_store %arg7[%375, %c0_122], %367 {strides = array<i32>} : memref<64x32xf32, #tpu.memory_space<vmem>>, vector<8x16xf32>,
    %377 = arith.index_cast %321 : i32 to index
    %c16_123 = arith.constant 16 : index
    %378 = vector.load %arg7[%377, %c16_123] : memref<64x32xf32, #tpu.memory_space<vmem>>, vector<8x16xf32>
    tpu.vector_store %arg7[%377, %c16_123], %373 {strides = array<i32>} : memref<64x32xf32, #tpu.memory_space<vmem>>, vector<8x16xf32>,
    %c4_i32_124 = arith.constant 4 : i32
    %c7_i32_125 = arith.constant 7 : i32
    %379 = arith.subi %c7_i32_125, %c4_i32_124 : i32
    %cst_126 = arith.constant dense<0.000000e+00> : vector<8x96xf32>
    %380 = tpu.matmul %374, %118, %cst_126 {dimension_numbers = #tpu.dot_dimension_numbers<[1], [0], [0], [1], [0, 0, 1, 1], [], []>} : vector<8x32xf32>, vector<32x96xf32>, vector<8x96xf32> -> vector<8x96xf32>
    %c8_i32_127 = arith.constant 8 : i32
    %381 = arith.muli %c4_i32_124, %c8_i32_127 : i32
    %382 = tpu.assume_multiple %381, 8 : i32
    %c8_i32_128 = arith.constant 8 : i32
    %383 = arith.muli %379, %c8_i32_128 : i32
    %384 = tpu.assume_multiple %383, 8 : i32
    %385 = arith.index_cast %382 : i32 to index
    %c0_129 = arith.constant 0 : index
    %386 = vector.load %arg8[%385, %c0_129] : memref<64x96xf32, #tpu.memory_space<vmem>>, vector<8x48xf32>
    %387 = arith.index_cast %384 : i32 to index
    %c48_130 = arith.constant 48 : index
    %388 = vector.load %arg8[%387, %c48_130] : memref<64x96xf32, #tpu.memory_space<vmem>>, vector<8x48xf32>
    %389 = vector.extract_strided_slice %386 {offsets = [0, 0], sizes = [8, 32], strides = [1, 1]} : vector<8x48xf32> to vector<8x32xf32>
    %390 = vector.extract_strided_slice %380 {offsets = [0, 0], sizes = [8, 32], strides = [1, 1]} : vector<8x96xf32> to vector<8x32xf32>
    %391 = arith.addf %389, %390 : vector<8x32xf32>
    %392 = arith.negf %391 : vector<8x32xf32>
    %393 = math.exp %392 : vector<8x32xf32>
    %cst_131 = arith.constant 1.000000e+00 : f32
    %394 = vector.broadcast %cst_131 : f32 to vector<8x32xf32>
    %395 = arith.addf %394, %393 : vector<8x32xf32>
    %396 = arith.divf %394, %395 : vector<8x32xf32>
    %397 = vector.extract_strided_slice %388 {offsets = [0, 0], sizes = [8, 32], strides = [1, 1]} : vector<8x48xf32> to vector<8x32xf32>
    %398 = vector.extract_strided_slice %380 {offsets = [0, 48], sizes = [8, 32], strides = [1, 1]} : vector<8x96xf32> to vector<8x32xf32>
    %399 = arith.addf %397, %398 : vector<8x32xf32>
    %400 = arith.negf %399 : vector<8x32xf32>
    %401 = math.exp %400 : vector<8x32xf32>
    %cst_132 = arith.constant 1.000000e+00 : f32
    %402 = vector.broadcast %cst_132 : f32 to vector<8x32xf32>
    %403 = arith.addf %402, %401 : vector<8x32xf32>
    %404 = arith.divf %402, %403 : vector<8x32xf32>
    %405 = vector.extract_strided_slice %386 {offsets = [0, 32], sizes = [8, 16], strides = [1, 1]} : vector<8x48xf32> to vector<8x16xf32>
    %406 = vector.extract_strided_slice %396 {offsets = [0, 0], sizes = [8, 16], strides = [1, 1]} : vector<8x32xf32> to vector<8x16xf32>
    %407 = vector.extract_strided_slice %380 {offsets = [0, 32], sizes = [8, 16], strides = [1, 1]} : vector<8x96xf32> to vector<8x16xf32>
    %408 = vector.extract_strided_slice %120 {offsets = [0, 32], sizes = [1, 16], strides = [1, 1]} : vector<1x96xf32> to vector<1x16xf32>
    %409 = vector.broadcast %408 : vector<1x16xf32> to vector<8x16xf32>
    %410 = arith.addf %407, %409 : vector<8x16xf32>
    %411 = arith.mulf %406, %410 : vector<8x16xf32>
    %412 = arith.addf %405, %411 : vector<8x16xf32>
    %413 = math.tanh %412 : vector<8x16xf32>
    %414 = vector.extract_strided_slice %388 {offsets = [0, 32], sizes = [8, 16], strides = [1, 1]} : vector<8x48xf32> to vector<8x16xf32>
    %415 = vector.extract_strided_slice %404 {offsets = [0, 0], sizes = [8, 16], strides = [1, 1]} : vector<8x32xf32> to vector<8x16xf32>
    %416 = vector.extract_strided_slice %380 {offsets = [0, 80], sizes = [8, 16], strides = [1, 1]} : vector<8x96xf32> to vector<8x16xf32>
    %417 = vector.extract_strided_slice %120 {offsets = [0, 80], sizes = [1, 16], strides = [1, 1]} : vector<1x96xf32> to vector<1x16xf32>
    %418 = vector.broadcast %417 : vector<1x16xf32> to vector<8x16xf32>
    %419 = arith.addf %416, %418 : vector<8x16xf32>
    %420 = arith.mulf %415, %419 : vector<8x16xf32>
    %421 = arith.addf %414, %420 : vector<8x16xf32>
    %422 = math.tanh %421 : vector<8x16xf32>
    %423 = vector.extract_strided_slice %396 {offsets = [0, 16], sizes = [8, 16], strides = [1, 1]} : vector<8x32xf32> to vector<8x16xf32>
    %424 = vector.extract_strided_slice %404 {offsets = [0, 16], sizes = [8, 16], strides = [1, 1]} : vector<8x32xf32> to vector<8x16xf32>
    %cst_133 = arith.constant 1.000000e+00 : f32
    %425 = vector.broadcast %cst_133 : f32 to vector<8x16xf32>
    %426 = arith.subf %425, %423 : vector<8x16xf32>
    %427 = arith.mulf %426, %413 : vector<8x16xf32>
    %428 = vector.extract_strided_slice %374 {offsets = [0, 0], sizes = [8, 16], strides = [1, 1]} : vector<8x32xf32> to vector<8x16xf32>
    %429 = arith.mulf %423, %428 : vector<8x16xf32>
    %430 = arith.addf %427, %429 : vector<8x16xf32>
    %cst_134 = arith.constant 1.000000e+00 : f32
    %431 = vector.broadcast %cst_134 : f32 to vector<8x16xf32>
    %432 = arith.subf %431, %424 : vector<8x16xf32>
    %433 = arith.mulf %432, %422 : vector<8x16xf32>
    %434 = vector.extract_strided_slice %374 {offsets = [0, 16], sizes = [8, 16], strides = [1, 1]} : vector<8x32xf32> to vector<8x16xf32>
    %435 = arith.mulf %424, %434 : vector<8x16xf32>
    %436 = arith.addf %433, %435 : vector<8x16xf32>
    %437 = tpu.concatenate %430, %436 in 1 : vector<8x16xf32>, vector<8x16xf32> -> vector<8x32xf32>
    %438 = arith.index_cast %382 : i32 to index
    %c0_135 = arith.constant 0 : index
    %439 = vector.load %arg7[%438, %c0_135] : memref<64x32xf32, #tpu.memory_space<vmem>>, vector<8x16xf32>
    tpu.vector_store %arg7[%438, %c0_135], %430 {strides = array<i32>} : memref<64x32xf32, #tpu.memory_space<vmem>>, vector<8x16xf32>,
    %440 = arith.index_cast %384 : i32 to index
    %c16_136 = arith.constant 16 : index
    %441 = vector.load %arg7[%440, %c16_136] : memref<64x32xf32, #tpu.memory_space<vmem>>, vector<8x16xf32>
    tpu.vector_store %arg7[%440, %c16_136], %436 {strides = array<i32>} : memref<64x32xf32, #tpu.memory_space<vmem>>, vector<8x16xf32>,
    %c5_i32_137 = arith.constant 5 : i32
    %c7_i32_138 = arith.constant 7 : i32
    %442 = arith.subi %c7_i32_138, %c5_i32_137 : i32
    %cst_139 = arith.constant dense<0.000000e+00> : vector<8x96xf32>
    %443 = tpu.matmul %437, %118, %cst_139 {dimension_numbers = #tpu.dot_dimension_numbers<[1], [0], [0], [1], [0, 0, 1, 1], [], []>} : vector<8x32xf32>, vector<32x96xf32>, vector<8x96xf32> -> vector<8x96xf32>
    %c8_i32_140 = arith.constant 8 : i32
    %444 = arith.muli %c5_i32_137, %c8_i32_140 : i32
    %445 = tpu.assume_multiple %444, 8 : i32
    %c8_i32_141 = arith.constant 8 : i32
    %446 = arith.muli %442, %c8_i32_141 : i32
    %447 = tpu.assume_multiple %446, 8 : i32
    %448 = arith.index_cast %445 : i32 to index
    %c0_142 = arith.constant 0 : index
    %449 = vector.load %arg8[%448, %c0_142] : memref<64x96xf32, #tpu.memory_space<vmem>>, vector<8x48xf32>
    %450 = arith.index_cast %447 : i32 to index
    %c48_143 = arith.constant 48 : index
    %451 = vector.load %arg8[%450, %c48_143] : memref<64x96xf32, #tpu.memory_space<vmem>>, vector<8x48xf32>
    %452 = vector.extract_strided_slice %449 {offsets = [0, 0], sizes = [8, 32], strides = [1, 1]} : vector<8x48xf32> to vector<8x32xf32>
    %453 = vector.extract_strided_slice %443 {offsets = [0, 0], sizes = [8, 32], strides = [1, 1]} : vector<8x96xf32> to vector<8x32xf32>
    %454 = arith.addf %452, %453 : vector<8x32xf32>
    %455 = arith.negf %454 : vector<8x32xf32>
    %456 = math.exp %455 : vector<8x32xf32>
    %cst_144 = arith.constant 1.000000e+00 : f32
    %457 = vector.broadcast %cst_144 : f32 to vector<8x32xf32>
    %458 = arith.addf %457, %456 : vector<8x32xf32>
    %459 = arith.divf %457, %458 : vector<8x32xf32>
    %460 = vector.extract_strided_slice %451 {offsets = [0, 0], sizes = [8, 32], strides = [1, 1]} : vector<8x48xf32> to vector<8x32xf32>
    %461 = vector.extract_strided_slice %443 {offsets = [0, 48], sizes = [8, 32], strides = [1, 1]} : vector<8x96xf32> to vector<8x32xf32>
    %462 = arith.addf %460, %461 : vector<8x32xf32>
    %463 = arith.negf %462 : vector<8x32xf32>
    %464 = math.exp %463 : vector<8x32xf32>
    %cst_145 = arith.constant 1.000000e+00 : f32
    %465 = vector.broadcast %cst_145 : f32 to vector<8x32xf32>
    %466 = arith.addf %465, %464 : vector<8x32xf32>
    %467 = arith.divf %465, %466 : vector<8x32xf32>
    %468 = vector.extract_strided_slice %449 {offsets = [0, 32], sizes = [8, 16], strides = [1, 1]} : vector<8x48xf32> to vector<8x16xf32>
    %469 = vector.extract_strided_slice %459 {offsets = [0, 0], sizes = [8, 16], strides = [1, 1]} : vector<8x32xf32> to vector<8x16xf32>
    %470 = vector.extract_strided_slice %443 {offsets = [0, 32], sizes = [8, 16], strides = [1, 1]} : vector<8x96xf32> to vector<8x16xf32>
    %471 = vector.extract_strided_slice %120 {offsets = [0, 32], sizes = [1, 16], strides = [1, 1]} : vector<1x96xf32> to vector<1x16xf32>
    %472 = vector.broadcast %471 : vector<1x16xf32> to vector<8x16xf32>
    %473 = arith.addf %470, %472 : vector<8x16xf32>
    %474 = arith.mulf %469, %473 : vector<8x16xf32>
    %475 = arith.addf %468, %474 : vector<8x16xf32>
    %476 = math.tanh %475 : vector<8x16xf32>
    %477 = vector.extract_strided_slice %451 {offsets = [0, 32], sizes = [8, 16], strides = [1, 1]} : vector<8x48xf32> to vector<8x16xf32>
    %478 = vector.extract_strided_slice %467 {offsets = [0, 0], sizes = [8, 16], strides = [1, 1]} : vector<8x32xf32> to vector<8x16xf32>
    %479 = vector.extract_strided_slice %443 {offsets = [0, 80], sizes = [8, 16], strides = [1, 1]} : vector<8x96xf32> to vector<8x16xf32>
    %480 = vector.extract_strided_slice %120 {offsets = [0, 80], sizes = [1, 16], strides = [1, 1]} : vector<1x96xf32> to vector<1x16xf32>
    %481 = vector.broadcast %480 : vector<1x16xf32> to vector<8x16xf32>
    %482 = arith.addf %479, %481 : vector<8x16xf32>
    %483 = arith.mulf %478, %482 : vector<8x16xf32>
    %484 = arith.addf %477, %483 : vector<8x16xf32>
    %485 = math.tanh %484 : vector<8x16xf32>
    %486 = vector.extract_strided_slice %459 {offsets = [0, 16], sizes = [8, 16], strides = [1, 1]} : vector<8x32xf32> to vector<8x16xf32>
    %487 = vector.extract_strided_slice %467 {offsets = [0, 16], sizes = [8, 16], strides = [1, 1]} : vector<8x32xf32> to vector<8x16xf32>
    %cst_146 = arith.constant 1.000000e+00 : f32
    %488 = vector.broadcast %cst_146 : f32 to vector<8x16xf32>
    %489 = arith.subf %488, %486 : vector<8x16xf32>
    %490 = arith.mulf %489, %476 : vector<8x16xf32>
    %491 = vector.extract_strided_slice %437 {offsets = [0, 0], sizes = [8, 16], strides = [1, 1]} : vector<8x32xf32> to vector<8x16xf32>
    %492 = arith.mulf %486, %491 : vector<8x16xf32>
    %493 = arith.addf %490, %492 : vector<8x16xf32>
    %cst_147 = arith.constant 1.000000e+00 : f32
    %494 = vector.broadcast %cst_147 : f32 to vector<8x16xf32>
    %495 = arith.subf %494, %487 : vector<8x16xf32>
    %496 = arith.mulf %495, %485 : vector<8x16xf32>
    %497 = vector.extract_strided_slice %437 {offsets = [0, 16], sizes = [8, 16], strides = [1, 1]} : vector<8x32xf32> to vector<8x16xf32>
    %498 = arith.mulf %487, %497 : vector<8x16xf32>
    %499 = arith.addf %496, %498 : vector<8x16xf32>
    %500 = tpu.concatenate %493, %499 in 1 : vector<8x16xf32>, vector<8x16xf32> -> vector<8x32xf32>
    %501 = arith.index_cast %445 : i32 to index
    %c0_148 = arith.constant 0 : index
    %502 = vector.load %arg7[%501, %c0_148] : memref<64x32xf32, #tpu.memory_space<vmem>>, vector<8x16xf32>
    tpu.vector_store %arg7[%501, %c0_148], %493 {strides = array<i32>} : memref<64x32xf32, #tpu.memory_space<vmem>>, vector<8x16xf32>,
    %503 = arith.index_cast %447 : i32 to index
    %c16_149 = arith.constant 16 : index
    %504 = vector.load %arg7[%503, %c16_149] : memref<64x32xf32, #tpu.memory_space<vmem>>, vector<8x16xf32>
    tpu.vector_store %arg7[%503, %c16_149], %499 {strides = array<i32>} : memref<64x32xf32, #tpu.memory_space<vmem>>, vector<8x16xf32>,
    %c6_i32_150 = arith.constant 6 : i32
    %c7_i32_151 = arith.constant 7 : i32
    %505 = arith.subi %c7_i32_151, %c6_i32_150 : i32
    %cst_152 = arith.constant dense<0.000000e+00> : vector<8x96xf32>
    %506 = tpu.matmul %500, %118, %cst_152 {dimension_numbers = #tpu.dot_dimension_numbers<[1], [0], [0], [1], [0, 0, 1, 1], [], []>} : vector<8x32xf32>, vector<32x96xf32>, vector<8x96xf32> -> vector<8x96xf32>
    %c8_i32_153 = arith.constant 8 : i32
    %507 = arith.muli %c6_i32_150, %c8_i32_153 : i32
    %508 = tpu.assume_multiple %507, 8 : i32
    %c8_i32_154 = arith.constant 8 : i32
    %509 = arith.muli %505, %c8_i32_154 : i32
    %510 = tpu.assume_multiple %509, 8 : i32
    %511 = arith.index_cast %508 : i32 to index
    %c0_155 = arith.constant 0 : index
    %512 = vector.load %arg8[%511, %c0_155] : memref<64x96xf32, #tpu.memory_space<vmem>>, vector<8x48xf32>
    %513 = arith.index_cast %510 : i32 to index
    %c48_156 = arith.constant 48 : index
    %514 = vector.load %arg8[%513, %c48_156] : memref<64x96xf32, #tpu.memory_space<vmem>>, vector<8x48xf32>
    %515 = vector.extract_strided_slice %512 {offsets = [0, 0], sizes = [8, 32], strides = [1, 1]} : vector<8x48xf32> to vector<8x32xf32>
    %516 = vector.extract_strided_slice %506 {offsets = [0, 0], sizes = [8, 32], strides = [1, 1]} : vector<8x96xf32> to vector<8x32xf32>
    %517 = arith.addf %515, %516 : vector<8x32xf32>
    %518 = arith.negf %517 : vector<8x32xf32>
    %519 = math.exp %518 : vector<8x32xf32>
    %cst_157 = arith.constant 1.000000e+00 : f32
    %520 = vector.broadcast %cst_157 : f32 to vector<8x32xf32>
    %521 = arith.addf %520, %519 : vector<8x32xf32>
    %522 = arith.divf %520, %521 : vector<8x32xf32>
    %523 = vector.extract_strided_slice %514 {offsets = [0, 0], sizes = [8, 32], strides = [1, 1]} : vector<8x48xf32> to vector<8x32xf32>
    %524 = vector.extract_strided_slice %506 {offsets = [0, 48], sizes = [8, 32], strides = [1, 1]} : vector<8x96xf32> to vector<8x32xf32>
    %525 = arith.addf %523, %524 : vector<8x32xf32>
    %526 = arith.negf %525 : vector<8x32xf32>
    %527 = math.exp %526 : vector<8x32xf32>
    %cst_158 = arith.constant 1.000000e+00 : f32
    %528 = vector.broadcast %cst_158 : f32 to vector<8x32xf32>
    %529 = arith.addf %528, %527 : vector<8x32xf32>
    %530 = arith.divf %528, %529 : vector<8x32xf32>
    %531 = vector.extract_strided_slice %512 {offsets = [0, 32], sizes = [8, 16], strides = [1, 1]} : vector<8x48xf32> to vector<8x16xf32>
    %532 = vector.extract_strided_slice %522 {offsets = [0, 0], sizes = [8, 16], strides = [1, 1]} : vector<8x32xf32> to vector<8x16xf32>
    %533 = vector.extract_strided_slice %506 {offsets = [0, 32], sizes = [8, 16], strides = [1, 1]} : vector<8x96xf32> to vector<8x16xf32>
    %534 = vector.extract_strided_slice %120 {offsets = [0, 32], sizes = [1, 16], strides = [1, 1]} : vector<1x96xf32> to vector<1x16xf32>
    %535 = vector.broadcast %534 : vector<1x16xf32> to vector<8x16xf32>
    %536 = arith.addf %533, %535 : vector<8x16xf32>
    %537 = arith.mulf %532, %536 : vector<8x16xf32>
    %538 = arith.addf %531, %537 : vector<8x16xf32>
    %539 = math.tanh %538 : vector<8x16xf32>
    %540 = vector.extract_strided_slice %514 {offsets = [0, 32], sizes = [8, 16], strides = [1, 1]} : vector<8x48xf32> to vector<8x16xf32>
    %541 = vector.extract_strided_slice %530 {offsets = [0, 0], sizes = [8, 16], strides = [1, 1]} : vector<8x32xf32> to vector<8x16xf32>
    %542 = vector.extract_strided_slice %506 {offsets = [0, 80], sizes = [8, 16], strides = [1, 1]} : vector<8x96xf32> to vector<8x16xf32>
    %543 = vector.extract_strided_slice %120 {offsets = [0, 80], sizes = [1, 16], strides = [1, 1]} : vector<1x96xf32> to vector<1x16xf32>
    %544 = vector.broadcast %543 : vector<1x16xf32> to vector<8x16xf32>
    %545 = arith.addf %542, %544 : vector<8x16xf32>
    %546 = arith.mulf %541, %545 : vector<8x16xf32>
    %547 = arith.addf %540, %546 : vector<8x16xf32>
    %548 = math.tanh %547 : vector<8x16xf32>
    %549 = vector.extract_strided_slice %522 {offsets = [0, 16], sizes = [8, 16], strides = [1, 1]} : vector<8x32xf32> to vector<8x16xf32>
    %550 = vector.extract_strided_slice %530 {offsets = [0, 16], sizes = [8, 16], strides = [1, 1]} : vector<8x32xf32> to vector<8x16xf32>
    %cst_159 = arith.constant 1.000000e+00 : f32
    %551 = vector.broadcast %cst_159 : f32 to vector<8x16xf32>
    %552 = arith.subf %551, %549 : vector<8x16xf32>
    %553 = arith.mulf %552, %539 : vector<8x16xf32>
    %554 = vector.extract_strided_slice %500 {offsets = [0, 0], sizes = [8, 16], strides = [1, 1]} : vector<8x32xf32> to vector<8x16xf32>
    %555 = arith.mulf %549, %554 : vector<8x16xf32>
    %556 = arith.addf %553, %555 : vector<8x16xf32>
    %cst_160 = arith.constant 1.000000e+00 : f32
    %557 = vector.broadcast %cst_160 : f32 to vector<8x16xf32>
    %558 = arith.subf %557, %550 : vector<8x16xf32>
    %559 = arith.mulf %558, %548 : vector<8x16xf32>
    %560 = vector.extract_strided_slice %500 {offsets = [0, 16], sizes = [8, 16], strides = [1, 1]} : vector<8x32xf32> to vector<8x16xf32>
    %561 = arith.mulf %550, %560 : vector<8x16xf32>
    %562 = arith.addf %559, %561 : vector<8x16xf32>
    %563 = tpu.concatenate %556, %562 in 1 : vector<8x16xf32>, vector<8x16xf32> -> vector<8x32xf32>
    %564 = arith.index_cast %508 : i32 to index
    %c0_161 = arith.constant 0 : index
    %565 = vector.load %arg7[%564, %c0_161] : memref<64x32xf32, #tpu.memory_space<vmem>>, vector<8x16xf32>
    tpu.vector_store %arg7[%564, %c0_161], %556 {strides = array<i32>} : memref<64x32xf32, #tpu.memory_space<vmem>>, vector<8x16xf32>,
    %566 = arith.index_cast %510 : i32 to index
    %c16_162 = arith.constant 16 : index
    %567 = vector.load %arg7[%566, %c16_162] : memref<64x32xf32, #tpu.memory_space<vmem>>, vector<8x16xf32>
    tpu.vector_store %arg7[%566, %c16_162], %562 {strides = array<i32>} : memref<64x32xf32, #tpu.memory_space<vmem>>, vector<8x16xf32>,
    %c7_i32_163 = arith.constant 7 : i32
    %c7_i32_164 = arith.constant 7 : i32
    %568 = arith.subi %c7_i32_164, %c7_i32_163 : i32
    %cst_165 = arith.constant dense<0.000000e+00> : vector<8x96xf32>
    %569 = tpu.matmul %563, %118, %cst_165 {dimension_numbers = #tpu.dot_dimension_numbers<[1], [0], [0], [1], [0, 0, 1, 1], [], []>} : vector<8x32xf32>, vector<32x96xf32>, vector<8x96xf32> -> vector<8x96xf32>
    %c8_i32_166 = arith.constant 8 : i32
    %570 = arith.muli %c7_i32_163, %c8_i32_166 : i32
    %571 = tpu.assume_multiple %570, 8 : i32
    %c8_i32_167 = arith.constant 8 : i32
    %572 = arith.muli %568, %c8_i32_167 : i32
    %573 = tpu.assume_multiple %572, 8 : i32
    %574 = arith.index_cast %571 : i32 to index
    %c0_168 = arith.constant 0 : index
    %575 = vector.load %arg8[%574, %c0_168] : memref<64x96xf32, #tpu.memory_space<vmem>>, vector<8x48xf32>
    %576 = arith.index_cast %573 : i32 to index
    %c48_169 = arith.constant 48 : index
    %577 = vector.load %arg8[%576, %c48_169] : memref<64x96xf32, #tpu.memory_space<vmem>>, vector<8x48xf32>
    %578 = vector.extract_strided_slice %575 {offsets = [0, 0], sizes = [8, 32], strides = [1, 1]} : vector<8x48xf32> to vector<8x32xf32>
    %579 = vector.extract_strided_slice %569 {offsets = [0, 0], sizes = [8, 32], strides = [1, 1]} : vector<8x96xf32> to vector<8x32xf32>
    %580 = arith.addf %578, %579 : vector<8x32xf32>
    %581 = arith.negf %580 : vector<8x32xf32>
    %582 = math.exp %581 : vector<8x32xf32>
    %cst_170 = arith.constant 1.000000e+00 : f32
    %583 = vector.broadcast %cst_170 : f32 to vector<8x32xf32>
    %584 = arith.addf %583, %582 : vector<8x32xf32>
    %585 = arith.divf %583, %584 : vector<8x32xf32>
    %586 = vector.extract_strided_slice %577 {offsets = [0, 0], sizes = [8, 32], strides = [1, 1]} : vector<8x48xf32> to vector<8x32xf32>
    %587 = vector.extract_strided_slice %569 {offsets = [0, 48], sizes = [8, 32], strides = [1, 1]} : vector<8x96xf32> to vector<8x32xf32>
    %588 = arith.addf %586, %587 : vector<8x32xf32>
    %589 = arith.negf %588 : vector<8x32xf32>
    %590 = math.exp %589 : vector<8x32xf32>
    %cst_171 = arith.constant 1.000000e+00 : f32
    %591 = vector.broadcast %cst_171 : f32 to vector<8x32xf32>
    %592 = arith.addf %591, %590 : vector<8x32xf32>
    %593 = arith.divf %591, %592 : vector<8x32xf32>
    %594 = vector.extract_strided_slice %575 {offsets = [0, 32], sizes = [8, 16], strides = [1, 1]} : vector<8x48xf32> to vector<8x16xf32>
    %595 = vector.extract_strided_slice %585 {offsets = [0, 0], sizes = [8, 16], strides = [1, 1]} : vector<8x32xf32> to vector<8x16xf32>
    %596 = vector.extract_strided_slice %569 {offsets = [0, 32], sizes = [8, 16], strides = [1, 1]} : vector<8x96xf32> to vector<8x16xf32>
    %597 = vector.extract_strided_slice %120 {offsets = [0, 32], sizes = [1, 16], strides = [1, 1]} : vector<1x96xf32> to vector<1x16xf32>
    %598 = vector.broadcast %597 : vector<1x16xf32> to vector<8x16xf32>
    %599 = arith.addf %596, %598 : vector<8x16xf32>
    %600 = arith.mulf %595, %599 : vector<8x16xf32>
    %601 = arith.addf %594, %600 : vector<8x16xf32>
    %602 = math.tanh %601 : vector<8x16xf32>
    %603 = vector.extract_strided_slice %577 {offsets = [0, 32], sizes = [8, 16], strides = [1, 1]} : vector<8x48xf32> to vector<8x16xf32>
    %604 = vector.extract_strided_slice %593 {offsets = [0, 0], sizes = [8, 16], strides = [1, 1]} : vector<8x32xf32> to vector<8x16xf32>
    %605 = vector.extract_strided_slice %569 {offsets = [0, 80], sizes = [8, 16], strides = [1, 1]} : vector<8x96xf32> to vector<8x16xf32>
    %606 = vector.extract_strided_slice %120 {offsets = [0, 80], sizes = [1, 16], strides = [1, 1]} : vector<1x96xf32> to vector<1x16xf32>
    %607 = vector.broadcast %606 : vector<1x16xf32> to vector<8x16xf32>
    %608 = arith.addf %605, %607 : vector<8x16xf32>
    %609 = arith.mulf %604, %608 : vector<8x16xf32>
    %610 = arith.addf %603, %609 : vector<8x16xf32>
    %611 = math.tanh %610 : vector<8x16xf32>
    %612 = vector.extract_strided_slice %585 {offsets = [0, 16], sizes = [8, 16], strides = [1, 1]} : vector<8x32xf32> to vector<8x16xf32>
    %613 = vector.extract_strided_slice %593 {offsets = [0, 16], sizes = [8, 16], strides = [1, 1]} : vector<8x32xf32> to vector<8x16xf32>
    %cst_172 = arith.constant 1.000000e+00 : f32
    %614 = vector.broadcast %cst_172 : f32 to vector<8x16xf32>
    %615 = arith.subf %614, %612 : vector<8x16xf32>
    %616 = arith.mulf %615, %602 : vector<8x16xf32>
    %617 = vector.extract_strided_slice %563 {offsets = [0, 0], sizes = [8, 16], strides = [1, 1]} : vector<8x32xf32> to vector<8x16xf32>
    %618 = arith.mulf %612, %617 : vector<8x16xf32>
    %619 = arith.addf %616, %618 : vector<8x16xf32>
    %cst_173 = arith.constant 1.000000e+00 : f32
    %620 = vector.broadcast %cst_173 : f32 to vector<8x16xf32>
    %621 = arith.subf %620, %613 : vector<8x16xf32>
    %622 = arith.mulf %621, %611 : vector<8x16xf32>
    %623 = vector.extract_strided_slice %563 {offsets = [0, 16], sizes = [8, 16], strides = [1, 1]} : vector<8x32xf32> to vector<8x16xf32>
    %624 = arith.mulf %613, %623 : vector<8x16xf32>
    %625 = arith.addf %622, %624 : vector<8x16xf32>
    %626 = tpu.concatenate %619, %625 in 1 : vector<8x16xf32>, vector<8x16xf32> -> vector<8x32xf32>
    %627 = arith.index_cast %571 : i32 to index
    %c0_174 = arith.constant 0 : index
    %628 = vector.load %arg7[%627, %c0_174] : memref<64x32xf32, #tpu.memory_space<vmem>>, vector<8x16xf32>
    tpu.vector_store %arg7[%627, %c0_174], %619 {strides = array<i32>} : memref<64x32xf32, #tpu.memory_space<vmem>>, vector<8x16xf32>,
    %629 = arith.index_cast %573 : i32 to index
    %c16_175 = arith.constant 16 : index
    %630 = vector.load %arg7[%629, %c16_175] : memref<64x32xf32, #tpu.memory_space<vmem>>, vector<8x16xf32>
    tpu.vector_store %arg7[%629, %c16_175], %625 {strides = array<i32>} : memref<64x32xf32, #tpu.memory_space<vmem>>, vector<8x16xf32>,
    %c8_i32_176 = arith.constant 8 : i32
    %c0_177 = arith.constant 0 : index
    %c0_178 = arith.constant 0 : index
    %631 = vector.load %arg4[%c0_177, %c0_178] : memref<66x96xf32, #tpu.memory_space<vmem>>, vector<32x96xf32>
    %c32_179 = arith.constant 32 : index
    %c0_180 = arith.constant 0 : index
    %632 = vector.load %arg4[%c32_179, %c0_180] : memref<66x96xf32, #tpu.memory_space<vmem>>, vector<32x96xf32>
    %c64_181 = arith.constant 64 : index
    %c0_182 = arith.constant 0 : index
    %633 = vector.load %arg4[%c64_181, %c0_182] : memref<66x96xf32, #tpu.memory_space<vmem>>, vector<1x96xf32>
    %c65_183 = arith.constant 65 : index
    %c0_184 = arith.constant 0 : index
    %634 = vector.load %arg4[%c65_183, %c0_184] : memref<66x96xf32, #tpu.memory_space<vmem>>, vector<1x96xf32>
    %c0_185 = arith.constant 0 : index
    %c0_186 = arith.constant 0 : index
    %635 = vector.load %arg7[%c0_185, %c0_186] : memref<64x32xf32, #tpu.memory_space<vmem>>, vector<64x32xf32>
    %cst_187 = arith.constant dense<0.000000e+00> : vector<64x96xf32>
    %636 = tpu.matmul %635, %631, %cst_187 {dimension_numbers = #tpu.dot_dimension_numbers<[1], [0], [0], [1], [0, 0, 1, 1], [], []>} : vector<64x32xf32>, vector<32x96xf32>, vector<64x96xf32> -> vector<64x96xf32>
    %637 = vector.broadcast %633 : vector<1x96xf32> to vector<64x96xf32>
    %638 = arith.addf %636, %637 : vector<64x96xf32>
    %c0_188 = arith.constant 0 : index
    %c0_189 = arith.constant 0 : index
    %639 = vector.load %arg8[%c0_188, %c0_189] : memref<64x96xf32, #tpu.memory_space<vmem>>, vector<64x96xf32>
    tpu.vector_store %arg8[%c0_188, %c0_189], %638 {strides = array<i32>} : memref<64x96xf32, #tpu.memory_space<vmem>>, vector<64x96xf32>,
    %cst_190 = arith.constant 0.000000e+00 : f32
    %640 = vector.broadcast %cst_190 : f32 to vector<8x32xf32>
    %c0_i32_191 = arith.constant 0 : i32
    %c7_i32_192 = arith.constant 7 : i32
    %641 = arith.subi %c7_i32_192, %c0_i32_191 : i32
    %cst_193 = arith.constant dense<0.000000e+00> : vector<8x96xf32>
    %642 = tpu.matmul %640, %632, %cst_193 {dimension_numbers = #tpu.dot_dimension_numbers<[1], [0], [0], [1], [0, 0, 1, 1], [], []>} : vector<8x32xf32>, vector<32x96xf32>, vector<8x96xf32> -> vector<8x96xf32>
    %c8_i32_194 = arith.constant 8 : i32
    %643 = arith.muli %c0_i32_191, %c8_i32_194 : i32
    %644 = tpu.assume_multiple %643, 8 : i32
    %c8_i32_195 = arith.constant 8 : i32
    %645 = arith.muli %641, %c8_i32_195 : i32
    %646 = tpu.assume_multiple %645, 8 : i32
    %647 = arith.index_cast %644 : i32 to index
    %c0_196 = arith.constant 0 : index
    %648 = vector.load %arg8[%647, %c0_196] : memref<64x96xf32, #tpu.memory_space<vmem>>, vector<8x48xf32>
    %649 = arith.index_cast %646 : i32 to index
    %c48_197 = arith.constant 48 : index
    %650 = vector.load %arg8[%649, %c48_197] : memref<64x96xf32, #tpu.memory_space<vmem>>, vector<8x48xf32>
    %651 = vector.extract_strided_slice %648 {offsets = [0, 0], sizes = [8, 32], strides = [1, 1]} : vector<8x48xf32> to vector<8x32xf32>
    %652 = vector.extract_strided_slice %642 {offsets = [0, 0], sizes = [8, 32], strides = [1, 1]} : vector<8x96xf32> to vector<8x32xf32>
    %653 = arith.addf %651, %652 : vector<8x32xf32>
    %654 = arith.negf %653 : vector<8x32xf32>
    %655 = math.exp %654 : vector<8x32xf32>
    %cst_198 = arith.constant 1.000000e+00 : f32
    %656 = vector.broadcast %cst_198 : f32 to vector<8x32xf32>
    %657 = arith.addf %656, %655 : vector<8x32xf32>
    %658 = arith.divf %656, %657 : vector<8x32xf32>
    %659 = vector.extract_strided_slice %650 {offsets = [0, 0], sizes = [8, 32], strides = [1, 1]} : vector<8x48xf32> to vector<8x32xf32>
    %660 = vector.extract_strided_slice %642 {offsets = [0, 48], sizes = [8, 32], strides = [1, 1]} : vector<8x96xf32> to vector<8x32xf32>
    %661 = arith.addf %659, %660 : vector<8x32xf32>
    %662 = arith.negf %661 : vector<8x32xf32>
    %663 = math.exp %662 : vector<8x32xf32>
    %cst_199 = arith.constant 1.000000e+00 : f32
    %664 = vector.broadcast %cst_199 : f32 to vector<8x32xf32>
    %665 = arith.addf %664, %663 : vector<8x32xf32>
    %666 = arith.divf %664, %665 : vector<8x32xf32>
    %667 = vector.extract_strided_slice %648 {offsets = [0, 32], sizes = [8, 16], strides = [1, 1]} : vector<8x48xf32> to vector<8x16xf32>
    %668 = vector.extract_strided_slice %658 {offsets = [0, 0], sizes = [8, 16], strides = [1, 1]} : vector<8x32xf32> to vector<8x16xf32>
    %669 = vector.extract_strided_slice %642 {offsets = [0, 32], sizes = [8, 16], strides = [1, 1]} : vector<8x96xf32> to vector<8x16xf32>
    %670 = vector.extract_strided_slice %634 {offsets = [0, 32], sizes = [1, 16], strides = [1, 1]} : vector<1x96xf32> to vector<1x16xf32>
    %671 = vector.broadcast %670 : vector<1x16xf32> to vector<8x16xf32>
    %672 = arith.addf %669, %671 : vector<8x16xf32>
    %673 = arith.mulf %668, %672 : vector<8x16xf32>
    %674 = arith.addf %667, %673 : vector<8x16xf32>
    %675 = math.tanh %674 : vector<8x16xf32>
    %676 = vector.extract_strided_slice %650 {offsets = [0, 32], sizes = [8, 16], strides = [1, 1]} : vector<8x48xf32> to vector<8x16xf32>
    %677 = vector.extract_strided_slice %666 {offsets = [0, 0], sizes = [8, 16], strides = [1, 1]} : vector<8x32xf32> to vector<8x16xf32>
    %678 = vector.extract_strided_slice %642 {offsets = [0, 80], sizes = [8, 16], strides = [1, 1]} : vector<8x96xf32> to vector<8x16xf32>
    %679 = vector.extract_strided_slice %634 {offsets = [0, 80], sizes = [1, 16], strides = [1, 1]} : vector<1x96xf32> to vector<1x16xf32>
    %680 = vector.broadcast %679 : vector<1x16xf32> to vector<8x16xf32>
    %681 = arith.addf %678, %680 : vector<8x16xf32>
    %682 = arith.mulf %677, %681 : vector<8x16xf32>
    %683 = arith.addf %676, %682 : vector<8x16xf32>
    %684 = math.tanh %683 : vector<8x16xf32>
    %685 = vector.extract_strided_slice %658 {offsets = [0, 16], sizes = [8, 16], strides = [1, 1]} : vector<8x32xf32> to vector<8x16xf32>
    %686 = vector.extract_strided_slice %666 {offsets = [0, 16], sizes = [8, 16], strides = [1, 1]} : vector<8x32xf32> to vector<8x16xf32>
    %cst_200 = arith.constant 1.000000e+00 : f32
    %687 = vector.broadcast %cst_200 : f32 to vector<8x16xf32>
    %688 = arith.subf %687, %685 : vector<8x16xf32>
    %689 = arith.mulf %688, %675 : vector<8x16xf32>
    %690 = vector.extract_strided_slice %640 {offsets = [0, 0], sizes = [8, 16], strides = [1, 1]} : vector<8x32xf32> to vector<8x16xf32>
    %691 = arith.mulf %685, %690 : vector<8x16xf32>
    %692 = arith.addf %689, %691 : vector<8x16xf32>
    %cst_201 = arith.constant 1.000000e+00 : f32
    %693 = vector.broadcast %cst_201 : f32 to vector<8x16xf32>
    %694 = arith.subf %693, %686 : vector<8x16xf32>
    %695 = arith.mulf %694, %684 : vector<8x16xf32>
    %696 = vector.extract_strided_slice %640 {offsets = [0, 16], sizes = [8, 16], strides = [1, 1]} : vector<8x32xf32> to vector<8x16xf32>
    %697 = arith.mulf %686, %696 : vector<8x16xf32>
    %698 = arith.addf %695, %697 : vector<8x16xf32>
    %699 = tpu.concatenate %692, %698 in 1 : vector<8x16xf32>, vector<8x16xf32> -> vector<8x32xf32>
    %700 = arith.addf %116, %699 : vector<8x32xf32>
    %c1_i32_202 = arith.constant 1 : i32
    %c7_i32_203 = arith.constant 7 : i32
    %701 = arith.subi %c7_i32_203, %c1_i32_202 : i32
    %cst_204 = arith.constant dense<0.000000e+00> : vector<8x96xf32>
    %702 = tpu.matmul %699, %632, %cst_204 {dimension_numbers = #tpu.dot_dimension_numbers<[1], [0], [0], [1], [0, 0, 1, 1], [], []>} : vector<8x32xf32>, vector<32x96xf32>, vector<8x96xf32> -> vector<8x96xf32>
    %c8_i32_205 = arith.constant 8 : i32
    %703 = arith.muli %c1_i32_202, %c8_i32_205 : i32
    %704 = tpu.assume_multiple %703, 8 : i32
    %c8_i32_206 = arith.constant 8 : i32
    %705 = arith.muli %701, %c8_i32_206 : i32
    %706 = tpu.assume_multiple %705, 8 : i32
    %707 = arith.index_cast %704 : i32 to index
    %c0_207 = arith.constant 0 : index
    %708 = vector.load %arg8[%707, %c0_207] : memref<64x96xf32, #tpu.memory_space<vmem>>, vector<8x48xf32>
    %709 = arith.index_cast %706 : i32 to index
    %c48_208 = arith.constant 48 : index
    %710 = vector.load %arg8[%709, %c48_208] : memref<64x96xf32, #tpu.memory_space<vmem>>, vector<8x48xf32>
    %711 = vector.extract_strided_slice %708 {offsets = [0, 0], sizes = [8, 32], strides = [1, 1]} : vector<8x48xf32> to vector<8x32xf32>
    %712 = vector.extract_strided_slice %702 {offsets = [0, 0], sizes = [8, 32], strides = [1, 1]} : vector<8x96xf32> to vector<8x32xf32>
    %713 = arith.addf %711, %712 : vector<8x32xf32>
    %714 = arith.negf %713 : vector<8x32xf32>
    %715 = math.exp %714 : vector<8x32xf32>
    %cst_209 = arith.constant 1.000000e+00 : f32
    %716 = vector.broadcast %cst_209 : f32 to vector<8x32xf32>
    %717 = arith.addf %716, %715 : vector<8x32xf32>
    %718 = arith.divf %716, %717 : vector<8x32xf32>
    %719 = vector.extract_strided_slice %710 {offsets = [0, 0], sizes = [8, 32], strides = [1, 1]} : vector<8x48xf32> to vector<8x32xf32>
    %720 = vector.extract_strided_slice %702 {offsets = [0, 48], sizes = [8, 32], strides = [1, 1]} : vector<8x96xf32> to vector<8x32xf32>
    %721 = arith.addf %719, %720 : vector<8x32xf32>
    %722 = arith.negf %721 : vector<8x32xf32>
    %723 = math.exp %722 : vector<8x32xf32>
    %cst_210 = arith.constant 1.000000e+00 : f32
    %724 = vector.broadcast %cst_210 : f32 to vector<8x32xf32>
    %725 = arith.addf %724, %723 : vector<8x32xf32>
    %726 = arith.divf %724, %725 : vector<8x32xf32>
    %727 = vector.extract_strided_slice %708 {offsets = [0, 32], sizes = [8, 16], strides = [1, 1]} : vector<8x48xf32> to vector<8x16xf32>
    %728 = vector.extract_strided_slice %718 {offsets = [0, 0], sizes = [8, 16], strides = [1, 1]} : vector<8x32xf32> to vector<8x16xf32>
    %729 = vector.extract_strided_slice %702 {offsets = [0, 32], sizes = [8, 16], strides = [1, 1]} : vector<8x96xf32> to vector<8x16xf32>
    %730 = vector.extract_strided_slice %634 {offsets = [0, 32], sizes = [1, 16], strides = [1, 1]} : vector<1x96xf32> to vector<1x16xf32>
    %731 = vector.broadcast %730 : vector<1x16xf32> to vector<8x16xf32>
    %732 = arith.addf %729, %731 : vector<8x16xf32>
    %733 = arith.mulf %728, %732 : vector<8x16xf32>
    %734 = arith.addf %727, %733 : vector<8x16xf32>
    %735 = math.tanh %734 : vector<8x16xf32>
    %736 = vector.extract_strided_slice %710 {offsets = [0, 32], sizes = [8, 16], strides = [1, 1]} : vector<8x48xf32> to vector<8x16xf32>
    %737 = vector.extract_strided_slice %726 {offsets = [0, 0], sizes = [8, 16], strides = [1, 1]} : vector<8x32xf32> to vector<8x16xf32>
    %738 = vector.extract_strided_slice %702 {offsets = [0, 80], sizes = [8, 16], strides = [1, 1]} : vector<8x96xf32> to vector<8x16xf32>
    %739 = vector.extract_strided_slice %634 {offsets = [0, 80], sizes = [1, 16], strides = [1, 1]} : vector<1x96xf32> to vector<1x16xf32>
    %740 = vector.broadcast %739 : vector<1x16xf32> to vector<8x16xf32>
    %741 = arith.addf %738, %740 : vector<8x16xf32>
    %742 = arith.mulf %737, %741 : vector<8x16xf32>
    %743 = arith.addf %736, %742 : vector<8x16xf32>
    %744 = math.tanh %743 : vector<8x16xf32>
    %745 = vector.extract_strided_slice %718 {offsets = [0, 16], sizes = [8, 16], strides = [1, 1]} : vector<8x32xf32> to vector<8x16xf32>
    %746 = vector.extract_strided_slice %726 {offsets = [0, 16], sizes = [8, 16], strides = [1, 1]} : vector<8x32xf32> to vector<8x16xf32>
    %cst_211 = arith.constant 1.000000e+00 : f32
    %747 = vector.broadcast %cst_211 : f32 to vector<8x16xf32>
    %748 = arith.subf %747, %745 : vector<8x16xf32>
    %749 = arith.mulf %748, %735 : vector<8x16xf32>
    %750 = vector.extract_strided_slice %699 {offsets = [0, 0], sizes = [8, 16], strides = [1, 1]} : vector<8x32xf32> to vector<8x16xf32>
    %751 = arith.mulf %745, %750 : vector<8x16xf32>
    %752 = arith.addf %749, %751 : vector<8x16xf32>
    %cst_212 = arith.constant 1.000000e+00 : f32
    %753 = vector.broadcast %cst_212 : f32 to vector<8x16xf32>
    %754 = arith.subf %753, %746 : vector<8x16xf32>
    %755 = arith.mulf %754, %744 : vector<8x16xf32>
    %756 = vector.extract_strided_slice %699 {offsets = [0, 16], sizes = [8, 16], strides = [1, 1]} : vector<8x32xf32> to vector<8x16xf32>
    %757 = arith.mulf %746, %756 : vector<8x16xf32>
    %758 = arith.addf %755, %757 : vector<8x16xf32>
    %759 = tpu.concatenate %752, %758 in 1 : vector<8x16xf32>, vector<8x16xf32> -> vector<8x32xf32>
    %760 = arith.addf %700, %759 : vector<8x32xf32>
    %c2_i32_213 = arith.constant 2 : i32
    %c7_i32_214 = arith.constant 7 : i32
    %761 = arith.subi %c7_i32_214, %c2_i32_213 : i32
    %cst_215 = arith.constant dense<0.000000e+00> : vector<8x96xf32>
    %762 = tpu.matmul %759, %632, %cst_215 {dimension_numbers = #tpu.dot_dimension_numbers<[1], [0], [0], [1], [0, 0, 1, 1], [], []>} : vector<8x32xf32>, vector<32x96xf32>, vector<8x96xf32> -> vector<8x96xf32>
    %c8_i32_216 = arith.constant 8 : i32
    %763 = arith.muli %c2_i32_213, %c8_i32_216 : i32
    %764 = tpu.assume_multiple %763, 8 : i32
    %c8_i32_217 = arith.constant 8 : i32
    %765 = arith.muli %761, %c8_i32_217 : i32
    %766 = tpu.assume_multiple %765, 8 : i32
    %767 = arith.index_cast %764 : i32 to index
    %c0_218 = arith.constant 0 : index
    %768 = vector.load %arg8[%767, %c0_218] : memref<64x96xf32, #tpu.memory_space<vmem>>, vector<8x48xf32>
    %769 = arith.index_cast %766 : i32 to index
    %c48_219 = arith.constant 48 : index
    %770 = vector.load %arg8[%769, %c48_219] : memref<64x96xf32, #tpu.memory_space<vmem>>, vector<8x48xf32>
    %771 = vector.extract_strided_slice %768 {offsets = [0, 0], sizes = [8, 32], strides = [1, 1]} : vector<8x48xf32> to vector<8x32xf32>
    %772 = vector.extract_strided_slice %762 {offsets = [0, 0], sizes = [8, 32], strides = [1, 1]} : vector<8x96xf32> to vector<8x32xf32>
    %773 = arith.addf %771, %772 : vector<8x32xf32>
    %774 = arith.negf %773 : vector<8x32xf32>
    %775 = math.exp %774 : vector<8x32xf32>
    %cst_220 = arith.constant 1.000000e+00 : f32
    %776 = vector.broadcast %cst_220 : f32 to vector<8x32xf32>
    %777 = arith.addf %776, %775 : vector<8x32xf32>
    %778 = arith.divf %776, %777 : vector<8x32xf32>
    %779 = vector.extract_strided_slice %770 {offsets = [0, 0], sizes = [8, 32], strides = [1, 1]} : vector<8x48xf32> to vector<8x32xf32>
    %780 = vector.extract_strided_slice %762 {offsets = [0, 48], sizes = [8, 32], strides = [1, 1]} : vector<8x96xf32> to vector<8x32xf32>
    %781 = arith.addf %779, %780 : vector<8x32xf32>
    %782 = arith.negf %781 : vector<8x32xf32>
    %783 = math.exp %782 : vector<8x32xf32>
    %cst_221 = arith.constant 1.000000e+00 : f32
    %784 = vector.broadcast %cst_221 : f32 to vector<8x32xf32>
    %785 = arith.addf %784, %783 : vector<8x32xf32>
    %786 = arith.divf %784, %785 : vector<8x32xf32>
    %787 = vector.extract_strided_slice %768 {offsets = [0, 32], sizes = [8, 16], strides = [1, 1]} : vector<8x48xf32> to vector<8x16xf32>
    %788 = vector.extract_strided_slice %778 {offsets = [0, 0], sizes = [8, 16], strides = [1, 1]} : vector<8x32xf32> to vector<8x16xf32>
    %789 = vector.extract_strided_slice %762 {offsets = [0, 32], sizes = [8, 16], strides = [1, 1]} : vector<8x96xf32> to vector<8x16xf32>
    %790 = vector.extract_strided_slice %634 {offsets = [0, 32], sizes = [1, 16], strides = [1, 1]} : vector<1x96xf32> to vector<1x16xf32>
    %791 = vector.broadcast %790 : vector<1x16xf32> to vector<8x16xf32>
    %792 = arith.addf %789, %791 : vector<8x16xf32>
    %793 = arith.mulf %788, %792 : vector<8x16xf32>
    %794 = arith.addf %787, %793 : vector<8x16xf32>
    %795 = math.tanh %794 : vector<8x16xf32>
    %796 = vector.extract_strided_slice %770 {offsets = [0, 32], sizes = [8, 16], strides = [1, 1]} : vector<8x48xf32> to vector<8x16xf32>
    %797 = vector.extract_strided_slice %786 {offsets = [0, 0], sizes = [8, 16], strides = [1, 1]} : vector<8x32xf32> to vector<8x16xf32>
    %798 = vector.extract_strided_slice %762 {offsets = [0, 80], sizes = [8, 16], strides = [1, 1]} : vector<8x96xf32> to vector<8x16xf32>
    %799 = vector.extract_strided_slice %634 {offsets = [0, 80], sizes = [1, 16], strides = [1, 1]} : vector<1x96xf32> to vector<1x16xf32>
    %800 = vector.broadcast %799 : vector<1x16xf32> to vector<8x16xf32>
    %801 = arith.addf %798, %800 : vector<8x16xf32>
    %802 = arith.mulf %797, %801 : vector<8x16xf32>
    %803 = arith.addf %796, %802 : vector<8x16xf32>
    %804 = math.tanh %803 : vector<8x16xf32>
    %805 = vector.extract_strided_slice %778 {offsets = [0, 16], sizes = [8, 16], strides = [1, 1]} : vector<8x32xf32> to vector<8x16xf32>
    %806 = vector.extract_strided_slice %786 {offsets = [0, 16], sizes = [8, 16], strides = [1, 1]} : vector<8x32xf32> to vector<8x16xf32>
    %cst_222 = arith.constant 1.000000e+00 : f32
    %807 = vector.broadcast %cst_222 : f32 to vector<8x16xf32>
    %808 = arith.subf %807, %805 : vector<8x16xf32>
    %809 = arith.mulf %808, %795 : vector<8x16xf32>
    %810 = vector.extract_strided_slice %759 {offsets = [0, 0], sizes = [8, 16], strides = [1, 1]} : vector<8x32xf32> to vector<8x16xf32>
    %811 = arith.mulf %805, %810 : vector<8x16xf32>
    %812 = arith.addf %809, %811 : vector<8x16xf32>
    %cst_223 = arith.constant 1.000000e+00 : f32
    %813 = vector.broadcast %cst_223 : f32 to vector<8x16xf32>
    %814 = arith.subf %813, %806 : vector<8x16xf32>
    %815 = arith.mulf %814, %804 : vector<8x16xf32>
    %816 = vector.extract_strided_slice %759 {offsets = [0, 16], sizes = [8, 16], strides = [1, 1]} : vector<8x32xf32> to vector<8x16xf32>
    %817 = arith.mulf %806, %816 : vector<8x16xf32>
    %818 = arith.addf %815, %817 : vector<8x16xf32>
    %819 = tpu.concatenate %812, %818 in 1 : vector<8x16xf32>, vector<8x16xf32> -> vector<8x32xf32>
    %820 = arith.addf %760, %819 : vector<8x32xf32>
    %c3_i32_224 = arith.constant 3 : i32
    %c7_i32_225 = arith.constant 7 : i32
    %821 = arith.subi %c7_i32_225, %c3_i32_224 : i32
    %cst_226 = arith.constant dense<0.000000e+00> : vector<8x96xf32>
    %822 = tpu.matmul %819, %632, %cst_226 {dimension_numbers = #tpu.dot_dimension_numbers<[1], [0], [0], [1], [0, 0, 1, 1], [], []>} : vector<8x32xf32>, vector<32x96xf32>, vector<8x96xf32> -> vector<8x96xf32>
    %c8_i32_227 = arith.constant 8 : i32
    %823 = arith.muli %c3_i32_224, %c8_i32_227 : i32
    %824 = tpu.assume_multiple %823, 8 : i32
    %c8_i32_228 = arith.constant 8 : i32
    %825 = arith.muli %821, %c8_i32_228 : i32
    %826 = tpu.assume_multiple %825, 8 : i32
    %827 = arith.index_cast %824 : i32 to index
    %c0_229 = arith.constant 0 : index
    %828 = vector.load %arg8[%827, %c0_229] : memref<64x96xf32, #tpu.memory_space<vmem>>, vector<8x48xf32>
    %829 = arith.index_cast %826 : i32 to index
    %c48_230 = arith.constant 48 : index
    %830 = vector.load %arg8[%829, %c48_230] : memref<64x96xf32, #tpu.memory_space<vmem>>, vector<8x48xf32>
    %831 = vector.extract_strided_slice %828 {offsets = [0, 0], sizes = [8, 32], strides = [1, 1]} : vector<8x48xf32> to vector<8x32xf32>
    %832 = vector.extract_strided_slice %822 {offsets = [0, 0], sizes = [8, 32], strides = [1, 1]} : vector<8x96xf32> to vector<8x32xf32>
    %833 = arith.addf %831, %832 : vector<8x32xf32>
    %834 = arith.negf %833 : vector<8x32xf32>
    %835 = math.exp %834 : vector<8x32xf32>
    %cst_231 = arith.constant 1.000000e+00 : f32
    %836 = vector.broadcast %cst_231 : f32 to vector<8x32xf32>
    %837 = arith.addf %836, %835 : vector<8x32xf32>
    %838 = arith.divf %836, %837 : vector<8x32xf32>
    %839 = vector.extract_strided_slice %830 {offsets = [0, 0], sizes = [8, 32], strides = [1, 1]} : vector<8x48xf32> to vector<8x32xf32>
    %840 = vector.extract_strided_slice %822 {offsets = [0, 48], sizes = [8, 32], strides = [1, 1]} : vector<8x96xf32> to vector<8x32xf32>
    %841 = arith.addf %839, %840 : vector<8x32xf32>
    %842 = arith.negf %841 : vector<8x32xf32>
    %843 = math.exp %842 : vector<8x32xf32>
    %cst_232 = arith.constant 1.000000e+00 : f32
    %844 = vector.broadcast %cst_232 : f32 to vector<8x32xf32>
    %845 = arith.addf %844, %843 : vector<8x32xf32>
    %846 = arith.divf %844, %845 : vector<8x32xf32>
    %847 = vector.extract_strided_slice %828 {offsets = [0, 32], sizes = [8, 16], strides = [1, 1]} : vector<8x48xf32> to vector<8x16xf32>
    %848 = vector.extract_strided_slice %838 {offsets = [0, 0], sizes = [8, 16], strides = [1, 1]} : vector<8x32xf32> to vector<8x16xf32>
    %849 = vector.extract_strided_slice %822 {offsets = [0, 32], sizes = [8, 16], strides = [1, 1]} : vector<8x96xf32> to vector<8x16xf32>
    %850 = vector.extract_strided_slice %634 {offsets = [0, 32], sizes = [1, 16], strides = [1, 1]} : vector<1x96xf32> to vector<1x16xf32>
    %851 = vector.broadcast %850 : vector<1x16xf32> to vector<8x16xf32>
    %852 = arith.addf %849, %851 : vector<8x16xf32>
    %853 = arith.mulf %848, %852 : vector<8x16xf32>
    %854 = arith.addf %847, %853 : vector<8x16xf32>
    %855 = math.tanh %854 : vector<8x16xf32>
    %856 = vector.extract_strided_slice %830 {offsets = [0, 32], sizes = [8, 16], strides = [1, 1]} : vector<8x48xf32> to vector<8x16xf32>
    %857 = vector.extract_strided_slice %846 {offsets = [0, 0], sizes = [8, 16], strides = [1, 1]} : vector<8x32xf32> to vector<8x16xf32>
    %858 = vector.extract_strided_slice %822 {offsets = [0, 80], sizes = [8, 16], strides = [1, 1]} : vector<8x96xf32> to vector<8x16xf32>
    %859 = vector.extract_strided_slice %634 {offsets = [0, 80], sizes = [1, 16], strides = [1, 1]} : vector<1x96xf32> to vector<1x16xf32>
    %860 = vector.broadcast %859 : vector<1x16xf32> to vector<8x16xf32>
    %861 = arith.addf %858, %860 : vector<8x16xf32>
    %862 = arith.mulf %857, %861 : vector<8x16xf32>
    %863 = arith.addf %856, %862 : vector<8x16xf32>
    %864 = math.tanh %863 : vector<8x16xf32>
    %865 = vector.extract_strided_slice %838 {offsets = [0, 16], sizes = [8, 16], strides = [1, 1]} : vector<8x32xf32> to vector<8x16xf32>
    %866 = vector.extract_strided_slice %846 {offsets = [0, 16], sizes = [8, 16], strides = [1, 1]} : vector<8x32xf32> to vector<8x16xf32>
    %cst_233 = arith.constant 1.000000e+00 : f32
    %867 = vector.broadcast %cst_233 : f32 to vector<8x16xf32>
    %868 = arith.subf %867, %865 : vector<8x16xf32>
    %869 = arith.mulf %868, %855 : vector<8x16xf32>
    %870 = vector.extract_strided_slice %819 {offsets = [0, 0], sizes = [8, 16], strides = [1, 1]} : vector<8x32xf32> to vector<8x16xf32>
    %871 = arith.mulf %865, %870 : vector<8x16xf32>
    %872 = arith.addf %869, %871 : vector<8x16xf32>
    %cst_234 = arith.constant 1.000000e+00 : f32
    %873 = vector.broadcast %cst_234 : f32 to vector<8x16xf32>
    %874 = arith.subf %873, %866 : vector<8x16xf32>
    %875 = arith.mulf %874, %864 : vector<8x16xf32>
    %876 = vector.extract_strided_slice %819 {offsets = [0, 16], sizes = [8, 16], strides = [1, 1]} : vector<8x32xf32> to vector<8x16xf32>
    %877 = arith.mulf %866, %876 : vector<8x16xf32>
    %878 = arith.addf %875, %877 : vector<8x16xf32>
    %879 = tpu.concatenate %872, %878 in 1 : vector<8x16xf32>, vector<8x16xf32> -> vector<8x32xf32>
    %880 = arith.addf %820, %879 : vector<8x32xf32>
    %c4_i32_235 = arith.constant 4 : i32
    %c7_i32_236 = arith.constant 7 : i32
    %881 = arith.subi %c7_i32_236, %c4_i32_235 : i32
    %cst_237 = arith.constant dense<0.000000e+00> : vector<8x96xf32>
    %882 = tpu.matmul %879, %632, %cst_237 {dimension_numbers = #tpu.dot_dimension_numbers<[1], [0], [0], [1], [0, 0, 1, 1], [], []>} : vector<8x32xf32>, vector<32x96xf32>, vector<8x96xf32> -> vector<8x96xf32>
    %c8_i32_238 = arith.constant 8 : i32
    %883 = arith.muli %c4_i32_235, %c8_i32_238 : i32
    %884 = tpu.assume_multiple %883, 8 : i32
    %c8_i32_239 = arith.constant 8 : i32
    %885 = arith.muli %881, %c8_i32_239 : i32
    %886 = tpu.assume_multiple %885, 8 : i32
    %887 = arith.index_cast %884 : i32 to index
    %c0_240 = arith.constant 0 : index
    %888 = vector.load %arg8[%887, %c0_240] : memref<64x96xf32, #tpu.memory_space<vmem>>, vector<8x48xf32>
    %889 = arith.index_cast %886 : i32 to index
    %c48_241 = arith.constant 48 : index
    %890 = vector.load %arg8[%889, %c48_241] : memref<64x96xf32, #tpu.memory_space<vmem>>, vector<8x48xf32>
    %891 = vector.extract_strided_slice %888 {offsets = [0, 0], sizes = [8, 32], strides = [1, 1]} : vector<8x48xf32> to vector<8x32xf32>
    %892 = vector.extract_strided_slice %882 {offsets = [0, 0], sizes = [8, 32], strides = [1, 1]} : vector<8x96xf32> to vector<8x32xf32>
    %893 = arith.addf %891, %892 : vector<8x32xf32>
    %894 = arith.negf %893 : vector<8x32xf32>
    %895 = math.exp %894 : vector<8x32xf32>
    %cst_242 = arith.constant 1.000000e+00 : f32
    %896 = vector.broadcast %cst_242 : f32 to vector<8x32xf32>
    %897 = arith.addf %896, %895 : vector<8x32xf32>
    %898 = arith.divf %896, %897 : vector<8x32xf32>
    %899 = vector.extract_strided_slice %890 {offsets = [0, 0], sizes = [8, 32], strides = [1, 1]} : vector<8x48xf32> to vector<8x32xf32>
    %900 = vector.extract_strided_slice %882 {offsets = [0, 48], sizes = [8, 32], strides = [1, 1]} : vector<8x96xf32> to vector<8x32xf32>
    %901 = arith.addf %899, %900 : vector<8x32xf32>
    %902 = arith.negf %901 : vector<8x32xf32>
    %903 = math.exp %902 : vector<8x32xf32>
    %cst_243 = arith.constant 1.000000e+00 : f32
    %904 = vector.broadcast %cst_243 : f32 to vector<8x32xf32>
    %905 = arith.addf %904, %903 : vector<8x32xf32>
    %906 = arith.divf %904, %905 : vector<8x32xf32>
    %907 = vector.extract_strided_slice %888 {offsets = [0, 32], sizes = [8, 16], strides = [1, 1]} : vector<8x48xf32> to vector<8x16xf32>
    %908 = vector.extract_strided_slice %898 {offsets = [0, 0], sizes = [8, 16], strides = [1, 1]} : vector<8x32xf32> to vector<8x16xf32>
    %909 = vector.extract_strided_slice %882 {offsets = [0, 32], sizes = [8, 16], strides = [1, 1]} : vector<8x96xf32> to vector<8x16xf32>
    %910 = vector.extract_strided_slice %634 {offsets = [0, 32], sizes = [1, 16], strides = [1, 1]} : vector<1x96xf32> to vector<1x16xf32>
    %911 = vector.broadcast %910 : vector<1x16xf32> to vector<8x16xf32>
    %912 = arith.addf %909, %911 : vector<8x16xf32>
    %913 = arith.mulf %908, %912 : vector<8x16xf32>
    %914 = arith.addf %907, %913 : vector<8x16xf32>
    %915 = math.tanh %914 : vector<8x16xf32>
    %916 = vector.extract_strided_slice %890 {offsets = [0, 32], sizes = [8, 16], strides = [1, 1]} : vector<8x48xf32> to vector<8x16xf32>
    %917 = vector.extract_strided_slice %906 {offsets = [0, 0], sizes = [8, 16], strides = [1, 1]} : vector<8x32xf32> to vector<8x16xf32>
    %918 = vector.extract_strided_slice %882 {offsets = [0, 80], sizes = [8, 16], strides = [1, 1]} : vector<8x96xf32> to vector<8x16xf32>
    %919 = vector.extract_strided_slice %634 {offsets = [0, 80], sizes = [1, 16], strides = [1, 1]} : vector<1x96xf32> to vector<1x16xf32>
    %920 = vector.broadcast %919 : vector<1x16xf32> to vector<8x16xf32>
    %921 = arith.addf %918, %920 : vector<8x16xf32>
    %922 = arith.mulf %917, %921 : vector<8x16xf32>
    %923 = arith.addf %916, %922 : vector<8x16xf32>
    %924 = math.tanh %923 : vector<8x16xf32>
    %925 = vector.extract_strided_slice %898 {offsets = [0, 16], sizes = [8, 16], strides = [1, 1]} : vector<8x32xf32> to vector<8x16xf32>
    %926 = vector.extract_strided_slice %906 {offsets = [0, 16], sizes = [8, 16], strides = [1, 1]} : vector<8x32xf32> to vector<8x16xf32>
    %cst_244 = arith.constant 1.000000e+00 : f32
    %927 = vector.broadcast %cst_244 : f32 to vector<8x16xf32>
    %928 = arith.subf %927, %925 : vector<8x16xf32>
    %929 = arith.mulf %928, %915 : vector<8x16xf32>
    %930 = vector.extract_strided_slice %879 {offsets = [0, 0], sizes = [8, 16], strides = [1, 1]} : vector<8x32xf32> to vector<8x16xf32>
    %931 = arith.mulf %925, %930 : vector<8x16xf32>
    %932 = arith.addf %929, %931 : vector<8x16xf32>
    %cst_245 = arith.constant 1.000000e+00 : f32
    %933 = vector.broadcast %cst_245 : f32 to vector<8x16xf32>
    %934 = arith.subf %933, %926 : vector<8x16xf32>
    %935 = arith.mulf %934, %924 : vector<8x16xf32>
    %936 = vector.extract_strided_slice %879 {offsets = [0, 16], sizes = [8, 16], strides = [1, 1]} : vector<8x32xf32> to vector<8x16xf32>
    %937 = arith.mulf %926, %936 : vector<8x16xf32>
    %938 = arith.addf %935, %937 : vector<8x16xf32>
    %939 = tpu.concatenate %932, %938 in 1 : vector<8x16xf32>, vector<8x16xf32> -> vector<8x32xf32>
    %940 = arith.addf %880, %939 : vector<8x32xf32>
    %c5_i32_246 = arith.constant 5 : i32
    %c7_i32_247 = arith.constant 7 : i32
    %941 = arith.subi %c7_i32_247, %c5_i32_246 : i32
    %cst_248 = arith.constant dense<0.000000e+00> : vector<8x96xf32>
    %942 = tpu.matmul %939, %632, %cst_248 {dimension_numbers = #tpu.dot_dimension_numbers<[1], [0], [0], [1], [0, 0, 1, 1], [], []>} : vector<8x32xf32>, vector<32x96xf32>, vector<8x96xf32> -> vector<8x96xf32>
    %c8_i32_249 = arith.constant 8 : i32
    %943 = arith.muli %c5_i32_246, %c8_i32_249 : i32
    %944 = tpu.assume_multiple %943, 8 : i32
    %c8_i32_250 = arith.constant 8 : i32
    %945 = arith.muli %941, %c8_i32_250 : i32
    %946 = tpu.assume_multiple %945, 8 : i32
    %947 = arith.index_cast %944 : i32 to index
    %c0_251 = arith.constant 0 : index
    %948 = vector.load %arg8[%947, %c0_251] : memref<64x96xf32, #tpu.memory_space<vmem>>, vector<8x48xf32>
    %949 = arith.index_cast %946 : i32 to index
    %c48_252 = arith.constant 48 : index
    %950 = vector.load %arg8[%949, %c48_252] : memref<64x96xf32, #tpu.memory_space<vmem>>, vector<8x48xf32>
    %951 = vector.extract_strided_slice %948 {offsets = [0, 0], sizes = [8, 32], strides = [1, 1]} : vector<8x48xf32> to vector<8x32xf32>
    %952 = vector.extract_strided_slice %942 {offsets = [0, 0], sizes = [8, 32], strides = [1, 1]} : vector<8x96xf32> to vector<8x32xf32>
    %953 = arith.addf %951, %952 : vector<8x32xf32>
    %954 = arith.negf %953 : vector<8x32xf32>
    %955 = math.exp %954 : vector<8x32xf32>
    %cst_253 = arith.constant 1.000000e+00 : f32
    %956 = vector.broadcast %cst_253 : f32 to vector<8x32xf32>
    %957 = arith.addf %956, %955 : vector<8x32xf32>
    %958 = arith.divf %956, %957 : vector<8x32xf32>
    %959 = vector.extract_strided_slice %950 {offsets = [0, 0], sizes = [8, 32], strides = [1, 1]} : vector<8x48xf32> to vector<8x32xf32>
    %960 = vector.extract_strided_slice %942 {offsets = [0, 48], sizes = [8, 32], strides = [1, 1]} : vector<8x96xf32> to vector<8x32xf32>
    %961 = arith.addf %959, %960 : vector<8x32xf32>
    %962 = arith.negf %961 : vector<8x32xf32>
    %963 = math.exp %962 : vector<8x32xf32>
    %cst_254 = arith.constant 1.000000e+00 : f32
    %964 = vector.broadcast %cst_254 : f32 to vector<8x32xf32>
    %965 = arith.addf %964, %963 : vector<8x32xf32>
    %966 = arith.divf %964, %965 : vector<8x32xf32>
    %967 = vector.extract_strided_slice %948 {offsets = [0, 32], sizes = [8, 16], strides = [1, 1]} : vector<8x48xf32> to vector<8x16xf32>
    %968 = vector.extract_strided_slice %958 {offsets = [0, 0], sizes = [8, 16], strides = [1, 1]} : vector<8x32xf32> to vector<8x16xf32>
    %969 = vector.extract_strided_slice %942 {offsets = [0, 32], sizes = [8, 16], strides = [1, 1]} : vector<8x96xf32> to vector<8x16xf32>
    %970 = vector.extract_strided_slice %634 {offsets = [0, 32], sizes = [1, 16], strides = [1, 1]} : vector<1x96xf32> to vector<1x16xf32>
    %971 = vector.broadcast %970 : vector<1x16xf32> to vector<8x16xf32>
    %972 = arith.addf %969, %971 : vector<8x16xf32>
    %973 = arith.mulf %968, %972 : vector<8x16xf32>
    %974 = arith.addf %967, %973 : vector<8x16xf32>
    %975 = math.tanh %974 : vector<8x16xf32>
    %976 = vector.extract_strided_slice %950 {offsets = [0, 32], sizes = [8, 16], strides = [1, 1]} : vector<8x48xf32> to vector<8x16xf32>
    %977 = vector.extract_strided_slice %966 {offsets = [0, 0], sizes = [8, 16], strides = [1, 1]} : vector<8x32xf32> to vector<8x16xf32>
    %978 = vector.extract_strided_slice %942 {offsets = [0, 80], sizes = [8, 16], strides = [1, 1]} : vector<8x96xf32> to vector<8x16xf32>
    %979 = vector.extract_strided_slice %634 {offsets = [0, 80], sizes = [1, 16], strides = [1, 1]} : vector<1x96xf32> to vector<1x16xf32>
    %980 = vector.broadcast %979 : vector<1x16xf32> to vector<8x16xf32>
    %981 = arith.addf %978, %980 : vector<8x16xf32>
    %982 = arith.mulf %977, %981 : vector<8x16xf32>
    %983 = arith.addf %976, %982 : vector<8x16xf32>
    %984 = math.tanh %983 : vector<8x16xf32>
    %985 = vector.extract_strided_slice %958 {offsets = [0, 16], sizes = [8, 16], strides = [1, 1]} : vector<8x32xf32> to vector<8x16xf32>
    %986 = vector.extract_strided_slice %966 {offsets = [0, 16], sizes = [8, 16], strides = [1, 1]} : vector<8x32xf32> to vector<8x16xf32>
    %cst_255 = arith.constant 1.000000e+00 : f32
    %987 = vector.broadcast %cst_255 : f32 to vector<8x16xf32>
    %988 = arith.subf %987, %985 : vector<8x16xf32>
    %989 = arith.mulf %988, %975 : vector<8x16xf32>
    %990 = vector.extract_strided_slice %939 {offsets = [0, 0], sizes = [8, 16], strides = [1, 1]} : vector<8x32xf32> to vector<8x16xf32>
    %991 = arith.mulf %985, %990 : vector<8x16xf32>
    %992 = arith.addf %989, %991 : vector<8x16xf32>
    %cst_256 = arith.constant 1.000000e+00 : f32
    %993 = vector.broadcast %cst_256 : f32 to vector<8x16xf32>
    %994 = arith.subf %993, %986 : vector<8x16xf32>
    %995 = arith.mulf %994, %984 : vector<8x16xf32>
    %996 = vector.extract_strided_slice %939 {offsets = [0, 16], sizes = [8, 16], strides = [1, 1]} : vector<8x32xf32> to vector<8x16xf32>
    %997 = arith.mulf %986, %996 : vector<8x16xf32>
    %998 = arith.addf %995, %997 : vector<8x16xf32>
    %999 = tpu.concatenate %992, %998 in 1 : vector<8x16xf32>, vector<8x16xf32> -> vector<8x32xf32>
    %1000 = arith.addf %940, %999 : vector<8x32xf32>
    %c6_i32_257 = arith.constant 6 : i32
    %c7_i32_258 = arith.constant 7 : i32
    %1001 = arith.subi %c7_i32_258, %c6_i32_257 : i32
    %cst_259 = arith.constant dense<0.000000e+00> : vector<8x96xf32>
    %1002 = tpu.matmul %999, %632, %cst_259 {dimension_numbers = #tpu.dot_dimension_numbers<[1], [0], [0], [1], [0, 0, 1, 1], [], []>} : vector<8x32xf32>, vector<32x96xf32>, vector<8x96xf32> -> vector<8x96xf32>
    %c8_i32_260 = arith.constant 8 : i32
    %1003 = arith.muli %c6_i32_257, %c8_i32_260 : i32
    %1004 = tpu.assume_multiple %1003, 8 : i32
    %c8_i32_261 = arith.constant 8 : i32
    %1005 = arith.muli %1001, %c8_i32_261 : i32
    %1006 = tpu.assume_multiple %1005, 8 : i32
    %1007 = arith.index_cast %1004 : i32 to index
    %c0_262 = arith.constant 0 : index
    %1008 = vector.load %arg8[%1007, %c0_262] : memref<64x96xf32, #tpu.memory_space<vmem>>, vector<8x48xf32>
    %1009 = arith.index_cast %1006 : i32 to index
    %c48_263 = arith.constant 48 : index
    %1010 = vector.load %arg8[%1009, %c48_263] : memref<64x96xf32, #tpu.memory_space<vmem>>, vector<8x48xf32>
    %1011 = vector.extract_strided_slice %1008 {offsets = [0, 0], sizes = [8, 32], strides = [1, 1]} : vector<8x48xf32> to vector<8x32xf32>
    %1012 = vector.extract_strided_slice %1002 {offsets = [0, 0], sizes = [8, 32], strides = [1, 1]} : vector<8x96xf32> to vector<8x32xf32>
    %1013 = arith.addf %1011, %1012 : vector<8x32xf32>
    %1014 = arith.negf %1013 : vector<8x32xf32>
    %1015 = math.exp %1014 : vector<8x32xf32>
    %cst_264 = arith.constant 1.000000e+00 : f32
    %1016 = vector.broadcast %cst_264 : f32 to vector<8x32xf32>
    %1017 = arith.addf %1016, %1015 : vector<8x32xf32>
    %1018 = arith.divf %1016, %1017 : vector<8x32xf32>
    %1019 = vector.extract_strided_slice %1010 {offsets = [0, 0], sizes = [8, 32], strides = [1, 1]} : vector<8x48xf32> to vector<8x32xf32>
    %1020 = vector.extract_strided_slice %1002 {offsets = [0, 48], sizes = [8, 32], strides = [1, 1]} : vector<8x96xf32> to vector<8x32xf32>
    %1021 = arith.addf %1019, %1020 : vector<8x32xf32>
    %1022 = arith.negf %1021 : vector<8x32xf32>
    %1023 = math.exp %1022 : vector<8x32xf32>
    %cst_265 = arith.constant 1.000000e+00 : f32
    %1024 = vector.broadcast %cst_265 : f32 to vector<8x32xf32>
    %1025 = arith.addf %1024, %1023 : vector<8x32xf32>
    %1026 = arith.divf %1024, %1025 : vector<8x32xf32>
    %1027 = vector.extract_strided_slice %1008 {offsets = [0, 32], sizes = [8, 16], strides = [1, 1]} : vector<8x48xf32> to vector<8x16xf32>
    %1028 = vector.extract_strided_slice %1018 {offsets = [0, 0], sizes = [8, 16], strides = [1, 1]} : vector<8x32xf32> to vector<8x16xf32>
    %1029 = vector.extract_strided_slice %1002 {offsets = [0, 32], sizes = [8, 16], strides = [1, 1]} : vector<8x96xf32> to vector<8x16xf32>
    %1030 = vector.extract_strided_slice %634 {offsets = [0, 32], sizes = [1, 16], strides = [1, 1]} : vector<1x96xf32> to vector<1x16xf32>
    %1031 = vector.broadcast %1030 : vector<1x16xf32> to vector<8x16xf32>
    %1032 = arith.addf %1029, %1031 : vector<8x16xf32>
    %1033 = arith.mulf %1028, %1032 : vector<8x16xf32>
    %1034 = arith.addf %1027, %1033 : vector<8x16xf32>
    %1035 = math.tanh %1034 : vector<8x16xf32>
    %1036 = vector.extract_strided_slice %1010 {offsets = [0, 32], sizes = [8, 16], strides = [1, 1]} : vector<8x48xf32> to vector<8x16xf32>
    %1037 = vector.extract_strided_slice %1026 {offsets = [0, 0], sizes = [8, 16], strides = [1, 1]} : vector<8x32xf32> to vector<8x16xf32>
    %1038 = vector.extract_strided_slice %1002 {offsets = [0, 80], sizes = [8, 16], strides = [1, 1]} : vector<8x96xf32> to vector<8x16xf32>
    %1039 = vector.extract_strided_slice %634 {offsets = [0, 80], sizes = [1, 16], strides = [1, 1]} : vector<1x96xf32> to vector<1x16xf32>
    %1040 = vector.broadcast %1039 : vector<1x16xf32> to vector<8x16xf32>
    %1041 = arith.addf %1038, %1040 : vector<8x16xf32>
    %1042 = arith.mulf %1037, %1041 : vector<8x16xf32>
    %1043 = arith.addf %1036, %1042 : vector<8x16xf32>
    %1044 = math.tanh %1043 : vector<8x16xf32>
    %1045 = vector.extract_strided_slice %1018 {offsets = [0, 16], sizes = [8, 16], strides = [1, 1]} : vector<8x32xf32> to vector<8x16xf32>
    %1046 = vector.extract_strided_slice %1026 {offsets = [0, 16], sizes = [8, 16], strides = [1, 1]} : vector<8x32xf32> to vector<8x16xf32>
    %cst_266 = arith.constant 1.000000e+00 : f32
    %1047 = vector.broadcast %cst_266 : f32 to vector<8x16xf32>
    %1048 = arith.subf %1047, %1045 : vector<8x16xf32>
    %1049 = arith.mulf %1048, %1035 : vector<8x16xf32>
    %1050 = vector.extract_strided_slice %999 {offsets = [0, 0], sizes = [8, 16], strides = [1, 1]} : vector<8x32xf32> to vector<8x16xf32>
    %1051 = arith.mulf %1045, %1050 : vector<8x16xf32>
    %1052 = arith.addf %1049, %1051 : vector<8x16xf32>
    %cst_267 = arith.constant 1.000000e+00 : f32
    %1053 = vector.broadcast %cst_267 : f32 to vector<8x16xf32>
    %1054 = arith.subf %1053, %1046 : vector<8x16xf32>
    %1055 = arith.mulf %1054, %1044 : vector<8x16xf32>
    %1056 = vector.extract_strided_slice %999 {offsets = [0, 16], sizes = [8, 16], strides = [1, 1]} : vector<8x32xf32> to vector<8x16xf32>
    %1057 = arith.mulf %1046, %1056 : vector<8x16xf32>
    %1058 = arith.addf %1055, %1057 : vector<8x16xf32>
    %1059 = tpu.concatenate %1052, %1058 in 1 : vector<8x16xf32>, vector<8x16xf32> -> vector<8x32xf32>
    %1060 = arith.addf %1000, %1059 : vector<8x32xf32>
    %c7_i32_268 = arith.constant 7 : i32
    %c7_i32_269 = arith.constant 7 : i32
    %1061 = arith.subi %c7_i32_269, %c7_i32_268 : i32
    %cst_270 = arith.constant dense<0.000000e+00> : vector<8x96xf32>
    %1062 = tpu.matmul %1059, %632, %cst_270 {dimension_numbers = #tpu.dot_dimension_numbers<[1], [0], [0], [1], [0, 0, 1, 1], [], []>} : vector<8x32xf32>, vector<32x96xf32>, vector<8x96xf32> -> vector<8x96xf32>
    %c8_i32_271 = arith.constant 8 : i32
    %1063 = arith.muli %c7_i32_268, %c8_i32_271 : i32
    %1064 = tpu.assume_multiple %1063, 8 : i32
    %c8_i32_272 = arith.constant 8 : i32
    %1065 = arith.muli %1061, %c8_i32_272 : i32
    %1066 = tpu.assume_multiple %1065, 8 : i32
    %1067 = arith.index_cast %1064 : i32 to index
    %c0_273 = arith.constant 0 : index
    %1068 = vector.load %arg8[%1067, %c0_273] : memref<64x96xf32, #tpu.memory_space<vmem>>, vector<8x48xf32>
    %1069 = arith.index_cast %1066 : i32 to index
    %c48_274 = arith.constant 48 : index
    %1070 = vector.load %arg8[%1069, %c48_274] : memref<64x96xf32, #tpu.memory_space<vmem>>, vector<8x48xf32>
    %1071 = vector.extract_strided_slice %1068 {offsets = [0, 0], sizes = [8, 32], strides = [1, 1]} : vector<8x48xf32> to vector<8x32xf32>
    %1072 = vector.extract_strided_slice %1062 {offsets = [0, 0], sizes = [8, 32], strides = [1, 1]} : vector<8x96xf32> to vector<8x32xf32>
    %1073 = arith.addf %1071, %1072 : vector<8x32xf32>
    %1074 = arith.negf %1073 : vector<8x32xf32>
    %1075 = math.exp %1074 : vector<8x32xf32>
    %cst_275 = arith.constant 1.000000e+00 : f32
    %1076 = vector.broadcast %cst_275 : f32 to vector<8x32xf32>
    %1077 = arith.addf %1076, %1075 : vector<8x32xf32>
    %1078 = arith.divf %1076, %1077 : vector<8x32xf32>
    %1079 = vector.extract_strided_slice %1070 {offsets = [0, 0], sizes = [8, 32], strides = [1, 1]} : vector<8x48xf32> to vector<8x32xf32>
    %1080 = vector.extract_strided_slice %1062 {offsets = [0, 48], sizes = [8, 32], strides = [1, 1]} : vector<8x96xf32> to vector<8x32xf32>
    %1081 = arith.addf %1079, %1080 : vector<8x32xf32>
    %1082 = arith.negf %1081 : vector<8x32xf32>
    %1083 = math.exp %1082 : vector<8x32xf32>
    %cst_276 = arith.constant 1.000000e+00 : f32
    %1084 = vector.broadcast %cst_276 : f32 to vector<8x32xf32>
    %1085 = arith.addf %1084, %1083 : vector<8x32xf32>
    %1086 = arith.divf %1084, %1085 : vector<8x32xf32>
    %1087 = vector.extract_strided_slice %1068 {offsets = [0, 32], sizes = [8, 16], strides = [1, 1]} : vector<8x48xf32> to vector<8x16xf32>
    %1088 = vector.extract_strided_slice %1078 {offsets = [0, 0], sizes = [8, 16], strides = [1, 1]} : vector<8x32xf32> to vector<8x16xf32>
    %1089 = vector.extract_strided_slice %1062 {offsets = [0, 32], sizes = [8, 16], strides = [1, 1]} : vector<8x96xf32> to vector<8x16xf32>
    %1090 = vector.extract_strided_slice %634 {offsets = [0, 32], sizes = [1, 16], strides = [1, 1]} : vector<1x96xf32> to vector<1x16xf32>
    %1091 = vector.broadcast %1090 : vector<1x16xf32> to vector<8x16xf32>
    %1092 = arith.addf %1089, %1091 : vector<8x16xf32>
    %1093 = arith.mulf %1088, %1092 : vector<8x16xf32>
    %1094 = arith.addf %1087, %1093 : vector<8x16xf32>
    %1095 = math.tanh %1094 : vector<8x16xf32>
    %1096 = vector.extract_strided_slice %1070 {offsets = [0, 32], sizes = [8, 16], strides = [1, 1]} : vector<8x48xf32> to vector<8x16xf32>
    %1097 = vector.extract_strided_slice %1086 {offsets = [0, 0], sizes = [8, 16], strides = [1, 1]} : vector<8x32xf32> to vector<8x16xf32>
    %1098 = vector.extract_strided_slice %1062 {offsets = [0, 80], sizes = [8, 16], strides = [1, 1]} : vector<8x96xf32> to vector<8x16xf32>
    %1099 = vector.extract_strided_slice %634 {offsets = [0, 80], sizes = [1, 16], strides = [1, 1]} : vector<1x96xf32> to vector<1x16xf32>
    %1100 = vector.broadcast %1099 : vector<1x16xf32> to vector<8x16xf32>
    %1101 = arith.addf %1098, %1100 : vector<8x16xf32>
    %1102 = arith.mulf %1097, %1101 : vector<8x16xf32>
    %1103 = arith.addf %1096, %1102 : vector<8x16xf32>
    %1104 = math.tanh %1103 : vector<8x16xf32>
    %1105 = vector.extract_strided_slice %1078 {offsets = [0, 16], sizes = [8, 16], strides = [1, 1]} : vector<8x32xf32> to vector<8x16xf32>
    %1106 = vector.extract_strided_slice %1086 {offsets = [0, 16], sizes = [8, 16], strides = [1, 1]} : vector<8x32xf32> to vector<8x16xf32>
    %cst_277 = arith.constant 1.000000e+00 : f32
    %1107 = vector.broadcast %cst_277 : f32 to vector<8x16xf32>
    %1108 = arith.subf %1107, %1105 : vector<8x16xf32>
    %1109 = arith.mulf %1108, %1095 : vector<8x16xf32>
    %1110 = vector.extract_strided_slice %1059 {offsets = [0, 0], sizes = [8, 16], strides = [1, 1]} : vector<8x32xf32> to vector<8x16xf32>
    %1111 = arith.mulf %1105, %1110 : vector<8x16xf32>
    %1112 = arith.addf %1109, %1111 : vector<8x16xf32>
    %cst_278 = arith.constant 1.000000e+00 : f32
    %1113 = vector.broadcast %cst_278 : f32 to vector<8x16xf32>
    %1114 = arith.subf %1113, %1106 : vector<8x16xf32>
    %1115 = arith.mulf %1114, %1104 : vector<8x16xf32>
    %1116 = vector.extract_strided_slice %1059 {offsets = [0, 16], sizes = [8, 16], strides = [1, 1]} : vector<8x32xf32> to vector<8x16xf32>
    %1117 = arith.mulf %1106, %1116 : vector<8x16xf32>
    %1118 = arith.addf %1115, %1117 : vector<8x16xf32>
    %1119 = tpu.concatenate %1112, %1118 in 1 : vector<8x16xf32>, vector<8x16xf32> -> vector<8x32xf32>
    %1120 = arith.addf %1060, %1119 : vector<8x32xf32>
    %c8_i32_279 = arith.constant 8 : i32
    %cst_280 = arith.constant 1.250000e-01 : f32
    %1121 = vector.broadcast %cst_280 : f32 to vector<8x32xf32>
    %1122 = arith.mulf %1120, %1121 : vector<8x32xf32>
    %1123 = vector.extract_strided_slice %1122 {offsets = [0, 0], sizes = [2, 32], strides = [1, 1]} : vector<8x32xf32> to vector<2x32xf32>
    %c0_281 = arith.constant 0 : index
    %c0_282 = arith.constant 0 : index
    %1124 = vector.load %arg5[%c0_281, %c0_282] : memref<2x32xf32, #tpu.memory_space<vmem>>, vector<2x32xf32>
    tpu.vector_store %arg5[%c0_281, %c0_282], %1123 {strides = array<i32>} : memref<2x32xf32, #tpu.memory_space<vmem>>, vector<2x32xf32>,
    return
  }
  func.func @transform_0(%arg0: i32, %arg1: memref<16xi32, #tpu.memory_space<smem>>) -> (i32, i32) {
    %c0_i32 = arith.constant 0 : i32
    %c0_i32_0 = arith.constant 0 : i32
    %c0_i32_1 = arith.constant 0 : i32
    return %c0_i32, %c0_i32_0 : i32, i32
  }
  func.func @transform_1(%arg0: i32, %arg1: memref<16xi32, #tpu.memory_space<smem>>) -> (i32, i32) {
    %c0_i32 = arith.constant 0 : i32
    %c0_i32_0 = arith.constant 0 : i32
    %c0_i32_1 = arith.constant 0 : i32
    return %c0_i32, %c0_i32_0 : i32, i32
  }
  func.func @transform_2(%arg0: i32, %arg1: memref<16xi32, #tpu.memory_space<smem>>) -> (i32, i32) {
    %c0_i32 = arith.constant 0 : i32
    %c0_i32_0 = arith.constant 0 : i32
    %c0_i32_1 = arith.constant 0 : i32
    return %c0_i32, %c0_i32_0 : i32, i32
  }
  func.func @transform_3(%arg0: i32, %arg1: memref<16xi32, #tpu.memory_space<smem>>) -> (i32, i32) {
    %c0_i32 = arith.constant 0 : i32
    %c0_i32_0 = arith.constant 0 : i32
    return %arg0, %c0_i32 : i32, i32
  }
}

</mosaic_0001>

<bundles_post_ra>
// kernel: tpu_custom_call.1
= control target key start
LH: loop header
LB: loop body
LE: loop exit
PB: predicated region body
PF: predicated region fallthrough
CT: control target
= control target key end

     0   :  { %s4240_s0 = inlined_call_operand.hbm [shape: s32[16], index: 0, kind: input, shape index: {}]   ;;  %s4241_s1 = inlined_call_operand.hbm [shape: f32[24,32], index: 1, kind: input, shape index: {}]   ;;  %s4242_s2 = inlined_call_operand.hbm [shape: f32[66,96], index: 2, kind: input, shape index: {}]   ;;  %s4243_s3 = inlined_call_operand.hbm [shape: f32[66,96], index: 3, kind: input, shape index: {}]   ;;  %s4244_s4 = inlined_call_operand.hbm [shape: f32[2,32], index: 4, kind: output, shape index: {}]  }
   0x1   :  { %s3474_s17 = scalar_lea.hbm %s4240_s0, 16 }
   0x2   :  { %p3475_p0 = scmp.ne.s32.totalorder %s4240_s0, %s3474_s17  ;;  %p3478_p1 = scmp.lt.u32.totalorder %s3474_s17, %s4240_s0 }
   0x4   :  { %p3480_p2 = pnand %p3478_p1, %p3475_p0 }
   0x6   :  { %3483 = shalt.err (!%p3480_p2)  }
   0x7   :  { %s3580_s22 = smov [#allocation6]  }
   0x8   :  { %10 = dma.hbm_to_smem %s4240_s0, 16, %s3580_s22, [#allocation5] }
   0x9   :  { %3572 = dma.done.wait [#allocation5], 16 }
   0xa   :  { %3573 = vsyncadd [#allocation5], 4294967280 }
   0xb   :  { %12 = sfence }
   0xc   :  { %13 = vsyncpa [#allocation8], 0 }
   0xd   :  { %14 = vsyncpa [#allocation11], 0 }
   0xe   :  { %15 = vsyncpa [#allocation9], 0  ;;  %s3581_s25 = smov [#allocation10]   ;;  %s3582_s27 = smov [#allocation7]  }
   0xf   :  { %s33_s26 = sshll.u32 %s3581_s25, 4  ;;  %s21_s28 = sshll.u32 %s3582_s27, 4  ;;  %s34_s26 = int_to_ptr.vmem [resolvable:$true] %s33_s26  ;;  %s3633_s28 = int_to_ptr.vmem [resolvable:$true] %s21_s28 }
  0x10   :  { %s3484_s5 = scalar_lea.hbm %s4242_s2, 1152 }
  0x11   :  { %p3485_p3 = scmp.ne.s32.totalorder %s4242_s2, %s3484_s5  ;;  %p3488_p4 = scmp.lt.u32.totalorder %s3484_s5, %s4242_s2 }
  0x13   :  { %p3490_p5 = pnand %p3488_p4, %p3485_p3 }
  0x15   :  { %3493 = shalt.err (!%p3490_p5)
}
  0x16   :  { %s3494_s9 = scalar_lea.vmem %s34_s26, 1152  ;;  %p3499_p7 = scmp.lt.s32.totalorder %s34_s26, %s34_s26 }
  0x17   :  { %p3495_p6 = scmp.ne.s32.totalorder %s34_s26, %s3494_s9  ;;  %p3500_p8 = scmp.lt.s32.totalorder %s3494_s9, %s3494_s9 }
  0x19   :  { %p3501_p9 = por %p3500_p8, %p3499_p7 }
  0x1b   :  { %p3502_p10 = pnand %p3501_p9, %p3495_p6 }
  0x1d   :  { %3505 = shalt.err (!%p3502_p10)
}
  0x1e   :  { %s3583_s10 = smov 128   ;;  %s3584_s11 = smov 8  }
  0x1f   :  { %39 = dma.hbm_to_vmem [thread:$0]  %s4242_s2, 1152, %s34_s26, [#allocation11], %s3583_s10, %s3583_s10, %s3584_s11  }
  0x20   :  { %s3506_s16 = scalar_lea.hbm %s4241_s1, 384 }
  0x21   :  { %p3507_p11 = scmp.ne.s32.totalorder %s4241_s1, %s3506_s16  ;;  %p3510_p12 = scmp.lt.u32.totalorder %s3506_s16, %s4241_s1 }
  0x23   :  { %p3512_p13 = pnand %p3510_p12, %p3507_p11 }
  0x25   :  { %3515 = shalt.err (!%p3512_p13)
}
  0x26   :  { %s3516_s21 = scalar_lea.vmem %s3633_s28, 384  ;;  %p3521_p1 = scmp.lt.s32.totalorder %s3633_s28, %s3633_s28 }
  0x27   :  { %p3517_p0 = scmp.ne.s32.totalorder %s3633_s28, %s3516_s21  ;;  %p3522_p2 = scmp.lt.s32.totalorder %s3516_s21, %s3516_s21 }
  0x29   :  { %p3523_p3 = por %p3522_p2, %p3521_p1 }
  0x2b   :  { %p3524_p4 = pnand %p3523_p3, %p3517_p0 }
  0x2d   :  { %3527 = shalt.err (!%p3524_p4)
}
  0x2e   :  { %27 = dma.hbm_to_vmem [thread:$0]  %s4241_s1, 384, %s3633_s28, [#allocation8], %s3583_s10, %s3583_s10, %s3584_s11  }
  0x2f   :  { %s3585_s23 = smov [#allocation12]   ;;  %s3528_s27 = scalar_lea.hbm %s4243_s3, 1152 }
  0x30   :  { %s45_s24 = sshll.u32 %s3585_s23, 4  ;;  %p3529_p5 = scmp.ne.s32.totalorder %s4243_s3, %s3528_s27  ;;  %s46_s24 = int_to_ptr.vmem [resolvable:$true] %s45_s24 }
  0x31   :  { %p3532_p6 = scmp.lt.u32.totalorder %s3528_s27, %s4243_s3 }
  0x33   :  { %p3534_p7 = pnand %p3532_p6, %p3529_p5 }
  0x35   :  { %3537 = shalt.err (!%p3534_p7)
}
  0x36   :  { %s3538_s7 = scalar_lea.vmem %s46_s24, 1152  ;;  %p3543_p9 = scmp.lt.s32.totalorder %s46_s24, %s46_s24 }
  0x37   :  { %p3539_p8 = scmp.ne.s32.totalorder %s46_s24, %s3538_s7  ;;  %p3544_p10 = scmp.lt.s32.totalorder %s3538_s7, %s3538_s7 }
  0x39   :  { %p3545_p11 = por %p3544_p10, %p3543_p9 }
  0x3b   :  { %p3546_p12 = pnand %p3545_p11, %p3539_p8 }
  0x3d   :  { %3549 = shalt.err (!%p3546_p12)
}
  0x3e   :  { %51 = dma.hbm_to_vmem [thread:$0]  %s4243_s3, 1152, %s46_s24, [#allocation11], %s3583_s10, %s3583_s10, %s3584_s11  }
  0x3f   :  { %3574 = dma.done.wait [#allocation8], 384  }
  0x40   :  { %3575 = vsyncadd [#allocation8], 4294966912 }
  0x41   :  { %3576 = dma.done.wait [#allocation11], 2304  }
  0x42   :  { %3577 = vsyncadd [#allocation11], 4294964992  ;;  %vm61_vm0 = vcmask 261120   ;;  %v3586_v0 = vmov 0.0|0.0   ;;  %vm3587_vm1 = vmmov 0   ;;  %v3588_v1 = vmov 0.0  }
  0x43   :  { %3162 = vmatprep.subr.bf16.mxu1 %v3586_v0  ;;  %2966 = vmatprep.mubr.msk.f32.mxu1 %vm3587_vm1, %v3588_v1  ;;  %62 = vst.msk [vmem:[#allocation2] sm:$0xff] %vm61_vm0, %v3588_v1  ;;  %s3690_s0 = sld [smem:[#allocation6]]  ;;  %63 = vst.msk [vmem:[#allocation2 + $0x8] sm:$0xff] %vm61_vm0, %v3588_v1  ;;  %s3708_s3 = sld [smem:[#allocation6 + $0x1]]  ;;  %v151_v2 = vld [vmem:[#allocation10] sm:$0xff]  ;;  %v152_v3 = vld [vmem:[#allocation10 + $0x8] sm:$0xff] }
  0x44   :  { %s3692_s8 = sld [smem:[#allocation6 + $0x8]]  ;;  %64 = vst.msk [vmem:[#allocation2 + $0x10] sm:$0xff] %vm61_vm0, %v3588_v1  ;;  %65 = vst.msk [vmem:[#allocation2 + $0x18] sm:$0xff] %vm61_vm0, %v3588_v1  ;;  %s3710_s9 = sld [smem:[#allocation6 + $0x9]]  ;;  %v155_v4 = vld [vmem:[#allocation10 + $0x20] sm:$0xff]  ;;  %vm74_vm2 = vcmask 253952   ;;  %v3154_v5 = vpack.c.bf16 %v152_v3, %v151_v2 }
  0x45   :  { %66 = vst.msk [vmem:[#allocation2 + $0x20] sm:$0xff] %vm61_vm0, %v3588_v1  ;;  %67 = vst.msk [vmem:[#allocation2 + $0x28] sm:$0xff] %vm61_vm0, %v3588_v1  ;;  %s3712_s10 = sld [smem:[#allocation6 + $0x2]]  ;;  %s3716_s12 = sld [smem:[#allocation6 + $0x3]]  ;;  %v156_v6 = vld [vmem:[#allocation10 + $0x28] sm:$0xff]  ;;  %v153_v7 = vld [vmem:[#allocation10 + $0x10] sm:$0xff] }
  0x46   :  { %68 = vst.msk [vmem:[#allocation2 + $0x30] sm:$0xff] %vm61_vm0, %v3588_v1  ;;  %69 = vst.msk [vmem:[#allocation2 + $0x38] sm:$0xff] %vm61_vm0, %v3588_v1  ;;  %s3714_s11 = sld [smem:[#allocation6 + $0xa]]  ;;  %s3718_s13 = sld [smem:[#allocation6 + $0xb]]  ;;  %v154_v8 = vld [vmem:[#allocation10 + $0x18] sm:$0xff]  ;;  %v3728_v9 = vpack.c.bf16 %v156_v6, %v155_v4  ;;  %v157_v11 = vld [vmem:[#allocation10 + $0x30] sm:$0xff]  ;;  %3155 = vmatprep.subr.bf16.mxu0 %v3154_v5 }
  0x47   :  { %s3720_s14 = sld [smem:[#allocation6 + $0x4]]  ;;  %s3724_s16 = sld [smem:[#allocation6 + $0x5]]  ;;  %v3158_v10 = vpack.c.bf16 %v154_v8, %v153_v7  ;;  %v158_v12 = vld [vmem:[#allocation10 + $0x38] sm:$0xff]  ;;  %3157 = vmatpush3.bf16.msra.mxu0 %v3154_v5  ;;  %v3786_v38 = vld [vmem:[#allocation10 + $0x41] ss:$0 sm:$0xff]  ;;  %vm302_vm3 = vcmask 785408  }
  0x48   :  { %s3722_s15 = sld [smem:[#allocation6 + $0xc]]  ;;  %s3726_s17 = sld [smem:[#allocation6 + $0xd]]  ;;  %3164 = vmatpush3.bf16.msra.mxu1 %v3728_v9  ;;  %v3736_v17 = vpack.c.bf16 %v158_v12, %v157_v11  ;;  %v2768_v40 = vld [vmem:[#allocation10 + $0x40] ss:$0 sm:$0xff]  ;;  %vm452_vm4 = vcmask 261248   ;;  %vm448_vm5 = vcmask 130048  }
  0x49   :  { %s72_s18 = scalar_lea.vmem [#allocation7], %s3690_s0  ;;  %s78_s20 = scalar_lea.vmem [#allocation7], %s3708_s3  ;;  %3165 = vmatprep.subr.bf16.mxu1 %v3586_v0  ;;  %3159 = vmatprep.subr.bf16.mxu0 %v3158_v10  ;;  %vm2719_vm6 = vcmask 254976  }
  0x4a   :  { %v73_v13 = vld [vmem:[%s72_s18] sm:$0x1]  ;;  %s113_s19 = scalar_lea.vmem [#allocation7], %s3692_s8  ;;  %s118_s21 = scalar_lea.vmem [#allocation7], %s3710_s9 }
  0x4b   :  { %75 = vst.msk [vmem:[#allocation2] sm:$0x1] %vm74_vm2, %v73_v13  ;;  %v114_v14 = vld [vmem:[%s113_s19] sm:$0x1]  ;;  %s83_s2 = scalar_lea.vmem [#allocation7], %s3712_s10  ;;  %s88_s23 = scalar_lea.vmem [#allocation7], %s3716_s12  ;;  %3161 = vmatpush3.bf16.msra.mxu0 %v3158_v10 }
  0x4c   :  { %v79_v15 = vld [vmem:[%s78_s20] sm:$0x1]  ;;  %115 = vst.msk [vmem:[#allocation2 + $0x1] sm:$0x1] %vm74_vm2, %v114_v14  ;;  %s123_s22 = scalar_lea.vmem [#allocation7], %s3714_s11  ;;  %s128_s24 = scalar_lea.vmem [#allocation7], %s3718_s13  ;;  %3167 = vmatpush3.bf16.msra.mxu1 %v3736_v17  ;;  %3174 = vmatprep.subr.bf16.mxu0 %v3586_v0 }
  0x4d   :  { %v119_v16 = vld [vmem:[%s118_s21] sm:$0x1]  ;;  %80 = vst.msk [vmem:[#allocation2 + $0x8] sm:$0x1] %vm74_vm2, %v79_v15  ;;  %s93_s25 = scalar_lea.vmem [#allocation7], %s3720_s14  ;;  %s98_s27 = scalar_lea.vmem [#allocation7], %s3724_s16  ;;  %3168 = vmatprep.subr.bf16.mxu1 %v3586_v0 }
  0x4e   :  { %120 = vst.msk [vmem:[#allocation2 + $0x9] sm:$0x1] %vm74_vm2, %v119_v16  ;;  %v84_v18 = vld [vmem:[%s83_s2] sm:$0x1]  ;;  %s133_s26 = scalar_lea.vmem [#allocation7], %s3722_s15  ;;  %s138_s29 = scalar_lea.vmem [#allocation7], %s3726_s17 }
  0x4f   :  { %v124_v19 = vld [vmem:[%s123_s22] sm:$0x1]  ;;  %85 = vst.msk [vmem:[#allocation2 + $0x10] sm:$0x1] %vm74_vm2, %v84_v18  ;;  %s2758_s30 = sld [smem:[#allocation6 + $0x6]]  ;;  %s2759_s6 = sld [smem:[#allocation6 + $0x7]]  ;;  %2967 = vmatmul.mubr.f32.vlgmr.msra.gmra.mrb[0].mxu1 %v3588_v1 }
  0x50   :  { %125 = vst.msk [vmem:[#allocation2 + $0x11] sm:$0x1] %vm74_vm2, %v124_v19  ;;  %v89_v20 = vld [vmem:[%s88_s23] sm:$0x1]  ;;  %s2766_s5 = sld [smem:[#allocation6 + $0xe]]  ;;  %s2767_s7 = sld [smem:[#allocation6 + $0xf]]  ;;  %3170 = vmatpush3.bf16.msra.mxu1 %v3728_v9  ;;  %2977 = vmatprep.mubr.msk.f32.mxu1 %vm3587_vm1, %v3588_v1 }
  0x51   :  { %v129_v21 = vld [vmem:[%s128_s24] sm:$0x1]  ;;  %90 = vst.msk [vmem:[#allocation2 + $0x18] sm:$0x1] %vm74_vm2, %v89_v20  ;;  %3171 = vmatprep.subr.bf16.mxu1 %v3586_v0  ;;  %s3589_s3 = smov 96   ;;  %s3590_s9 = smov 32  }
  0x52   :  { %130 = vst.msk [vmem:[#allocation2 + $0x19] sm:$0x1] %vm74_vm2, %v129_v21  ;;  %v94_v22 = vld [vmem:[%s93_s25] sm:$0x1]  ;;  %s3591_s10 = smov 112   ;;  %s3592_s11 = smov 80  }
  0x53   :  { %v134_v23 = vld [vmem:[%s133_s26] sm:$0x1]  ;;  %95 = vst.msk [vmem:[#allocation2 + $0x20] sm:$0x1] %vm74_vm2, %v94_v22  ;;  %s3593_s12 = smov 16   ;;  %s3594_s13 = smov 48  }
  0x54   :  { %135 = vst.msk [vmem:[#allocation2 + $0x21] sm:$0x1] %vm74_vm2, %v134_v23  ;;  %v99_v24 = vld [vmem:[%s98_s27] sm:$0x1]  ;;  %3173 = vmatpush3.bf16.msra.mxu1 %v3736_v17  ;;  %s3595_s14 = smov [#allocation13]  }
  0x55   :  { %v139_v25 = vld [vmem:[%s138_s29] sm:$0x1]  ;;  %100 = vst.msk [vmem:[#allocation2 + $0x28] sm:$0x1] %vm74_vm2, %v99_v24  ;;  %v162_v27 = vld [vmem:[#allocation2 + $0x8] sm:$0xff]  ;;  %s103_s1 = scalar_lea.vmem [#allocation7], %s2758_s30  ;;  %3180 = vmatprep.subr.bf16.mxu1 %v3586_v0 }
  0x56   :  { %140 = vst.msk [vmem:[#allocation2 + $0x29] sm:$0x1] %vm74_vm2, %v139_v25  ;;  %v161_v26 = vld [vmem:[#allocation2] sm:$0xff]  ;;  %s143_s28 = scalar_lea.vmem [#allocation7], %s2766_s5  ;;  %s108_s0 = scalar_lea.vmem [#allocation7], %s2759_s6 }
  0x57   :  { %2946 = vmatprep.mubr.msk.f32.mxu0 %vm61_vm0, %v161_v26  ;;  %v163_v28 = vld [vmem:[#allocation2 + $0x10] sm:$0xff]  ;;  %v104_v30 = vld [vmem:[%s103_s1] sm:$0x1]  ;;  %s148_s8 = scalar_lea.vmem [#allocation7], %s2767_s7  ;;  %s2727_s15 = sshll.u32 %s3595_s14, 4  ;;  %s2728_s15 = int_to_ptr.vmem [resolvable:$true] %s2727_s15 }
  0x58   :  { %2947 = vmatmul.mubr.msk.f32.vlgmr.msra.gmra.mrb[0].mxu0 %vm61_vm0, %v162_v27  ;;  %105 = vst.msk [vmem:[#allocation2 + $0x30] sm:$0x1] %vm74_vm2, %v104_v30  ;;  %v144_v32 = vld [vmem:[%s143_s28] sm:$0x1]  ;;  %s3550_s16 = scalar_lea.vmem %s2728_s15, 32  ;;  %p3555_p0 = scmp.lt.s32.totalorder %s2728_s15, %s2728_s15 }
  0x59   :  { %2949 = vmatprep.mubr.msk.f32.mxu0 %vm61_vm0, %v163_v28  ;;  %v164_v29 = vld [vmem:[#allocation2 + $0x18] sm:$0xff]  ;;  %v109_v33 = vld [vmem:[%s108_s0] sm:$0x1]  ;;  %3176 = vmatpush3.bf16.msra.mxu0 %v3728_v9  ;;  %145 = vst.msk [vmem:[#allocation2 + $0x31] sm:$0x1] %vm74_vm2, %v144_v32  ;;  %p3551_p13 = scmp.ne.s32.totalorder %s2728_s15, %s3550_s16  ;;  %p3556_p1 = scmp.lt.s32.totalorder %s3550_s16, %s3550_s16 }
  0x5a   :  { %110 = vst.msk [vmem:[#allocation2 + $0x38] sm:$0x1] %vm74_vm2, %v109_v33  ;;  %v149_v34 = vld [vmem:[%s148_s8] sm:$0x1]  ;;  %3177 = vmatprep.subr.bf16.mxu0 %v3586_v0 }
  0x5b   :  { %v165_v31 = vld [vmem:[#allocation2 + $0x20] sm:$0xff]  ;;  %150 = vst.msk [vmem:[#allocation2 + $0x39] sm:$0x1] %vm74_vm2, %v149_v34  ;;  %p3557_p2 = por %p3556_p1, %p3555_p0 }
  0x5c   :  { %2950 = vmatmul.mubr.msk.f32.gmra.mrb[2].mxu0 %vm61_vm0, %v164_v29 }
  0x5d   :  { %2952 = vmatprep.mubr.msk.f32.mxu0 %vm61_vm0, %v165_v31  ;;  %v166_v35 = vld [vmem:[#allocation2 + $0x28] sm:$0xff]  ;;  %3179 = vmatpush3.bf16.msra.mxu0 %v3736_v17  ;;  %p3558_p3 = pnand %p3557_p2, %p3551_p13 }
  0x5e   :  { %3186 = vmatprep.subr.bf16.mxu0 %v3586_v0 }
  0x60   :  { %2953 = vmatmul.mubr.msk.f32.gmra.mrb[4].mxu0 %vm61_vm0, %v166_v35  ;;  %v167_v36 = vld [vmem:[#allocation2 + $0x30] sm:$0xff] }
  0x61   :  { %2955 = vmatprep.mubr.msk.f32.mxu0 %vm61_vm0, %v167_v36 }
  0x62   :  { %v168_v37 = vld [vmem:[#allocation2 + $0x38] sm:$0xff] }
  0x64   :  { %2956 = vmatmul.mubr.msk.f32.gmra.mrb[6].mxu0 %vm61_vm0, %v168_v37 }
  0x65   :  { %2988 = vmatprep.mubr.msk.f32.mxu0 %vm3587_vm1, %v3588_v1 }
 0x122   :  { %v380_v39 = vpop.f32.mrb[0].mxu1 }
 0x123   :  { %v2968_v41 = vpop.f32.mrb[1].mxu1  ;;  %v405_v42 = vadd.f32 %v3786_v38, %v380_v39 }
 0x125   :  { %407 = vrot.lane.b32.xlu0 %v405_v42, %s3589_s3 }
 0x12b   :  { %v2948_v43 = vpop.f32.mrb[0].mxu0 }
 0x12c   :  { %v269_v44 = vadd.f32 %v2948_v43, %v2768_v40  ;;  %v263_v45 = vpop.f32.mrb[1].mxu0 }
 0x12d   :  { %v264_v46 = vadd.f32 %v2768_v40, %v263_v45 }
 0x12e   :  { %304 = vst.msk [vmem:[#allocation4 + $0x8] sm:$0xff] %vm302_vm3, %v269_v44 }
 0x12f   :  { %303 = vst.msk [vmem:[#allocation4] sm:$0xff] %vm302_vm3, %v264_v46  ;;  %v2951_v47 = vpop.f32.mrb[2].mxu0 }
 0x130   :  { %v279_v48 = vadd.f32 %v2951_v47, %v2768_v40  ;;  %v273_v49 = vpop.f32.mrb[3].mxu0 }
 0x131   :  { %v274_v50 = vadd.f32 %v2768_v40, %v273_v49 }
 0x132   :  { %306 = vst.msk [vmem:[#allocation4 + $0x18] sm:$0xff] %vm302_vm3, %v279_v48 }
 0x133   :  { %305 = vst.msk [vmem:[#allocation4 + $0x10] sm:$0xff] %vm302_vm3, %v274_v50  ;;  %v2954_v51 = vpop.f32.mrb[4].mxu0 }
 0x134   :  { %v289_v52 = vadd.f32 %v2954_v51, %v2768_v40  ;;  %v283_v53 = vpop.f32.mrb[5].mxu0 }
 0x135   :  { %v284_v54 = vadd.f32 %v2768_v40, %v283_v53  ;;  %v3824_v36 = vld [vmem:[#allocation4 + $0x8] sm:$0xff] }
 0x136   :  { %308 = vst.msk [vmem:[#allocation4 + $0x28] sm:$0xff] %vm302_vm3, %v289_v52  ;;  %v3798_v59 = vld [vmem:[#allocation4] sm:$0xff] }
 0x137   :  { %307 = vst.msk [vmem:[#allocation4 + $0x20] sm:$0xff] %vm302_vm3, %v284_v54  ;;  %v2957_v55 = vpop.f32.mrb[6].mxu0  ;;  %v387_v61 = vadd.f32 %v3798_v59, %v380_v39 }
 0x138   :  { %v299_v56 = vadd.f32 %v2957_v55, %v2768_v40  ;;  %v293_v57 = vpop.f32.mrb[7].mxu0 }
 0x139   :  { %v294_v58 = vadd.f32 %v2768_v40, %v293_v57  ;;  %v2777_v63 = vmul.f32 -1.442695, %v387_v61 }
 0x13a   :  { %310 = vst.msk [vmem:[#allocation4 + $0x38] sm:$0xff] %vm302_vm3, %v299_v56 }
 0x13b   :  { %309 = vst.msk [vmem:[#allocation4 + $0x30] sm:$0xff] %vm302_vm3, %v294_v58  ;;  %3282 = vpow2.f32 %v2777_v63 }
 0x141   :  { %v3800_v60 = vld [vmem:[#allocation4 + $0x38] sm:$0xff] }
 0x142   :  { %v394_v62 = vadd.f32 %v3800_v60, %v380_v39  ;;  %v3826_v37 = vld [vmem:[#allocation4 + $0x30] sm:$0xff] }
 0x144   :  { %v2778_v2 = vmul.f32 -1.442695, %v394_v62 }
 0x145   :  { %v3283_v3 = vpop.eup %3282 }
 0x146   :  { %3284 = vpow2.f32 %v2778_v2  ;;  %v391_v5 = vadd.f32 1.0, %v3283_v3 }
 0x148   :  { %3286 = vrcp.f32 %v391_v5 }
 0x150   :  { %v3285_v4 = vpop.eup %3284 }
 0x151   :  { %v398_v6 = vadd.f32 1.0, %v3285_v4 }
 0x152   :  { %v3287_v7 = vpop.eup %3286 }
 0x153   :  { %3288 = vrcp.f32 %v398_v6  ;;  %v424_v21 = vsub.f32 1.0, %v3287_v7  ;;  %v430_v26 = vmul.f32 0.0, %v3287_v7 }
 0x15d   :  { %v3289_v8 = vpop.eup %3288 }
 0x15e   :  { %v432_v20 = vsub.f32 1.0, %v3289_v8  ;;  %v438_v24 = vmul.f32 0.0, %v3289_v8 }
 0x197   :  { %v408_v10 = vpop.permute.xlu0 %407 }
 0x198   :  { %v410_v11 = vmul.f32 %v3287_v7, %v408_v10  ;;  %v417_v12 = vmul.f32 %v3289_v8, %v408_v10 }
 0x19a   :  { %419 = vrot.lane.b32.xlu1 %v417_v12, %s3590_s9  ;;  %412 = vrot.lane.b32.xlu0 %v410_v11, %s3590_s9 }
 0x20c   :  { %v420_v13 = vpop.permute.xlu1 %419  ;;  %v413_v14 = vpop.permute.xlu0 %412 }
 0x20d   :  { %v422_v15 = vadd.f32 %v420_v13, %v3800_v60  ;;  %v415_v16 = vadd.f32 %v413_v14, %v3798_v59 }
 0x20f   :  { %3290 = vtanh.f32 %v422_v15 }
 0x210   :  { %3292 = vtanh.f32 %v415_v16 }
 0x219   :  { %v3291_v18 = vpop.eup %3290 }
 0x21a   :  { %v3293_v19 = vpop.eup %3292  ;;  %434 = vrot.lane.b32.xlu0 %v3291_v18, %s3591_s10  ;;  %v3852_v18 = vld [vmem:[#allocation4 + $0x10] sm:$0xff] }
 0x21b   :  { %426 = vrot.lane.b32.xlu1 %v3293_v19, %s3591_s10  ;;  %v3854_v19 = vld [vmem:[#allocation4 + $0x28] sm:$0xff] }
 0x28c   :  { %v435_v22 = vpop.permute.xlu0 %434 }
 0x28d   :  { %v427_v23 = vpop.permute.xlu1 %426  ;;  %v437_v25 = vmul.f32 %v435_v22, %v432_v20 }
 0x28e   :  { %v429_v27 = vmul.f32 %v427_v23, %v424_v21 }
 0x28f   :  { %v439_v28 = vadd.f32 %v438_v24, %v437_v25 }
 0x290   :  { %v431_v29 = vadd.f32 %v430_v26, %v429_v27 }
 0x291   :  { %445 = vrot.lane.b32.xlu0 %v439_v28, %s3592_s11 }
 0x292   :  { %441 = vrot.lane.b32.xlu1 %v431_v29, %s3591_s10 }
 0x303   :  { %v446_v30 = vpop.permute.xlu0 %445 }
 0x304   :  { %v442_v31 = vpop.permute.xlu1 %441  ;;  %453 = vst.msk [vmem:[#allocation3 + $0x38] sm:$0xff] %vm452_vm4, %v446_v30 }
 0x305   :  { %450 = vst.msk [vmem:[#allocation3] sm:$0xff] %vm448_vm5, %v442_v31  ;;  %v449_v32 = vsel %vm448_vm5, %v442_v31, %v446_v30 }
 0x306   :  { %2978 = vmatmul.mubr.msk.f32.vlgmr.msra.gmra.mrb[2].mxu1 %vm61_vm0, %v449_v32 }
 0x307   :  { %3182 = vmatpush3.bf16.msra.mxu1 %v3728_v9  ;;  %2999 = vmatprep.mubr.msk.f32.mxu1 %vm3587_vm1, %v3588_v1 }
 0x308   :  { %3183 = vmatprep.subr.bf16.mxu1 %v3586_v0 }
 0x30b   :  { %3185 = vmatpush3.bf16.msra.mxu1 %v3736_v17 }
 0x30c   :  { %3192 = vmatprep.subr.bf16.mxu1 %v3586_v0 }
 0x3d9   :  { %v523_v33 = vpop.f32.mrb[2].mxu1 }
 0x3da   :  { %v545_v34 = vadd.f32 %v3786_v38, %v523_v33  ;;  %v2979_v35 = vpop.f32.mrb[3].mxu1  ;;  %v531_v39 = vadd.f32 %v3824_v36, %v523_v33  ;;  %v538_v40 = vadd.f32 %v3826_v37, %v523_v33 }
 0x3dc   :  { %547 = vrot.lane.b32.xlu1 %v545_v34, %s3589_s3  ;;  %v2781_v41 = vmul.f32 -1.442695, %v531_v39  ;;  %v2782_v42 = vmul.f32 -1.442695, %v538_v40 }
 0x3de   :  { %3294 = vpow2.f32 %v2781_v41 }
 0x3df   :  { %3296 = vpow2.f32 %v2782_v42 }
 0x3e8   :  { %v3295_v43 = vpop.eup %3294 }
 0x3e9   :  { %v3297_v44 = vpop.eup %3296  ;;  %v535_v45 = vadd.f32 1.0, %v3295_v43 }
 0x3ea   :  { %v542_v46 = vadd.f32 1.0, %v3297_v44 }
 0x3eb   :  { %3298 = vrcp.f32 %v535_v45 }
 0x3ec   :  { %3300 = vrcp.f32 %v542_v46 }
 0x3f5   :  { %v3299_v47 = vpop.eup %3298 }
 0x3f6   :  { %v3301_v48 = vpop.eup %3300  ;;  %v564_v61 = vsub.f32 1.0, %v3299_v47 }
 0x3f7   :  { %v575_v5 = vsub.f32 1.0, %v3301_v48 }
 0x44e   :  { %v548_v49 = vpop.permute.xlu1 %547 }
 0x44f   :  { %v550_v50 = vmul.f32 %v3299_v47, %v548_v49  ;;  %v557_v51 = vmul.f32 %v3301_v48, %v548_v49 }
 0x451   :  { %559 = vrot.lane.b32.xlu1 %v557_v51, %s3590_s9  ;;  %552 = vrot.lane.b32.xlu0 %v550_v50, %s3590_s9 }
 0x455   :  { %570 = vrot.lane.b32.xlu1 %v449_v32, %s3593_s12 }
 0x459   :  { %581 = vrot.lane.b32.xlu1 %v449_v32, %s3594_s13 }
 0x4c3   :  { %v553_v52 = vpop.permute.xlu0 %552  ;;  %v560_v53 = vpop.permute.xlu1 %559 }
 0x4c4   :  { %v555_v54 = vadd.f32 %v553_v52, %v3824_v36  ;;  %v562_v55 = vadd.f32 %v560_v53, %v3826_v37 }
 0x4c6   :  { %3302 = vtanh.f32 %v555_v54 }
 0x4c7   :  { %3304 = vtanh.f32 %v562_v55  ;;  %v571_v58 = vpop.permute.xlu1 %570 }
 0x4c8   :  { %v573_v63 = vmul.f32 %v3299_v47, %v571_v58 }
 0x4cb   :  { %v582_v3 = vpop.permute.xlu1 %581 }
 0x4cc   :  { %v584_v7 = vmul.f32 %v3301_v48, %v582_v3 }
 0x4d0   :  { %v3303_v56 = vpop.eup %3302 }
 0x4d1   :  { %566 = vrot.lane.b32.xlu0 %v3303_v56, %s3591_s10  ;;  %v3305_v57 = vpop.eup %3304 }
 0x4d5   :  { %577 = vrot.lane.b32.xlu0 %v3305_v57, %s3591_s10 }
 0x543   :  { %v567_v62 = vpop.permute.xlu0 %566 }
 0x544   :  { %v569_v2 = vmul.f32 %v567_v62, %v564_v61  ;;  %v3880_v62 = vld [vmem:[#allocation4 + $0x18] sm:$0xff] }
 0x546   :  { %v574_v4 = vadd.f32 %v573_v63, %v569_v2  ;;  %v3882_v63 = vld [vmem:[#allocation4 + $0x20] sm:$0xff] }
 0x547   :  { %v578_v6 = vpop.permute.xlu0 %577 }
 0x548   :  { %v580_v8 = vmul.f32 %v578_v6, %v575_v5  ;;  %587 = vrot.lane.b32.xlu0 %v574_v4, %s3591_s10 }
 0x54a   :  { %v585_v10 = vadd.f32 %v584_v7, %v580_v8 }
 0x54c   :  { %591 = vrot.lane.b32.xlu1 %v585_v10, %s3592_s11 }
 0x5ba   :  { %v588_v11 = vpop.permute.xlu0 %587 }
 0x5bb   :  { %596 = vst.msk [vmem:[#allocation3 + $0x8] sm:$0xff] %vm448_vm5, %v588_v11 }
 0x5be   :  { %v592_v12 = vpop.permute.xlu1 %591 }
 0x5bf   :  { %v594_v13 = vsel %vm448_vm5, %v588_v11, %v592_v12  ;;  %598 = vst.msk [vmem:[#allocation3 + $0x30] sm:$0xff] %vm452_vm4, %v592_v12 }
 0x5c0   :  { %2989 = vmatmul.mubr.msk.f32.vlgmr.msra.gmra.mrb[8].mxu0 %vm61_vm0, %v594_v13 }
 0x5c1   :  { %3188 = vmatpush3.bf16.msra.mxu0 %v3728_v9  ;;  %3010 = vmatprep.mubr.msk.f32.mxu0 %vm3587_vm1, %v3588_v1 }
 0x5c2   :  { %3189 = vmatprep.subr.bf16.mxu0 %v3586_v0 }
 0x5c5   :  { %3191 = vmatpush3.bf16.msra.mxu0 %v3736_v17 }
 0x5c6   :  { %3198 = vmatprep.subr.bf16.mxu0 %v3586_v0 }
 0x693   :  { %v668_v14 = vpop.f32.mrb[8].mxu0 }
 0x694   :  { %v690_v15 = vadd.f32 %v3786_v38, %v668_v14  ;;  %v2990_v16 = vpop.f32.mrb[9].mxu0  ;;  %v676_v20 = vadd.f32 %v3852_v18, %v668_v14  ;;  %v683_v21 = vadd.f32 %v3854_v19, %v668_v14 }
 0x696   :  { %692 = vrot.lane.b32.xlu0 %v690_v15, %s3589_s3  ;;  %v2784_v22 = vmul.f32 -1.442695, %v676_v20  ;;  %v2785_v23 = vmul.f32 -1.442695, %v683_v21 }
 0x698   :  { %3306 = vpow2.f32 %v2784_v22 }
 0x699   :  { %3308 = vpow2.f32 %v2785_v23 }
 0x6a2   :  { %v3307_v24 = vpop.eup %3306 }
 0x6a3   :  { %v3309_v25 = vpop.eup %3308  ;;  %v680_v26 = vadd.f32 1.0, %v3307_v24 }
 0x6a4   :  { %v687_v27 = vadd.f32 1.0, %v3309_v25 }
 0x6a5   :  { %3310 = vrcp.f32 %v680_v26 }
 0x6a6   :  { %3312 = vrcp.f32 %v687_v27 }
 0x6af   :  { %v3311_v28 = vpop.eup %3310 }
 0x6b0   :  { %v3313_v29 = vpop.eup %3312  ;;  %v709_v43 = vsub.f32 1.0, %v3311_v28 }
 0x6b1   :  { %v720_v49 = vsub.f32 1.0, %v3313_v29 }
 0x708   :  { %v693_v30 = vpop.permute.xlu0 %692 }
 0x709   :  { %v695_v31 = vmul.f32 %v3311_v28, %v693_v30  ;;  %v702_v32 = vmul.f32 %v3313_v29, %v693_v30 }
 0x70b   :  { %704 = vrot.lane.b32.xlu0 %v702_v32, %s3590_s9  ;;  %697 = vrot.lane.b32.xlu1 %v695_v31, %s3590_s9 }
 0x70f   :  { %715 = vrot.lane.b32.xlu0 %v594_v13, %s3593_s12 }
 0x713   :  { %726 = vrot.lane.b32.xlu0 %v594_v13, %s3594_s13 }
 0x77d   :  { %v698_v33 = vpop.permute.xlu1 %697  ;;  %v705_v34 = vpop.permute.xlu0 %704 }
 0x77e   :  { %v700_v35 = vadd.f32 %v698_v33, %v3852_v18  ;;  %v707_v39 = vadd.f32 %v705_v34, %v3854_v19 }
 0x780   :  { %3314 = vtanh.f32 %v700_v35 }
 0x781   :  { %3316 = vtanh.f32 %v707_v39  ;;  %v716_v42 = vpop.permute.xlu0 %715 }
 0x782   :  { %v718_v45 = vmul.f32 %v3311_v28, %v716_v42 }
 0x785   :  { %v727_v47 = vpop.permute.xlu0 %726 }
 0x786   :  { %v729_v51 = vmul.f32 %v3313_v29, %v727_v47 }
 0x78a   :  { %v3315_v40 = vpop.eup %3314 }
 0x78b   :  { %711 = vrot.lane.b32.xlu1 %v3315_v40, %s3591_s10  ;;  %v3317_v41 = vpop.eup %3316 }
 0x78f   :  { %722 = vrot.lane.b32.xlu1 %v3317_v41, %s3591_s10 }
 0x7fd   :  { %v712_v44 = vpop.permute.xlu1 %711 }
 0x7fe   :  { %v714_v46 = vmul.f32 %v712_v44, %v709_v43 }
 0x800   :  { %v719_v48 = vadd.f32 %v718_v45, %v714_v46 }
 0x801   :  { %v723_v50 = vpop.permute.xlu1 %722 }
 0x802   :  { %v725_v52 = vmul.f32 %v723_v50, %v720_v49  ;;  %732 = vrot.lane.b32.xlu1 %v719_v48, %s3591_s10 }
 0x804   :  { %v730_v53 = vadd.f32 %v729_v51, %v725_v52 }
 0x806   :  { %736 = vrot.lane.b32.xlu0 %v730_v53, %s3592_s11 }
 0x874   :  { %v733_v54 = vpop.permute.xlu1 %732 }
 0x875   :  { %741 = vst.msk [vmem:[#allocation3 + $0x10] sm:$0xff] %vm448_vm5, %v733_v54 }
 0x878   :  { %v737_v55 = vpop.permute.xlu0 %736 }
 0x879   :  { %v739_v56 = vsel %vm448_vm5, %v733_v54, %v737_v55  ;;  %743 = vst.msk [vmem:[#allocation3 + $0x28] sm:$0xff] %vm452_vm4, %v737_v55 }
 0x87a   :  { %3000 = vmatmul.mubr.msk.f32.vlgmr.msra.gmra.mrb[4].mxu1 %vm61_vm0, %v739_v56 }
 0x87b   :  { %3194 = vmatpush3.bf16.msra.mxu1 %v3728_v9  ;;  %3021 = vmatprep.mubr.msk.f32.mxu1 %vm3587_vm1, %v3588_v1 }
 0x87c   :  { %3195 = vmatprep.subr.bf16.mxu1 %v3586_v0 }
 0x87f   :  { %3197 = vmatpush3.bf16.msra.mxu1 %v3736_v17 }
 0x880   :  { %3204 = vmatprep.subr.bf16.mxu1 %v3586_v0 }
 0x94d   :  { %v813_v57 = vpop.f32.mrb[4].mxu1 }
 0x94e   :  { %v835_v58 = vadd.f32 %v3786_v38, %v813_v57  ;;  %v3001_v61 = vpop.f32.mrb[5].mxu1  ;;  %v821_v2 = vadd.f32 %v3880_v62, %v813_v57  ;;  %v828_v3 = vadd.f32 %v3882_v63, %v813_v57 }
 0x950   :  { %837 = vrot.lane.b32.xlu1 %v835_v58, %s3589_s3  ;;  %v2787_v4 = vmul.f32 -1.442695, %v821_v2  ;;  %v2788_v5 = vmul.f32 -1.442695, %v828_v3 }
 0x952   :  { %3318 = vpow2.f32 %v2787_v4 }
 0x953   :  { %3320 = vpow2.f32 %v2788_v5 }
 0x95c   :  { %v3319_v6 = vpop.eup %3318 }
 0x95d   :  { %v3321_v7 = vpop.eup %3320  ;;  %v825_v8 = vadd.f32 1.0, %v3319_v6 }
 0x95e   :  { %v832_v10 = vadd.f32 1.0, %v3321_v7 }
 0x95f   :  { %3322 = vrcp.f32 %v825_v8 }
 0x960   :  { %3324 = vrcp.f32 %v832_v10 }
 0x969   :  { %v3323_v11 = vpop.eup %3322 }
 0x96a   :  { %v3325_v12 = vpop.eup %3324  ;;  %v854_v26 = vsub.f32 1.0, %v3323_v11 }
 0x96b   :  { %v865_v32 = vsub.f32 1.0, %v3325_v12 }
 0x9c2   :  { %v838_v13 = vpop.permute.xlu1 %837 }
 0x9c3   :  { %v840_v14 = vmul.f32 %v3323_v11, %v838_v13  ;;  %v847_v15 = vmul.f32 %v3325_v12, %v838_v13 }
 0x9c5   :  { %849 = vrot.lane.b32.xlu1 %v847_v15, %s3590_s9  ;;  %842 = vrot.lane.b32.xlu0 %v840_v14, %s3590_s9 }
 0x9c9   :  { %860 = vrot.lane.b32.xlu1 %v739_v56, %s3593_s12 }
 0x9cd   :  { %871 = vrot.lane.b32.xlu1 %v739_v56, %s3594_s13 }
 0xa37   :  { %v843_v16 = vpop.permute.xlu0 %842  ;;  %v850_v20 = vpop.permute.xlu1 %849 }
 0xa38   :  { %v845_v21 = vadd.f32 %v843_v16, %v3880_v62  ;;  %v852_v22 = vadd.f32 %v850_v20, %v3882_v63 }
 0xa3a   :  { %3326 = vtanh.f32 %v845_v21 }
 0xa3b   :  { %3328 = vtanh.f32 %v852_v22  ;;  %v861_v25 = vpop.permute.xlu1 %860 }
 0xa3c   :  { %v863_v28 = vmul.f32 %v3323_v11, %v861_v25 }
 0xa3f   :  { %v872_v30 = vpop.permute.xlu1 %871 }
 0xa40   :  { %v874_v34 = vmul.f32 %v3325_v12, %v872_v30 }
 0xa44   :  { %v3327_v23 = vpop.eup %3326 }
 0xa45   :  { %856 = vrot.lane.b32.xlu0 %v3327_v23, %s3591_s10  ;;  %v3329_v24 = vpop.eup %3328 }
 0xa49   :  { %867 = vrot.lane.b32.xlu0 %v3329_v24, %s3591_s10 }
 0xab7   :  { %v857_v27 = vpop.permute.xlu0 %856 }
 0xab8   :  { %v859_v29 = vmul.f32 %v857_v27, %v854_v26 }
 0xaba   :  { %v864_v31 = vadd.f32 %v863_v28, %v859_v29 }
 0xabb   :  { %v868_v33 = vpop.permute.xlu0 %867 }
 0xabc   :  { %v870_v35 = vmul.f32 %v868_v33, %v865_v32  ;;  %877 = vrot.lane.b32.xlu0 %v864_v31, %s3591_s10 }
 0xabe   :  { %v875_v39 = vadd.f32 %v874_v34, %v870_v35 }
 0xac0   :  { %881 = vrot.lane.b32.xlu1 %v875_v39, %s3592_s11 }
 0xb2e   :  { %v878_v40 = vpop.permute.xlu0 %877 }
 0xb2f   :  { %886 = vst.msk [vmem:[#allocation3 + $0x18] sm:$0xff] %vm448_vm5, %v878_v40 }
 0xb32   :  { %v882_v41 = vpop.permute.xlu1 %881 }
 0xb33   :  { %v884_v42 = vsel %vm448_vm5, %v878_v40, %v882_v41  ;;  %888 = vst.msk [vmem:[#allocation3 + $0x20] sm:$0xff] %vm452_vm4, %v882_v41 }
 0xb34   :  { %3011 = vmatmul.mubr.msk.f32.vlgmr.msra.gmra.mrb[10].mxu0 %vm61_vm0, %v884_v42 }
 0xb35   :  { %3200 = vmatpush3.bf16.msra.mxu0 %v3728_v9  ;;  %3032 = vmatprep.mubr.msk.f32.mxu0 %vm3587_vm1, %v3588_v1 }
 0xb36   :  { %3201 = vmatprep.subr.bf16.mxu0 %v3586_v0 }
 0xb39   :  { %3203 = vmatpush3.bf16.msra.mxu0 %v3736_v17 }
 0xc07   :  { %v958_v43 = vpop.f32.mrb[10].mxu0 }
 0xc08   :  { %v978_v44 = vadd.f32 %v3786_v38, %v958_v43  ;;  %v3012_v45 = vpop.f32.mrb[11].mxu0  ;;  %v964_v46 = vadd.f32 %v958_v43, %v3882_v63  ;;  %v971_v47 = vadd.f32 %v958_v43, %v3880_v62 }
 0xc0a   :  { %980 = vrot.lane.b32.xlu0 %v978_v44, %s3589_s3  ;;  %v2790_v48 = vmul.f32 -1.442695, %v964_v46  ;;  %v2791_v49 = vmul.f32 -1.442695, %v971_v47 }
 0xc0c   :  { %3330 = vpow2.f32 %v2790_v48 }
 0xc0d   :  { %3332 = vpow2.f32 %v2791_v49 }
 0xc16   :  { %v3331_v50 = vpop.eup %3330 }
 0xc17   :  { %v3333_v51 = vpop.eup %3332  ;;  %v968_v52 = vadd.f32 1.0, %v3331_v50 }
 0xc18   :  { %v975_v53 = vadd.f32 1.0, %v3333_v51 }
 0xc19   :  { %3334 = vrcp.f32 %v968_v52 }
 0xc1a   :  { %3336 = vrcp.f32 %v975_v53 }
 0xc23   :  { %v3335_v54 = vpop.eup %3334 }
 0xc24   :  { %v3337_v55 = vpop.eup %3336  ;;  %v997_v8 = vsub.f32 1.0, %v3335_v54 }
 0xc25   :  { %v1008_v15 = vsub.f32 1.0, %v3337_v55 }
 0xc7c   :  { %v981_v56 = vpop.permute.xlu0 %980 }
 0xc7d   :  { %v983_v57 = vmul.f32 %v3335_v54, %v981_v56  ;;  %v990_v58 = vmul.f32 %v3337_v55, %v981_v56 }
 0xc7f   :  { %992 = vrot.lane.b32.xlu0 %v990_v58, %s3590_s9  ;;  %985 = vrot.lane.b32.xlu1 %v983_v57, %s3590_s9 }
 0xc83   :  { %1003 = vrot.lane.b32.xlu0 %v884_v42, %s3593_s12 }
 0xc87   :  { %1014 = vrot.lane.b32.xlu0 %v884_v42, %s3594_s13 }
 0xcf1   :  { %v986_v61 = vpop.permute.xlu1 %985  ;;  %v993_v2 = vpop.permute.xlu0 %992 }
 0xcf2   :  { %v988_v3 = vadd.f32 %v986_v61, %v3882_v63  ;;  %v995_v4 = vadd.f32 %v993_v2, %v3880_v62 }
 0xcf4   :  { %3338 = vtanh.f32 %v988_v3 }
 0xcf5   :  { %3340 = vtanh.f32 %v995_v4  ;;  %v1004_v7 = vpop.permute.xlu0 %1003 }
 0xcf6   :  { %v1006_v11 = vmul.f32 %v3335_v54, %v1004_v7 }
 0xcf9   :  { %v1015_v13 = vpop.permute.xlu0 %1014 }
 0xcfa   :  { %v1017_v63 = vmul.f32 %v3337_v55, %v1015_v13 }
 0xcfe   :  { %v3339_v5 = vpop.eup %3338 }
 0xcff   :  { %999 = vrot.lane.b32.xlu1 %v3339_v5, %s3591_s10  ;;  %v3341_v6 = vpop.eup %3340 }
 0xd03   :  { %1010 = vrot.lane.b32.xlu1 %v3341_v6, %s3591_s10 }
 0xd71   :  { %v1000_v10 = vpop.permute.xlu1 %999 }
 0xd72   :  { %v1002_v12 = vmul.f32 %v1000_v10, %v997_v8 }
 0xd74   :  { %v1007_v14 = vadd.f32 %v1006_v11, %v1002_v12 }
 0xd75   :  { %v1011_v16 = vpop.permute.xlu1 %1010 }
 0xd76   :  { %v1013_v20 = vmul.f32 %v1011_v16, %v1008_v15  ;;  %1020 = vrot.lane.b32.xlu1 %v1007_v14, %s3591_s10 }
 0xd78   :  { %v1018_v62 = vadd.f32 %v1017_v63, %v1013_v20 }
 0xd7a   :  { %1024 = vrot.lane.b32.xlu0 %v1018_v62, %s3592_s11 }
 0xde8   :  { %v1021_v21 = vpop.permute.xlu1 %1020 }
 0xde9   :  { %1028 = vst.msk [vmem:[#allocation3 + $0x20] sm:$0xff] %vm448_vm5, %v1021_v21 }
 0xdec   :  { %v1025_v22 = vpop.permute.xlu0 %1024 }
 0xded   :  { %v1027_v23 = vsel %vm448_vm5, %v1021_v21, %v1025_v22  ;;  %1029 = vst.msk [vmem:[#allocation3 + $0x18] sm:$0xff] %vm452_vm4, %v1025_v22 }
 0xdee   :  { %3022 = vmatmul.mubr.msk.f32.vlgmr.msra.gmra.mrb[6].mxu1 %vm61_vm0, %v1027_v23 }
 0xdef   :  { %3206 = vmatpush3.bf16.msra.mxu1 %v3728_v9  ;;  %3043 = vmatprep.mubr.msk.f32.mxu1 %vm3587_vm1, %v3588_v1 }
 0xdf0   :  { %3207 = vmatprep.subr.bf16.mxu1 %v3586_v0 }
 0xdf3   :  { %3209 = vmatpush3.bf16.msra.mxu1 %v3736_v17 }
 0xdf4   :  { %3218 = vmatprep.subr.bf16.mxu1 %v3586_v0 }
 0xec1   :  { %v1099_v24 = vpop.f32.mrb[6].mxu1 }
 0xec2   :  { %v1119_v25 = vadd.f32 %v3786_v38, %v1099_v24  ;;  %v3023_v26 = vpop.f32.mrb[7].mxu1  ;;  %v1105_v27 = vadd.f32 %v1099_v24, %v3854_v19  ;;  %v1112_v28 = vadd.f32 %v1099_v24, %v3852_v18 }
 0xec4   :  { %1121 = vrot.lane.b32.xlu1 %v1119_v25, %s3589_s3  ;;  %v2793_v9 = vmul.f32 -1.442695, %v1105_v27  ;;  %v2794_v29 = vmul.f32 -1.442695, %v1112_v28 }
 0xec6   :  { %3342 = vpow2.f32 %v2793_v9 }
 0xec7   :  { %3344 = vpow2.f32 %v2794_v29 }
 0xed0   :  { %v3343_v30 = vpop.eup %3342 }
 0xed1   :  { %v3345_v31 = vpop.eup %3344  ;;  %v1109_v32 = vadd.f32 1.0, %v3343_v30 }
 0xed2   :  { %v1116_v17 = vadd.f32 1.0, %v3345_v31 }
 0xed3   :  { %3346 = vrcp.f32 %v1109_v32 }
 0xed4   :  { %3348 = vrcp.f32 %v1116_v17 }
 0xedd   :  { %v3347_v33 = vpop.eup %3346 }
 0xede   :  { %v3349_v34 = vpop.eup %3348  ;;  %v1138_v48 = vsub.f32 1.0, %v3347_v33 }
 0xedf   :  { %v1149_v54 = vsub.f32 1.0, %v3349_v34 }
 0xf36   :  { %v1122_v35 = vpop.permute.xlu1 %1121 }
 0xf37   :  { %v1124_v39 = vmul.f32 %v3347_v33, %v1122_v35  ;;  %v1131_v40 = vmul.f32 %v3349_v34, %v1122_v35 }
 0xf39   :  { %1133 = vrot.lane.b32.xlu1 %v1131_v40, %s3590_s9  ;;  %1126 = vrot.lane.b32.xlu0 %v1124_v39, %s3590_s9 }
 0xf3d   :  { %1144 = vrot.lane.b32.xlu1 %v1027_v23, %s3593_s12 }
 0xf41   :  { %1155 = vrot.lane.b32.xlu1 %v1027_v23, %s3594_s13 }
 0xfab   :  { %v1127_v41 = vpop.permute.xlu0 %1126  ;;  %v1134_v42 = vpop.permute.xlu1 %1133 }
 0xfac   :  { %v1129_v43 = vadd.f32 %v1127_v41, %v3854_v19  ;;  %v1136_v44 = vadd.f32 %v1134_v42, %v3852_v18 }
 0xfae   :  { %3350 = vtanh.f32 %v1129_v43 }
 0xfaf   :  { %3352 = vtanh.f32 %v1136_v44  ;;  %v1145_v47 = vpop.permute.xlu1 %1144 }
 0xfb0   :  { %v1147_v50 = vmul.f32 %v3347_v33, %v1145_v47 }
 0xfb3   :  { %v1156_v52 = vpop.permute.xlu1 %1155 }
 0xfb4   :  { %v1158_v19 = vmul.f32 %v3349_v34, %v1156_v52 }
 0xfb8   :  { %v3351_v45 = vpop.eup %3350 }
 0xfb9   :  { %1140 = vrot.lane.b32.xlu0 %v3351_v45, %s3591_s10  ;;  %v3353_v46 = vpop.eup %3352 }
 0xfbd   :  { %1151 = vrot.lane.b32.xlu0 %v3353_v46, %s3591_s10 }
0x102b   :  { %v1141_v49 = vpop.permute.xlu0 %1140 }
0x102c   :  { %v1143_v51 = vmul.f32 %v1141_v49, %v1138_v48 }
0x102e   :  { %v1148_v53 = vadd.f32 %v1147_v50, %v1143_v51 }
0x102f   :  { %v1152_v55 = vpop.permute.xlu0 %1151 }
0x1030   :  { %v1154_v56 = vmul.f32 %v1152_v55, %v1149_v54  ;;  %1161 = vrot.lane.b32.xlu0 %v1148_v53, %s3591_s10 }
0x1032   :  { %v1159_v18 = vadd.f32 %v1158_v19, %v1154_v56 }
0x1034   :  { %1165 = vrot.lane.b32.xlu1 %v1159_v18, %s3592_s11 }
0x10a2   :  { %v1162_v57 = vpop.permute.xlu0 %1161 }
0x10a3   :  { %1169 = vst.msk [vmem:[#allocation3 + $0x28] sm:$0xff] %vm448_vm5, %v1162_v57 }
0x10a6   :  { %v1166_v58 = vpop.permute.xlu1 %1165 }
0x10a7   :  { %v1168_v61 = vsel %vm448_vm5, %v1162_v57, %v1166_v58  ;;  %1170 = vst.msk [vmem:[#allocation3 + $0x10] sm:$0xff] %vm452_vm4, %v1166_v58  ;;  %v1456_v57 = vld [vmem:[#allocation12 + $0x20] sm:$0xff]  ;;  %v1457_v58 = vld [vmem:[#allocation12 + $0x28] sm:$0xff] }
0x10a8   :  { %3033 = vmatmul.mubr.msk.f32.vlgmr.msra.gmra.mrb[12].mxu0 %vm61_vm0, %v1168_v61 }
0x117b   :  { %v1240_v2 = vpop.f32.mrb[12].mxu0 }
0x117c   :  { %v1260_v3 = vadd.f32 %v3786_v38, %v1240_v2  ;;  %v3034_v4 = vpop.f32.mrb[13].mxu0  ;;  %v1246_v5 = vadd.f32 %v1240_v2, %v3826_v37  ;;  %v1253_v6 = vadd.f32 %v1240_v2, %v3824_v36  ;;  %v3977_v2 = vpack.c.bf16 %v1457_v58, %v1456_v57 }
0x117e   :  { %1262 = vrot.lane.b32.xlu0 %v1260_v3, %s3589_s3  ;;  %v2796_v7 = vmul.f32 -1.442695, %v1246_v5  ;;  %v2797_v8 = vmul.f32 -1.442695, %v1253_v6  ;;  %v1459_v3 = vld [vmem:[#allocation12 + $0x38] sm:$0xff]  ;;  %v1453_v6 = vld [vmem:[#allocation12 + $0x8] sm:$0xff] }
0x1180   :  { %3354 = vpow2.f32 %v2796_v7 }
0x1181   :  { %3356 = vpow2.f32 %v2797_v8  ;;  %v1454_v8 = vld [vmem:[#allocation12 + $0x10] sm:$0xff] }
0x118a   :  { %v3355_v10 = vpop.eup %3354 }
0x118b   :  { %v3357_v11 = vpop.eup %3356  ;;  %v1250_v12 = vadd.f32 1.0, %v3355_v10  ;;  %v1455_v10 = vld [vmem:[#allocation12 + $0x18] sm:$0xff] }
0x118c   :  { %v1257_v13 = vadd.f32 1.0, %v3357_v11 }
0x118d   :  { %3358 = vrcp.f32 %v1250_v12  ;;  %v3214_v12 = vpack.c.bf16 %v1455_v10, %v1454_v8 }
0x118e   :  { %3360 = vrcp.f32 %v1257_v13 }
0x1197   :  { %v3359_v14 = vpop.eup %3358 }
0x1198   :  { %v3361_v15 = vpop.eup %3360  ;;  %v1279_v27 = vsub.f32 1.0, %v3359_v14 }
0x1199   :  { %v1290_v32 = vsub.f32 1.0, %v3361_v15 }
0x11f0   :  { %v1263_v16 = vpop.permute.xlu0 %1262 }
0x11f1   :  { %v1265_v63 = vmul.f32 %v3359_v14, %v1263_v16  ;;  %v1272_v20 = vmul.f32 %v3361_v15, %v1263_v16 }
0x11f3   :  { %1274 = vrot.lane.b32.xlu0 %v1272_v20, %s3590_s9  ;;  %1267 = vrot.lane.b32.xlu1 %v1265_v63, %s3590_s9 }
0x11f7   :  { %1285 = vrot.lane.b32.xlu0 %v1168_v61, %s3593_s12 }
0x11fb   :  { %1296 = vrot.lane.b32.xlu0 %v1168_v61, %s3594_s13  ;;  %v1458_v61 = vld [vmem:[#allocation12 + $0x30] sm:$0xff] }
0x11fc   :  { %v3980_v4 = vpack.c.bf16 %v1459_v3, %v1458_v61 }
0x1265   :  { %v1268_v62 = vpop.permute.xlu1 %1267  ;;  %v1275_v21 = vpop.permute.xlu0 %1274 }
0x1266   :  { %v1270_v22 = vadd.f32 %v1268_v62, %v3826_v37  ;;  %v1277_v23 = vadd.f32 %v1275_v21, %v3824_v36 }
0x1268   :  { %3362 = vtanh.f32 %v1270_v22 }
0x1269   :  { %3364 = vtanh.f32 %v1277_v23  ;;  %v1286_v26 = vpop.permute.xlu0 %1285 }
0x126a   :  { %v1288_v9 = vmul.f32 %v3359_v14, %v1286_v26 }
0x126d   :  { %v1297_v30 = vpop.permute.xlu0 %1296 }
0x126e   :  { %v1299_v37 = vmul.f32 %v3361_v15, %v1297_v30 }
0x1272   :  { %v3363_v24 = vpop.eup %3362 }
0x1273   :  { %1281 = vrot.lane.b32.xlu1 %v3363_v24, %s3591_s10  ;;  %v3365_v25 = vpop.eup %3364 }
0x1277   :  { %1292 = vrot.lane.b32.xlu1 %v3365_v25, %s3591_s10  ;;  %v3997_v25 = vld [vmem:[#allocation12 + $0x41] ss:$0 sm:$0xff] }
0x12e5   :  { %v1282_v28 = vpop.permute.xlu1 %1281 }
0x12e6   :  { %v1284_v29 = vmul.f32 %v1282_v28, %v1279_v27 }
0x12e8   :  { %v1289_v31 = vadd.f32 %v1288_v9, %v1284_v29 }
0x12e9   :  { %v1293_v17 = vpop.permute.xlu1 %1292 }
0x12ea   :  { %v1295_v33 = vmul.f32 %v1293_v17, %v1290_v32  ;;  %1302 = vrot.lane.b32.xlu1 %v1289_v31, %s3591_s10  ;;  %v1464_v32 = vld [vmem:[#allocation3 + $0x10] sm:$0xff]  ;;  %v1465_v17 = vld [vmem:[#allocation3 + $0x18] sm:$0xff] }
0x12ec   :  { %v1300_v36 = vadd.f32 %v1299_v37, %v1295_v33  ;;  %v1466_v37 = vld [vmem:[#allocation3 + $0x20] sm:$0xff]  ;;  %v1467_v33 = vld [vmem:[#allocation3 + $0x28] sm:$0xff] }
0x12ee   :  { %1306 = vrot.lane.b32.xlu0 %v1300_v36, %s3592_s11 }
0x135c   :  { %v1303_v34 = vpop.permute.xlu1 %1302 }
0x135d   :  { %1310 = vst.msk [vmem:[#allocation3 + $0x30] sm:$0xff] %vm448_vm5, %v1303_v34 }
0x1360   :  { %v1307_v35 = vpop.permute.xlu0 %1306 }
0x1361   :  { %v1309_v39 = vsel %vm448_vm5, %v1303_v34, %v1307_v35  ;;  %1311 = vst.msk [vmem:[#allocation3 + $0x8] sm:$0xff] %vm452_vm4, %v1307_v35  ;;  %v2801_v35 = vld [vmem:[#allocation12 + $0x40] ss:$0 sm:$0xff] }
0x1362   :  { %3044 = vmatmul.mubr.msk.f32.vlgmr.msra.gmra.mrb[8].mxu1 %vm61_vm0, %v1309_v39 }
0x1363   :  { %3074 = vmatprep.mubr.msk.f32.mxu1 %vm3587_vm1, %v3588_v1  ;;  %3220 = vmatpush3.bf16.msra.mxu1 %v3977_v2 }
0x1364   :  { %3221 = vmatprep.subr.bf16.mxu1 %v3586_v0  ;;  %v1468_v36 = vld [vmem:[#allocation3 + $0x30] sm:$0xff] }
0x1367   :  { %3223 = vmatpush3.bf16.msra.mxu1 %v3980_v4 }
0x1368   :  { %3224 = vmatprep.subr.bf16.mxu1 %v3586_v0  ;;  %v1463_v31 = vld [vmem:[#allocation3 + $0x8] sm:$0xff] }
0x136a   :  { %3075 = vmatmul.mubr.f32.vlgmr.msra.gmra.mrb[10].mxu1 %v3588_v1 }
0x136b   :  { %3226 = vmatpush3.bf16.msra.mxu1 %v3977_v2  ;;  %3085 = vmatprep.mubr.msk.f32.mxu1 %vm3587_vm1, %v3588_v1 }
0x136c   :  { %3227 = vmatprep.subr.bf16.mxu1 %v3586_v0 }
0x136f   :  { %3229 = vmatpush3.bf16.msra.mxu1 %v3980_v4 }
0x1370   :  { %3236 = vmatprep.subr.bf16.mxu1 %v3586_v0 }
0x1435   :  { %v1381_v40 = vpop.f32.mrb[8].mxu1 }
0x1436   :  { %v1401_v41 = vadd.f32 %v3786_v38, %v1381_v40  ;;  %v3045_v42 = vpop.f32.mrb[9].mxu1  ;;  %v1387_v43 = vadd.f32 %v1381_v40, %v3800_v60  ;;  %v1394_v44 = vadd.f32 %v1381_v40, %v3798_v59 }
0x1438   :  { %1403 = vrot.lane.b32.xlu1 %v1401_v41, %s3589_s3  ;;  %v2799_v45 = vmul.f32 -1.442695, %v1387_v43  ;;  %v2800_v46 = vmul.f32 -1.442695, %v1394_v44 }
0x143a   :  { %3366 = vpow2.f32 %v2799_v45 }
0x143b   :  { %3368 = vpow2.f32 %v2800_v46 }
0x143d   :  { %v1677_v26 = vpop.f32.mrb[10].mxu1 }
0x143e   :  { %v1701_v27 = vadd.f32 %v3997_v25, %v1677_v26  ;;  %v3076_v28 = vpop.f32.mrb[11].mxu1 }
0x1444   :  { %v3367_v47 = vpop.eup %3366 }
0x1445   :  { %v3369_v48 = vpop.eup %3368  ;;  %v1391_v49 = vadd.f32 1.0, %v3367_v47 }
0x1446   :  { %v1398_v50 = vadd.f32 1.0, %v3369_v48 }
0x1447   :  { %3370 = vrcp.f32 %v1391_v49 }
0x1448   :  { %3372 = vrcp.f32 %v1398_v50 }
0x1451   :  { %v3371_v51 = vpop.eup %3370 }
0x1452   :  { %v3373_v52 = vpop.eup %3372  ;;  %v1420_v62 = vsub.f32 1.0, %v3371_v51 }
0x1453   :  { %v1431_v13 = vsub.f32 1.0, %v3373_v52 }
0x14aa   :  { %v1404_v38 = vpop.permute.xlu1 %1403 }
0x14ab   :  { %v1406_v53 = vmul.f32 %v3371_v51, %v1404_v38  ;;  %v1413_v54 = vmul.f32 %v3373_v52, %v1404_v38 }
0x14ad   :  { %1415 = vrot.lane.b32.xlu0 %v1413_v54, %s3590_s9  ;;  %1408 = vrot.lane.b32.xlu1 %v1406_v53, %s3590_s9 }
0x14b1   :  { %1437 = vrot.lane.b32.xlu1 %v1309_v39, %s3594_s13 }
0x14b5   :  { %1426 = vrot.lane.b32.xlu1 %v1309_v39, %s3593_s12 }
0x151f   :  { %v1416_v55 = vpop.permute.xlu0 %1415  ;;  %v1409_v19 = vpop.permute.xlu1 %1408 }
0x1520   :  { %v1418_v56 = vadd.f32 %v1416_v55, %v3798_v59  ;;  %v1411_v18 = vadd.f32 %v1409_v19, %v3800_v60  ;;  %v1452_v60 = vld [vmem:[#allocation12] sm:$0xff] }
0x1521   :  { %v3210_v7 = vpack.c.bf16 %v1453_v6, %v1452_v60 }
0x1522   :  { %3374 = vtanh.f32 %v1418_v56 }
0x1523   :  { %3376 = vtanh.f32 %v1411_v18  ;;  %3211 = vmatprep.subr.bf16.mxu0 %v3210_v7  ;;  %v1438_v11 = vpop.permute.xlu1 %1437 }
0x1524   :  { %3213 = vmatpush3.bf16.msra.mxu0 %v3210_v7  ;;  %v1440_v15 = vmul.f32 %v3373_v52, %v1438_v11 }
0x1525   :  { %3215 = vmatprep.subr.bf16.mxu0 %v3214_v12 }
0x1527   :  { %v1427_v63 = vpop.permute.xlu1 %1426 }
0x1528   :  { %3217 = vmatpush3.bf16.msra.mxu0 %v3214_v12  ;;  %v1429_v22 = vmul.f32 %v3371_v51, %v1427_v63 }
0x1529   :  { %3230 = vmatprep.subr.bf16.mxu0 %v3586_v0 }
0x152c   :  { %v3375_v5 = vpop.eup %3374 }
0x152d   :  { %1433 = vrot.lane.b32.xlu0 %v3375_v5, %s3591_s10  ;;  %v3377_v59 = vpop.eup %3376 }
0x1531   :  { %1422 = vrot.lane.b32.xlu0 %v3377_v59, %s3591_s10 }
0x159f   :  { %v1434_v14 = vpop.permute.xlu0 %1433 }
0x15a0   :  { %v1436_v16 = vmul.f32 %v1434_v14, %v1431_v13 }
0x15a2   :  { %v1441_v20 = vadd.f32 %v1440_v15, %v1436_v16 }
0x15a3   :  { %v1423_v21 = vpop.permute.xlu0 %1422 }
0x15a4   :  { %v1425_v23 = vmul.f32 %v1423_v21, %v1420_v62  ;;  %1448 = vrot.lane.b32.xlu0 %v1441_v20, %s3592_s11 }
0x15a6   :  { %v1430_v24 = vadd.f32 %v1429_v22, %v1425_v23 }
0x15a8   :  { %1443 = vrot.lane.b32.xlu1 %v1430_v24, %s3591_s10  ;;  %1703 = vrot.lane.b32.xlu0 %v1701_v27, %s3589_s3 }
0x1616   :  { %v1449_v9 = vpop.permute.xlu0 %1448 }
0x1617   :  { %1451 = vst.msk [vmem:[#allocation3] sm:$0xff] %vm452_vm4, %v1449_v9 }
0x161a   :  { %v1444_v29 = vpop.permute.xlu1 %1443  ;;  %v1704_v5 = vpop.permute.xlu0 %1703 }
0x161b   :  { %1446 = vst.msk [vmem:[#allocation3 + $0x38] sm:$0xff] %vm448_vm5, %v1444_v29 }
0x161e   :  { %v1462_v30 = vld [vmem:[#allocation3] sm:$0xff] }
0x161f   :  { %3054 = vmatprep.mubr.msk.f32.mxu0 %vm61_vm0, %v1462_v30 }
0x1620   :  { %3055 = vmatmul.mubr.msk.f32.vlgmr.msra.gmra.mrb[14].mxu0 %vm61_vm0, %v1463_v31 }
0x1621   :  { %3057 = vmatprep.mubr.msk.f32.mxu0 %vm61_vm0, %v1464_v32  ;;  %3232 = vmatpush3.bf16.msra.mxu0 %v3977_v2 }
0x1622   :  { %3233 = vmatprep.subr.bf16.mxu0 %v3586_v0  ;;  %v1469_v34 = vld [vmem:[#allocation3 + $0x38] sm:$0xff] }
0x1624   :  { %3058 = vmatmul.mubr.msk.f32.gmra.mrb[16].mxu0 %vm61_vm0, %v1465_v17 }
0x1625   :  { %3060 = vmatprep.mubr.msk.f32.mxu0 %vm61_vm0, %v1466_v37  ;;  %3235 = vmatpush3.bf16.msra.mxu0 %v3980_v4 }
0x1626   :  { %3242 = vmatprep.subr.bf16.mxu0 %v3586_v0 }
0x1628   :  { %3061 = vmatmul.mubr.msk.f32.gmra.mrb[18].mxu0 %vm61_vm0, %v1467_v33 }
0x1629   :  { %3063 = vmatprep.mubr.msk.f32.mxu0 %vm61_vm0, %v1468_v36 }
0x162c   :  { %3064 = vmatmul.mubr.msk.f32.gmra.mrb[20].mxu0 %vm61_vm0, %v1469_v34 }
0x162d   :  { %3096 = vmatprep.mubr.msk.f32.mxu0 %vm3587_vm1, %v3588_v1 }
0x16f3   :  { %v3056_v39 = vpop.f32.mrb[14].mxu0 }
0x16f4   :  { %v1570_v40 = vadd.f32 %v3056_v39, %v2801_v35  ;;  %v1564_v41 = vpop.f32.mrb[15].mxu0 }
0x16f5   :  { %v1565_v42 = vadd.f32 %v2801_v35, %v1564_v41 }
0x16f6   :  { %1604 = vst.msk [vmem:[#allocation4 + $0x8] sm:$0xff] %vm302_vm3, %v1570_v40 }
0x16f7   :  { %1603 = vst.msk [vmem:[#allocation4] sm:$0xff] %vm302_vm3, %v1565_v42  ;;  %v3059_v43 = vpop.f32.mrb[16].mxu0 }
0x16f8   :  { %v1580_v44 = vadd.f32 %v3059_v43, %v2801_v35  ;;  %v1574_v45 = vpop.f32.mrb[17].mxu0 }
0x16f9   :  { %v1575_v46 = vadd.f32 %v2801_v35, %v1574_v45 }
0x16fa   :  { %1606 = vst.msk [vmem:[#allocation4 + $0x18] sm:$0xff] %vm302_vm3, %v1580_v44 }
0x16fb   :  { %1605 = vst.msk [vmem:[#allocation4 + $0x10] sm:$0xff] %vm302_vm3, %v1575_v46  ;;  %v3062_v47 = vpop.f32.mrb[18].mxu0 }
0x16fc   :  { %v1590_v48 = vadd.f32 %v3062_v47, %v2801_v35  ;;  %v1584_v49 = vpop.f32.mrb[19].mxu0 }
0x16fd   :  { %v1585_v50 = vadd.f32 %v2801_v35, %v1584_v49  ;;  %v4052_v17 = vld [vmem:[#allocation4 + $0x8] sm:$0xff] }
0x16fe   :  { %1608 = vst.msk [vmem:[#allocation4 + $0x28] sm:$0xff] %vm302_vm3, %v1590_v48  ;;  %v4022_v51 = vld [vmem:[#allocation4] sm:$0xff] }
0x16ff   :  { %1607 = vst.msk [vmem:[#allocation4 + $0x20] sm:$0xff] %vm302_vm3, %v1585_v50  ;;  %v3065_v52 = vpop.f32.mrb[20].mxu0  ;;  %v1683_v38 = vadd.f32 %v4022_v51, %v1677_v26 }
0x1700   :  { %v1600_v53 = vadd.f32 %v3065_v52, %v2801_v35  ;;  %v1594_v54 = vpop.f32.mrb[21].mxu0 }
0x1701   :  { %v1595_v55 = vadd.f32 %v2801_v35, %v1594_v54  ;;  %v2810_v19 = vmul.f32 -1.442695, %v1683_v38 }
0x1702   :  { %1610 = vst.msk [vmem:[#allocation4 + $0x38] sm:$0xff] %vm302_vm3, %v1600_v53 }
0x1703   :  { %1609 = vst.msk [vmem:[#allocation4 + $0x30] sm:$0xff] %vm302_vm3, %v1595_v55  ;;  %3378 = vpow2.f32 %v2810_v19 }
0x1709   :  { %v4028_v56 = vld [vmem:[#allocation4 + $0x38] sm:$0xff] }
0x170a   :  { %v1690_v18 = vadd.f32 %v4028_v56, %v1677_v26  ;;  %v4054_v37 = vld [vmem:[#allocation4 + $0x30] sm:$0xff] }
0x170c   :  { %v2811_v57 = vmul.f32 -1.442695, %v1690_v18 }
0x170d   :  { %v3379_v58 = vpop.eup %3378 }
0x170e   :  { %v1687_v61 = vadd.f32 1.0, %v3379_v58  ;;  %3380 = vpow2.f32 %v2811_v57 }
0x1710   :  { %3382 = vrcp.f32 %v1687_v61 }
0x1718   :  { %v3381_v3 = vpop.eup %3380 }
0x1719   :  { %v1694_v59 = vadd.f32 1.0, %v3381_v3 }
0x171a   :  { %v3383_v60 = vpop.eup %3382 }
0x171b   :  { %3384 = vrcp.f32 %v1694_v59  ;;  %v1706_v6 = vmul.f32 %v3383_v60, %v1704_v5  ;;  %v1720_v16 = vsub.f32 1.0, %v3383_v60  ;;  %v1726_v20 = vmul.f32 0.0, %v3383_v60 }
0x171d   :  { %1708 = vrot.lane.b32.xlu1 %v1706_v6, %s3590_s9 }
0x1725   :  { %v3385_v7 = vpop.eup %3384 }
0x1726   :  { %v1713_v8 = vmul.f32 %v3385_v7, %v1704_v5  ;;  %v1728_v22 = vsub.f32 1.0, %v3385_v7  ;;  %v1734_v24 = vmul.f32 0.0, %v3385_v7 }
0x1728   :  { %1715 = vrot.lane.b32.xlu0 %v1713_v8, %s3590_s9 }
0x178f   :  { %v1709_v10 = vpop.permute.xlu1 %1708 }
0x1790   :  { %v1711_v11 = vadd.f32 %v1709_v10, %v4022_v51 }
0x1792   :  { %3386 = vtanh.f32 %v1711_v11 }
0x179a   :  { %v1716_v12 = vpop.permute.xlu0 %1715 }
0x179b   :  { %v1718_v13 = vadd.f32 %v1716_v12, %v4028_v56 }
0x179c   :  { %v3387_v14 = vpop.eup %3386 }
0x179d   :  { %3388 = vtanh.f32 %v1718_v13  ;;  %1722 = vrot.lane.b32.xlu1 %v3387_v14, %s3591_s10  ;;  %v4083_v14 = vld [vmem:[#allocation4 + $0x10] sm:$0xff] }
0x17a7   :  { %v3389_v15 = vpop.eup %3388 }
0x17a8   :  { %1730 = vrot.lane.b32.xlu0 %v3389_v15, %s3591_s10  ;;  %v4085_v15 = vld [vmem:[#allocation4 + $0x28] sm:$0xff] }
0x180f   :  { %v1723_v63 = vpop.permute.xlu1 %1722 }
0x1810   :  { %v1725_v62 = vmul.f32 %v1723_v63, %v1720_v16 }
0x1812   :  { %v1727_v21 = vadd.f32 %v1726_v20, %v1725_v62 }
0x1814   :  { %1737 = vrot.lane.b32.xlu1 %v1727_v21, %s3591_s10 }
0x181a   :  { %v1731_v23 = vpop.permute.xlu0 %1730 }
0x181b   :  { %v1733_v26 = vmul.f32 %v1731_v23, %v1728_v22 }
0x181d   :  { %v1735_v27 = vadd.f32 %v1734_v24, %v1733_v26 }
0x181f   :  { %1741 = vrot.lane.b32.xlu0 %v1735_v27, %s3592_s11 }
0x1886   :  { %v1738_v28 = vpop.permute.xlu1 %1737 }
0x1891   :  { %v1742_v9 = vpop.permute.xlu0 %1741 }
0x1892   :  { %v4040_v29 = vsel %vm448_vm5, %v1738_v28, %v1742_v9 }
0x1893   :  { %3086 = vmatmul.mubr.msk.f32.vlgmr.msra.gmra.mrb[12].mxu1 %vm61_vm0, %v4040_v29 }
0x1894   :  { %3238 = vmatpush3.bf16.msra.mxu1 %v3977_v2  ;;  %3107 = vmatprep.mubr.msk.f32.mxu1 %vm3587_vm1, %v3588_v1 }
0x1895   :  { %3239 = vmatprep.subr.bf16.mxu1 %v3586_v0 }
0x1898   :  { %3241 = vmatpush3.bf16.msra.mxu1 %v3980_v4 }
0x1899   :  { %3248 = vmatprep.subr.bf16.mxu1 %v3586_v0 }
0x1966   :  { %v1815_v30 = vpop.f32.mrb[12].mxu1 }
0x1967   :  { %v1835_v31 = vadd.f32 %v3997_v25, %v1815_v30  ;;  %v3087_v32 = vpop.f32.mrb[13].mxu1  ;;  %v1821_v33 = vadd.f32 %v4052_v17, %v1815_v30  ;;  %v1828_v36 = vadd.f32 %v4054_v37, %v1815_v30 }
0x1969   :  { %1837 = vrot.lane.b32.xlu1 %v1835_v31, %s3589_s3  ;;  %v2814_v34 = vmul.f32 -1.442695, %v1821_v33  ;;  %v2815_v35 = vmul.f32 -1.442695, %v1828_v36 }
0x196b   :  { %3390 = vpow2.f32 %v2814_v34 }
0x196c   :  { %3392 = vpow2.f32 %v2815_v35 }
0x1975   :  { %v3391_v39 = vpop.eup %3390 }
0x1976   :  { %v3393_v40 = vpop.eup %3392  ;;  %v1825_v41 = vadd.f32 1.0, %v3391_v39 }
0x1977   :  { %v1832_v42 = vadd.f32 1.0, %v3393_v40 }
0x1978   :  { %3394 = vrcp.f32 %v1825_v41 }
0x1979   :  { %3396 = vrcp.f32 %v1832_v42 }
0x1982   :  { %v3395_v43 = vpop.eup %3394 }
0x1983   :  { %v3397_v44 = vpop.eup %3396  ;;  %v1854_v55 = vsub.f32 1.0, %v3395_v43 }
0x1984   :  { %v1865_v3 = vsub.f32 1.0, %v3397_v44 }
0x19db   :  { %v1838_v45 = vpop.permute.xlu1 %1837 }
0x19dc   :  { %v1840_v46 = vmul.f32 %v3395_v43, %v1838_v45  ;;  %v1847_v47 = vmul.f32 %v3397_v44, %v1838_v45 }
0x19de   :  { %1849 = vrot.lane.b32.xlu1 %v1847_v47, %s3590_s9  ;;  %1842 = vrot.lane.b32.xlu0 %v1840_v46, %s3590_s9 }
0x19e2   :  { %1860 = vrot.lane.b32.xlu1 %v4040_v29, %s3593_s12 }
0x19e6   :  { %1871 = vrot.lane.b32.xlu1 %v4040_v29, %s3594_s13 }
0x1a50   :  { %v1843_v48 = vpop.permute.xlu0 %1842  ;;  %v1850_v49 = vpop.permute.xlu1 %1849 }
0x1a51   :  { %v1845_v50 = vadd.f32 %v1843_v48, %v4052_v17  ;;  %v1852_v52 = vadd.f32 %v1850_v49, %v4054_v37 }
0x1a53   :  { %3398 = vtanh.f32 %v1845_v50 }
0x1a54   :  { %3400 = vtanh.f32 %v1852_v52  ;;  %v1861_v54 = vpop.permute.xlu1 %1860 }
0x1a55   :  { %v1863_v18 = vmul.f32 %v3395_v43, %v1861_v54 }
0x1a58   :  { %v1872_v58 = vpop.permute.xlu1 %1871 }
0x1a59   :  { %v1874_v59 = vmul.f32 %v3397_v44, %v1872_v58 }
0x1a5d   :  { %v3399_v38 = vpop.eup %3398 }
0x1a5e   :  { %1856 = vrot.lane.b32.xlu0 %v3399_v38, %s3591_s10  ;;  %v3401_v53 = vpop.eup %3400 }
0x1a62   :  { %1867 = vrot.lane.b32.xlu0 %v3401_v53, %s3591_s10 }
0x1ad0   :  { %v1857_v19 = vpop.permute.xlu0 %1856 }
0x1ad1   :  { %v1859_v57 = vmul.f32 %v1857_v19, %v1854_v55 }
0x1ad3   :  { %v1864_v61 = vadd.f32 %v1863_v18, %v1859_v57  ;;  %v4114_v18 = vld [vmem:[#allocation4 + $0x18] sm:$0xff]  ;;  %v4116_v57 = vld [vmem:[#allocation4 + $0x20] sm:$0xff] }
0x1ad4   :  { %v1868_v5 = vpop.permute.xlu0 %1867 }
0x1ad5   :  { %v1870_v60 = vmul.f32 %v1868_v5, %v1865_v3  ;;  %1877 = vrot.lane.b32.xlu0 %v1864_v61, %s3591_s10 }
0x1ad7   :  { %v1875_v6 = vadd.f32 %v1874_v59, %v1870_v60 }
0x1ad9   :  { %1881 = vrot.lane.b32.xlu1 %v1875_v6, %s3592_s11 }
0x1b47   :  { %v1878_v7 = vpop.permute.xlu0 %1877 }
0x1b4b   :  { %v1882_v8 = vpop.permute.xlu1 %1881 }
0x1b4c   :  { %v4071_v10 = vsel %vm448_vm5, %v1878_v7, %v1882_v8 }
0x1b4d   :  { %3097 = vmatmul.mubr.msk.f32.vlgmr.msra.gmra.mrb[22].mxu0 %vm61_vm0, %v4071_v10 }
0x1b4e   :  { %3244 = vmatpush3.bf16.msra.mxu0 %v3977_v2  ;;  %3118 = vmatprep.mubr.msk.f32.mxu0 %vm3587_vm1, %v3588_v1 }
0x1b4f   :  { %3245 = vmatprep.subr.bf16.mxu0 %v3586_v0 }
0x1b52   :  { %3247 = vmatpush3.bf16.msra.mxu0 %v3980_v4 }
0x1b53   :  { %3254 = vmatprep.subr.bf16.mxu0 %v3586_v0 }
0x1c20   :  { %v1955_v11 = vpop.f32.mrb[22].mxu0 }
0x1c21   :  { %v1975_v12 = vadd.f32 %v3997_v25, %v1955_v11  ;;  %v3098_v13 = vpop.f32.mrb[23].mxu0  ;;  %v1961_v16 = vadd.f32 %v4083_v14, %v1955_v11  ;;  %v1968_v63 = vadd.f32 %v4085_v15, %v1955_v11 }
0x1c23   :  { %1977 = vrot.lane.b32.xlu0 %v1975_v12, %s3589_s3  ;;  %v2817_v20 = vmul.f32 -1.442695, %v1961_v16  ;;  %v2818_v62 = vmul.f32 -1.442695, %v1968_v63 }
0x1c25   :  { %3402 = vpow2.f32 %v2817_v20 }
0x1c26   :  { %3404 = vpow2.f32 %v2818_v62 }
0x1c2f   :  { %v3403_v21 = vpop.eup %3402 }
0x1c30   :  { %v3405_v22 = vpop.eup %3404  ;;  %v1965_v23 = vadd.f32 1.0, %v3403_v21 }
0x1c31   :  { %v1972_v24 = vadd.f32 1.0, %v3405_v22 }
0x1c32   :  { %3406 = vrcp.f32 %v1965_v23 }
0x1c33   :  { %3408 = vrcp.f32 %v1972_v24 }
0x1c3c   :  { %v3407_v26 = vpop.eup %3406 }
0x1c3d   :  { %v3409_v27 = vpop.eup %3408  ;;  %v1994_v40 = vsub.f32 1.0, %v3407_v26 }
0x1c3e   :  { %v2005_v46 = vsub.f32 1.0, %v3409_v27 }
0x1c95   :  { %v1978_v28 = vpop.permute.xlu0 %1977 }
0x1c96   :  { %v1980_v9 = vmul.f32 %v3407_v26, %v1978_v28  ;;  %v1987_v30 = vmul.f32 %v3409_v27, %v1978_v28 }
0x1c98   :  { %1989 = vrot.lane.b32.xlu0 %v1987_v30, %s3590_s9  ;;  %1982 = vrot.lane.b32.xlu1 %v1980_v9, %s3590_s9 }
0x1c9c   :  { %2000 = vrot.lane.b32.xlu0 %v4071_v10, %s3593_s12 }
0x1ca0   :  { %2011 = vrot.lane.b32.xlu0 %v4071_v10, %s3594_s13 }
0x1d0a   :  { %v1983_v31 = vpop.permute.xlu1 %1982  ;;  %v1990_v32 = vpop.permute.xlu0 %1989 }
0x1d0b   :  { %v1985_v33 = vadd.f32 %v1983_v31, %v4083_v14  ;;  %v1992_v36 = vadd.f32 %v1990_v32, %v4085_v15 }
0x1d0d   :  { %3410 = vtanh.f32 %v1985_v33 }
0x1d0e   :  { %3412 = vtanh.f32 %v1992_v36  ;;  %v2001_v39 = vpop.permute.xlu0 %2000 }
0x1d0f   :  { %v2003_v42 = vmul.f32 %v3407_v26, %v2001_v39 }
0x1d12   :  { %v2012_v44 = vpop.permute.xlu0 %2011 }
0x1d13   :  { %v2014_v48 = vmul.f32 %v3409_v27, %v2012_v44 }
0x1d17   :  { %v3411_v34 = vpop.eup %3410 }
0x1d18   :  { %1996 = vrot.lane.b32.xlu1 %v3411_v34, %s3591_s10  ;;  %v3413_v35 = vpop.eup %3412 }
0x1d1c   :  { %2007 = vrot.lane.b32.xlu1 %v3413_v35, %s3591_s10 }
0x1d8a   :  { %v1997_v41 = vpop.permute.xlu1 %1996 }
0x1d8b   :  { %v1999_v43 = vmul.f32 %v1997_v41, %v1994_v40 }
0x1d8d   :  { %v2004_v45 = vadd.f32 %v2003_v42, %v1999_v43 }
0x1d8e   :  { %v2008_v47 = vpop.permute.xlu1 %2007 }
0x1d8f   :  { %v2010_v49 = vmul.f32 %v2008_v47, %v2005_v46  ;;  %2017 = vrot.lane.b32.xlu1 %v2004_v45, %s3591_s10 }
0x1d91   :  { %v2015_v50 = vadd.f32 %v2014_v48, %v2010_v49 }
0x1d93   :  { %2021 = vrot.lane.b32.xlu0 %v2015_v50, %s3592_s11 }
0x1e01   :  { %v2018_v52 = vpop.permute.xlu1 %2017 }
0x1e05   :  { %v2022_v38 = vpop.permute.xlu0 %2021 }
0x1e06   :  { %v4102_v53 = vsel %vm448_vm5, %v2018_v52, %v2022_v38 }
0x1e07   :  { %3108 = vmatmul.mubr.msk.f32.vlgmr.msra.gmra.mrb[14].mxu1 %vm61_vm0, %v4102_v53 }
0x1e08   :  { %3250 = vmatpush3.bf16.msra.mxu1 %v3977_v2  ;;  %3129 = vmatprep.mubr.msk.f32.mxu1 %vm3587_vm1, %v3588_v1 }
0x1e09   :  { %3251 = vmatprep.subr.bf16.mxu1 %v3586_v0 }
0x1e0c   :  { %3253 = vmatpush3.bf16.msra.mxu1 %v3980_v4 }
0x1e0d   :  { %3260 = vmatprep.subr.bf16.mxu1 %v3586_v0 }
0x1eda   :  { %v2095_v54 = vpop.f32.mrb[14].mxu1 }
0x1edb   :  { %v2115_v55 = vadd.f32 %v3997_v25, %v2095_v54  ;;  %v3109_v19 = vpop.f32.mrb[15].mxu1  ;;  %v2101_v58 = vadd.f32 %v4114_v18, %v2095_v54  ;;  %v2108_v61 = vadd.f32 %v4116_v57, %v2095_v54 }
0x1edd   :  { %2117 = vrot.lane.b32.xlu1 %v2115_v55, %s3589_s3  ;;  %v2820_v3 = vmul.f32 -1.442695, %v2101_v58  ;;  %v2821_v5 = vmul.f32 -1.442695, %v2108_v61 }
0x1edf   :  { %3414 = vpow2.f32 %v2820_v3 }
0x1ee0   :  { %3416 = vpow2.f32 %v2821_v5 }
0x1ee9   :  { %v3415_v59 = vpop.eup %3414 }
0x1eea   :  { %v3417_v60 = vpop.eup %3416  ;;  %v2105_v6 = vadd.f32 1.0, %v3415_v59 }
0x1eeb   :  { %v2112_v7 = vadd.f32 1.0, %v3417_v60 }
0x1eec   :  { %3418 = vrcp.f32 %v2105_v6 }
0x1eed   :  { %3420 = vrcp.f32 %v2112_v7 }
0x1ef6   :  { %v3419_v8 = vpop.eup %3418 }
0x1ef7   :  { %v3421_v11 = vpop.eup %3420  ;;  %v2134_v26 = vsub.f32 1.0, %v3419_v8 }
0x1ef8   :  { %v2145_v32 = vsub.f32 1.0, %v3421_v11 }
0x1f4f   :  { %v2118_v12 = vpop.permute.xlu1 %2117 }
0x1f50   :  { %v2120_v13 = vmul.f32 %v3419_v8, %v2118_v12  ;;  %v2127_v16 = vmul.f32 %v3421_v11, %v2118_v12 }
0x1f52   :  { %2129 = vrot.lane.b32.xlu1 %v2127_v16, %s3590_s9  ;;  %2122 = vrot.lane.b32.xlu0 %v2120_v13, %s3590_s9 }
0x1f56   :  { %2140 = vrot.lane.b32.xlu1 %v4102_v53, %s3593_s12 }
0x1f5a   :  { %2151 = vrot.lane.b32.xlu1 %v4102_v53, %s3594_s13 }
0x1fc4   :  { %v2123_v63 = vpop.permute.xlu0 %2122  ;;  %v2130_v20 = vpop.permute.xlu1 %2129 }
0x1fc5   :  { %v2125_v62 = vadd.f32 %v2123_v63, %v4114_v18  ;;  %v2132_v21 = vadd.f32 %v2130_v20, %v4116_v57 }
0x1fc7   :  { %3422 = vtanh.f32 %v2125_v62 }
0x1fc8   :  { %3424 = vtanh.f32 %v2132_v21  ;;  %v2141_v24 = vpop.permute.xlu1 %2140 }
0x1fc9   :  { %v2143_v28 = vmul.f32 %v3419_v8, %v2141_v24 }
0x1fcc   :  { %v2152_v30 = vpop.permute.xlu1 %2151 }
0x1fcd   :  { %v2154_v36 = vmul.f32 %v3421_v11, %v2152_v30 }
0x1fd1   :  { %v3423_v22 = vpop.eup %3422 }
0x1fd2   :  { %2136 = vrot.lane.b32.xlu0 %v3423_v22, %s3591_s10  ;;  %v3425_v23 = vpop.eup %3424 }
0x1fd6   :  { %2147 = vrot.lane.b32.xlu0 %v3425_v23, %s3591_s10 }
0x2044   :  { %v2137_v27 = vpop.permute.xlu0 %2136 }
0x2045   :  { %v2139_v9 = vmul.f32 %v2137_v27, %v2134_v26 }
0x2047   :  { %v2144_v31 = vadd.f32 %v2143_v28, %v2139_v9 }
0x2048   :  { %v2148_v33 = vpop.permute.xlu0 %2147 }
0x2049   :  { %v2150_v34 = vmul.f32 %v2148_v33, %v2145_v32  ;;  %2157 = vrot.lane.b32.xlu0 %v2144_v31, %s3591_s10 }
0x204b   :  { %v2155_v35 = vadd.f32 %v2154_v36, %v2150_v34 }
0x204d   :  { %2161 = vrot.lane.b32.xlu1 %v2155_v35, %s3592_s11 }
0x20bb   :  { %v2158_v39 = vpop.permute.xlu0 %2157 }
0x20bf   :  { %v2162_v40 = vpop.permute.xlu1 %2161 }
0x20c0   :  { %v4133_v41 = vsel %vm448_vm5, %v2158_v39, %v2162_v40 }
0x20c1   :  { %3119 = vmatmul.mubr.msk.f32.vlgmr.msra.gmra.mrb[24].mxu0 %vm61_vm0, %v4133_v41 }
0x20c2   :  { %3256 = vmatpush3.bf16.msra.mxu0 %v3977_v2  ;;  %3140 = vmatprep.mubr.msk.f32.mxu0 %vm3587_vm1, %v3588_v1 }
0x20c3   :  { %3257 = vmatprep.subr.bf16.mxu0 %v3586_v0 }
0x20c6   :  { %3259 = vmatpush3.bf16.msra.mxu0 %v3980_v4 }
0x2194   :  { %v2235_v42 = vpop.f32.mrb[24].mxu0 }
0x2195   :  { %v2253_v43 = vadd.f32 %v3997_v25, %v2235_v42  ;;  %v3120_v44 = vpop.f32.mrb[25].mxu0  ;;  %v2239_v45 = vadd.f32 %v2235_v42, %v4116_v57  ;;  %v2246_v46 = vadd.f32 %v2235_v42, %v4114_v18 }
0x2197   :  { %2255 = vrot.lane.b32.xlu0 %v2253_v43, %s3589_s3  ;;  %v2823_v47 = vmul.f32 -1.442695, %v2239_v45  ;;  %v2824_v48 = vmul.f32 -1.442695, %v2246_v46 }
0x2199   :  { %3426 = vpow2.f32 %v2823_v47 }
0x219a   :  { %3428 = vpow2.f32 %v2824_v48 }
0x21a3   :  { %v3427_v49 = vpop.eup %3426 }
0x21a4   :  { %v3429_v50 = vpop.eup %3428  ;;  %v2243_v52 = vadd.f32 1.0, %v3427_v49 }
0x21a5   :  { %v2250_v38 = vadd.f32 1.0, %v3429_v50 }
0x21a6   :  { %3430 = vrcp.f32 %v2243_v52 }
0x21a7   :  { %3432 = vrcp.f32 %v2250_v38 }
0x21b0   :  { %v3431_v54 = vpop.eup %3430 }
0x21b1   :  { %v3433_v55 = vpop.eup %3432  ;;  %v2272_v11 = vsub.f32 1.0, %v3431_v54 }
0x21b2   :  { %v2283_v62 = vsub.f32 1.0, %v3433_v55 }
0x2209   :  { %v2256_v19 = vpop.permute.xlu0 %2255 }
0x220a   :  { %v2258_v58 = vmul.f32 %v3431_v54, %v2256_v19  ;;  %v2265_v61 = vmul.f32 %v3433_v55, %v2256_v19 }
0x220c   :  { %2267 = vrot.lane.b32.xlu0 %v2265_v61, %s3590_s9  ;;  %2260 = vrot.lane.b32.xlu1 %v2258_v58, %s3590_s9 }
0x2210   :  { %2278 = vrot.lane.b32.xlu0 %v4133_v41, %s3593_s12 }
0x2214   :  { %2289 = vrot.lane.b32.xlu0 %v4133_v41, %s3594_s13 }
0x227e   :  { %v2261_v3 = vpop.permute.xlu1 %2260  ;;  %v2268_v5 = vpop.permute.xlu0 %2267 }
0x227f   :  { %v2263_v59 = vadd.f32 %v2261_v3, %v4116_v57  ;;  %v2270_v60 = vadd.f32 %v2268_v5, %v4114_v18 }
0x2281   :  { %3434 = vtanh.f32 %v2263_v59 }
0x2282   :  { %3436 = vtanh.f32 %v2270_v60  ;;  %v2279_v8 = vpop.permute.xlu0 %2278 }
0x2283   :  { %v2281_v13 = vmul.f32 %v3431_v54, %v2279_v8 }
0x2286   :  { %v2290_v63 = vpop.permute.xlu0 %2289 }
0x2287   :  { %v2292_v57 = vmul.f32 %v3433_v55, %v2290_v63 }
0x228b   :  { %v3435_v6 = vpop.eup %3434 }
0x228c   :  { %2274 = vrot.lane.b32.xlu1 %v3435_v6, %s3591_s10  ;;  %v3437_v7 = vpop.eup %3436 }
0x2290   :  { %2285 = vrot.lane.b32.xlu1 %v3437_v7, %s3591_s10 }
0x22fe   :  { %v2275_v12 = vpop.permute.xlu1 %2274 }
0x22ff   :  { %v2277_v16 = vmul.f32 %v2275_v12, %v2272_v11 }
0x2301   :  { %v2282_v20 = vadd.f32 %v2281_v13, %v2277_v16 }
0x2302   :  { %v2286_v21 = vpop.permute.xlu1 %2285 }
0x2303   :  { %v2288_v22 = vmul.f32 %v2286_v21, %v2283_v62  ;;  %2295 = vrot.lane.b32.xlu1 %v2282_v20, %s3591_s10 }
0x2305   :  { %v2293_v18 = vadd.f32 %v2292_v57, %v2288_v22 }
0x2307   :  { %2299 = vrot.lane.b32.xlu0 %v2293_v18, %s3592_s11 }
0x2375   :  { %v2296_v23 = vpop.permute.xlu1 %2295 }
0x2379   :  { %v2300_v24 = vpop.permute.xlu0 %2299 }
0x237a   :  { %v4159_v26 = vsel %vm448_vm5, %v2296_v23, %v2300_v24 }
0x237b   :  { %3130 = vmatmul.mubr.msk.f32.vlgmr.msra.gmra.mrb[16].mxu1 %vm61_vm0, %v4159_v26 }
0x237c   :  { %3262 = vmatpush3.bf16.msra.mxu1 %v3977_v2  ;;  %3151 = vmatprep.mubr.msk.f32.mxu1 %vm3587_vm1, %v3588_v1 }
0x237d   :  { %3263 = vmatprep.subr.bf16.mxu1 %v3586_v0 }
0x2380   :  { %3265 = vmatpush3.bf16.msra.mxu1 %v3980_v4 }
0x244e   :  { %v2373_v27 = vpop.f32.mrb[16].mxu1 }
0x244f   :  { %v2391_v28 = vadd.f32 %v3997_v25, %v2373_v27  ;;  %v3131_v9 = vpop.f32.mrb[17].mxu1  ;;  %v2377_v30 = vadd.f32 %v2373_v27, %v4085_v15  ;;  %v2384_v31 = vadd.f32 %v2373_v27, %v4083_v14 }
0x2451   :  { %2393 = vrot.lane.b32.xlu1 %v2391_v28, %s3589_s3  ;;  %v2826_v32 = vmul.f32 -1.442695, %v2377_v30  ;;  %v2827_v33 = vmul.f32 -1.442695, %v2384_v31 }
0x2453   :  { %3438 = vpow2.f32 %v2826_v32 }
0x2454   :  { %3440 = vpow2.f32 %v2827_v33 }
0x245d   :  { %v3439_v2 = vpop.eup %3438 }
0x245e   :  { %v3441_v1 = vpop.eup %3440  ;;  %v2381_v36 = vadd.f32 1.0, %v3439_v2 }
0x245f   :  { %v2388_v0 = vadd.f32 1.0, %v3441_v1 }
0x2460   :  { %3442 = vrcp.f32 %v2381_v36 }
0x2461   :  { %3444 = vrcp.f32 %v2388_v0 }
0x246a   :  { %v3443_v4 = vpop.eup %3442 }
0x246b   :  { %v3445_v34 = vpop.eup %3444  ;;  %v2410_v49 = vsub.f32 1.0, %v3443_v4 }
0x246c   :  { %v2421_v19 = vsub.f32 1.0, %v3445_v34 }
0x24c3   :  { %v2394_v35 = vpop.permute.xlu1 %2393 }
0x24c4   :  { %v2396_v39 = vmul.f32 %v3443_v4, %v2394_v35  ;;  %v2403_v40 = vmul.f32 %v3445_v34, %v2394_v35 }
0x24c6   :  { %2405 = vrot.lane.b32.xlu1 %v2403_v40, %s3590_s9  ;;  %2398 = vrot.lane.b32.xlu0 %v2396_v39, %s3590_s9 }
0x24ca   :  { %2416 = vrot.lane.b32.xlu1 %v4159_v26, %s3593_s12 }
0x24ce   :  { %2427 = vrot.lane.b32.xlu1 %v4159_v26, %s3594_s13 }
0x2538   :  { %v2399_v42 = vpop.permute.xlu0 %2398  ;;  %v2406_v43 = vpop.permute.xlu1 %2405 }
0x2539   :  { %v2401_v44 = vadd.f32 %v2399_v42, %v4085_v15  ;;  %v2408_v45 = vadd.f32 %v2406_v43, %v4083_v14 }
0x253b   :  { %3446 = vtanh.f32 %v2401_v44 }
0x253c   :  { %3448 = vtanh.f32 %v2408_v45  ;;  %v2417_v48 = vpop.permute.xlu1 %2416 }
0x253d   :  { %v2419_v52 = vmul.f32 %v3443_v4, %v2417_v48 }
0x2540   :  { %v2428_v54 = vpop.permute.xlu1 %2427 }
0x2541   :  { %v2430_v15 = vmul.f32 %v3445_v34, %v2428_v54 }
0x2545   :  { %v3447_v46 = vpop.eup %3446 }
0x2546   :  { %2412 = vrot.lane.b32.xlu0 %v3447_v46, %s3591_s10  ;;  %v3449_v47 = vpop.eup %3448 }
0x254a   :  { %2423 = vrot.lane.b32.xlu0 %v3449_v47, %s3591_s10 }
0x25b8   :  { %v2413_v50 = vpop.permute.xlu0 %2412 }
0x25b9   :  { %v2415_v38 = vmul.f32 %v2413_v50, %v2410_v49 }
0x25bb   :  { %v2420_v55 = vadd.f32 %v2419_v52, %v2415_v38 }
0x25bc   :  { %v2424_v58 = vpop.permute.xlu0 %2423 }
0x25bd   :  { %v2426_v61 = vmul.f32 %v2424_v58, %v2421_v19  ;;  %2433 = vrot.lane.b32.xlu0 %v2420_v55, %s3591_s10 }
0x25bf   :  { %v2431_v14 = vadd.f32 %v2430_v15, %v2426_v61 }
0x25c1   :  { %2437 = vrot.lane.b32.xlu1 %v2431_v14, %s3592_s11 }
0x262f   :  { %v2434_v3 = vpop.permute.xlu0 %2433 }
0x2633   :  { %v2438_v5 = vpop.permute.xlu1 %2437 }
0x2634   :  { %v4185_v59 = vsel %vm448_vm5, %v2434_v3, %v2438_v5 }
0x2635   :  { %3141 = vmatmul.mubr.msk.f32.vlgmr.msra.gmra.mrb[26].mxu0 %vm61_vm0, %v4185_v59 }
0x2708   :  { %v2511_v60 = vpop.f32.mrb[26].mxu0 }
0x2709   :  { %v2529_v6 = vadd.f32 %v3997_v25, %v2511_v60  ;;  %v3142_v7 = vpop.f32.mrb[27].mxu0  ;;  %v2515_v8 = vadd.f32 %v2511_v60, %v4054_v37  ;;  %v2522_v11 = vadd.f32 %v2511_v60, %v4052_v17 }
0x270b   :  { %2531 = vrot.lane.b32.xlu0 %v2529_v6, %s3589_s3  ;;  %v2829_v12 = vmul.f32 -1.442695, %v2515_v8  ;;  %v2830_v13 = vmul.f32 -1.442695, %v2522_v11 }
0x270d   :  { %3450 = vpow2.f32 %v2829_v12 }
0x270e   :  { %3452 = vpow2.f32 %v2830_v13 }
0x2717   :  { %v3451_v16 = vpop.eup %3450 }
0x2718   :  { %v3453_v63 = vpop.eup %3452  ;;  %v2519_v20 = vadd.f32 1.0, %v3451_v16 }
0x2719   :  { %v2526_v62 = vadd.f32 1.0, %v3453_v63 }
0x271a   :  { %3454 = vrcp.f32 %v2519_v20 }
0x271b   :  { %3456 = vrcp.f32 %v2526_v62 }
0x2724   :  { %v3455_v21 = vpop.eup %3454 }
0x2725   :  { %v3457_v57 = vpop.eup %3456  ;;  %v2548_v33 = vsub.f32 1.0, %v3455_v21 }
0x2726   :  { %v2559_v34 = vsub.f32 1.0, %v3457_v57 }
0x277d   :  { %v2532_v22 = vpop.permute.xlu0 %2531 }
0x277e   :  { %v2534_v18 = vmul.f32 %v3455_v21, %v2532_v22  ;;  %v2541_v23 = vmul.f32 %v3457_v57, %v2532_v22  ;;  %v1885_v22 = vadd.f32 %v4071_v10, %v4040_v29 }
0x2780   :  { %2543 = vrot.lane.b32.xlu0 %v2541_v23, %s3590_s9  ;;  %2536 = vrot.lane.b32.xlu1 %v2534_v18, %s3590_s9  ;;  %v2025_v18 = vadd.f32 %v4102_v53, %v1885_v22 }
0x2782   :  { %v2165_v23 = vadd.f32 %v4133_v41, %v2025_v18 }
0x2784   :  { %2554 = vrot.lane.b32.xlu0 %v4185_v59, %s3593_s12 }
0x2788   :  { %2565 = vrot.lane.b32.xlu0 %v4185_v59, %s3594_s13 }
0x27f2   :  { %v2537_v24 = vpop.permute.xlu1 %2536  ;;  %v2544_v27 = vpop.permute.xlu0 %2543 }
0x27f3   :  { %v2539_v28 = vadd.f32 %v2537_v24, %v4054_v37  ;;  %v2546_v9 = vadd.f32 %v2544_v27, %v4052_v17  ;;  %v2303_v24 = vadd.f32 %v4159_v26, %v2165_v23 }
0x27f5   :  { %3458 = vtanh.f32 %v2539_v28  ;;  %v2441_v27 = vadd.f32 %v4185_v59, %v2303_v24 }
0x27f6   :  { %3460 = vtanh.f32 %v2546_v9  ;;  %v2555_v32 = vpop.permute.xlu0 %2554 }
0x27f7   :  { %v2557_v1 = vmul.f32 %v3455_v21, %v2555_v32 }
0x27fa   :  { %v2566_v0 = vpop.permute.xlu0 %2565 }
0x27fb   :  { %v2568_v37 = vmul.f32 %v3457_v57, %v2566_v0 }
0x27ff   :  { %v3459_v30 = vpop.eup %3458 }
0x2800   :  { %2550 = vrot.lane.b32.xlu1 %v3459_v30, %s3591_s10  ;;  %v3461_v31 = vpop.eup %3460 }
0x2804   :  { %2561 = vrot.lane.b32.xlu1 %v3461_v31, %s3591_s10 }
0x2872   :  { %v2551_v2 = vpop.permute.xlu1 %2550 }
0x2873   :  { %v2553_v36 = vmul.f32 %v2551_v2, %v2548_v33 }
0x2875   :  { %v2558_v4 = vadd.f32 %v2557_v1, %v2553_v36 }
0x2876   :  { %v2562_v35 = vpop.permute.xlu1 %2561 }
0x2877   :  { %v2564_v39 = vmul.f32 %v2562_v35, %v2559_v34  ;;  %2571 = vrot.lane.b32.xlu1 %v2558_v4, %s3591_s10 }
0x2879   :  { %v2569_v17 = vadd.f32 %v2568_v37, %v2564_v39 }
0x287b   :  { %2575 = vrot.lane.b32.xlu0 %v2569_v17, %s3592_s11 }
0x28e9   :  { %v2572_v40 = vpop.permute.xlu1 %2571 }
0x28ed   :  { %v2576_v42 = vpop.permute.xlu0 %2575 }
0x28ee   :  { %v2578_v43 = vsel %vm448_vm5, %v2572_v40, %v2576_v42 }
0x28ef   :  { %3152 = vmatmul.mubr.msk.f32.vlgmr.msra.gmra.mrb[18].mxu1 %vm61_vm0, %v2578_v43  ;;  %v2579_v9 = vadd.f32 %v2578_v43, %v2441_v27 }
0x29c2   :  { %v2649_v44 = vpop.f32.mrb[18].mxu1 }
0x29c3   :  { %v2667_v45 = vadd.f32 %v3997_v25, %v2649_v44  ;;  %v3153_v46 = vpop.f32.mrb[19].mxu1  ;;  %v2653_v47 = vadd.f32 %v2649_v44, %v4028_v56  ;;  %v2660_v48 = vadd.f32 %v2649_v44, %v4022_v51 }
0x29c5   :  { %2669 = vrot.lane.b32.xlu1 %v2667_v45, %s3589_s3  ;;  %v2832_v49 = vmul.f32 -1.442695, %v2653_v47  ;;  %v2833_v50 = vmul.f32 -1.442695, %v2660_v48 }
0x29c7   :  { %3462 = vpow2.f32 %v2832_v49 }
0x29c8   :  { %3464 = vpow2.f32 %v2833_v50 }
0x29d1   :  { %v3463_v52 = vpop.eup %3462 }
0x29d2   :  { %v3465_v38 = vpop.eup %3464  ;;  %v2657_v54 = vadd.f32 1.0, %v3463_v52 }
0x29d3   :  { %v2664_v55 = vadd.f32 1.0, %v3465_v38 }
0x29d4   :  { %3466 = vrcp.f32 %v2657_v54 }
0x29d5   :  { %3468 = vrcp.f32 %v2664_v55 }
0x29de   :  { %v3467_v19 = vpop.eup %3466 }
0x29df   :  { %v3469_v58 = vpop.eup %3468  ;;  %v2686_v11 = vsub.f32 1.0, %v3467_v19 }
0x29e0   :  { %v2697_v62 = vsub.f32 1.0, %v3469_v58 }
0x2a37   :  { %v2670_v25 = vpop.permute.xlu1 %2669 }
0x2a38   :  { %v2672_v15 = vmul.f32 %v3467_v19, %v2670_v25  ;;  %v2679_v61 = vmul.f32 %v3469_v58, %v2670_v25 }
0x2a3a   :  { %2681 = vrot.lane.b32.xlu1 %v2679_v61, %s3590_s9  ;;  %2674 = vrot.lane.b32.xlu0 %v2672_v15, %s3590_s9 }
0x2a3e   :  { %2692 = vrot.lane.b32.xlu1 %v2578_v43, %s3593_s12 }
0x2a42   :  { %2703 = vrot.lane.b32.xlu1 %v2578_v43, %s3594_s13 }
0x2aac   :  { %v2675_v14 = vpop.permute.xlu0 %2674  ;;  %v2682_v3 = vpop.permute.xlu1 %2681 }
0x2aad   :  { %v2677_v5 = vadd.f32 %v2675_v14, %v4028_v56  ;;  %v2684_v60 = vadd.f32 %v2682_v3, %v4022_v51 }
0x2aaf   :  { %3470 = vtanh.f32 %v2677_v5 }
0x2ab0   :  { %3472 = vtanh.f32 %v2684_v60  ;;  %v2693_v8 = vpop.permute.xlu1 %2692 }
0x2ab1   :  { %v2695_v13 = vmul.f32 %v3467_v19, %v2693_v8 }
0x2ab4   :  { %v2704_v63 = vpop.permute.xlu1 %2703 }
0x2ab5   :  { %v2706_v56 = vmul.f32 %v3469_v58, %v2704_v63 }
0x2ab9   :  { %v3471_v6 = vpop.eup %3470 }
0x2aba   :  { %2688 = vrot.lane.b32.xlu0 %v3471_v6, %s3591_s10  ;;  %v3473_v7 = vpop.eup %3472 }
0x2abe   :  { %2699 = vrot.lane.b32.xlu0 %v3473_v7, %s3591_s10 }
0x2b2c   :  { %v2689_v12 = vpop.permute.xlu0 %2688 }
0x2b2d   :  { %v2691_v16 = vmul.f32 %v2689_v12, %v2686_v11 }
0x2b2f   :  { %v2696_v20 = vadd.f32 %v2695_v13, %v2691_v16 }
0x2b30   :  { %v2700_v21 = vpop.permute.xlu0 %2699 }
0x2b31   :  { %v2702_v57 = vmul.f32 %v2700_v21, %v2697_v62  ;;  %2709 = vrot.lane.b32.xlu0 %v2696_v20, %s3591_s10 }
0x2b33   :  { %v2707_v51 = vadd.f32 %v2706_v56, %v2702_v57 }
0x2b35   :  { %2713 = vrot.lane.b32.xlu1 %v2707_v51, %s3592_s11 }
0x2ba3   :  { %v2710_v28 = vpop.permute.xlu0 %2709 }
0x2ba7   :  { %v2714_v30 = vpop.permute.xlu1 %2713 }
0x2ba8   :  { %v2716_v31 = vsel %vm448_vm5, %v2710_v28, %v2714_v30 }
0x2ba9   :  { %v2717_v32 = vadd.f32 %v2716_v31, %v2579_v9 }
0x2bab   :  { %v2718_v33 = vmul.f32 0.125, %v2717_v32 }
0x2bad   :  { %2720 = vst.msk [vmem:[#allocation13] sm:$0x3] %vm2719_vm6, %v2718_v33 }
0x2bae   :  { %3561 = shalt.err (!%p3558_p3)
}
0x2baf   :  { %s3562_s19 = scalar_lea.hbm %s4244_s4, 32 }
0x2bb0   :  { %p3563_p4 = scmp.ne.s32.totalorder %s4244_s4, %s3562_s19  ;;  %p3566_p5 = scmp.lt.u32.totalorder %s3562_s19, %s4244_s4 }
0x2bb2   :  { %p3568_p6 = pnand %p3566_p5, %p3563_p4 }
0x2bb4   :  { %3571 = shalt.err (!%p3568_p6)
}
0x2bb5   :  { %2730 = dma.vmem_to_hbm [thread:$0]  %s2728_s15, 32, %s4244_s4, [#allocation9]  }
0x2bb6   :  { %3578 = dma.done.wait [#allocation9], 32  }
0x2bb7   :  { %3579 = vsyncadd [#allocation9], 4294967264 }
0x2bb8   :  { %2734 = vsyncpa [#allocation8], 1 }
0x2bb9   :  { %2735 = vsyncpa [#allocation11], 1 }
0x2bba   :  { %2736 = vsyncpa [#allocation9], 1 }

</bundles_post_ra>
